<compile_context>
chip_gen: v6e
topology: v6e:2x2x1
jax: 0.10.0
libtpu: 0.0.40
codegen_flags: <defaults>
</compile_context>

<pallas_src>
import functools

import jax
import jax.numpy as jnp
from jax.experimental import pallas as pl
from jax.experimental.pallas import tpu as pltpu

BN_EPS = 1e-5
GN_EPS = 1e-5


# ----------------------------------------------------------------------------
# Pallas kernel
# ----------------------------------------------------------------------------
def _shsa_one_scale(xs, wqkv_bf, bqkv, rs, wp1_bf, wp2_bf, *, pdim, qk_dim):
    """SHSA on one channels-first (C, Ns) f32 tile. Returns (dim, Ns) f32."""
    x1 = xs[:pdim, :]                              # (pdim, Ns) f32
    x2 = xs[pdim:, :]                              # (dim-pdim, Ns) f32

    # MXU starts immediately on the un-normalized x1; GroupNorm moments
    # (XLU/EUP) run concurrently and are applied as an exact scalar fix-up.
    t = jnp.dot(wqkv_bf, x1.astype(jnp.bfloat16),
                preferred_element_type=jnp.float32)          # (qk_out, Ns)

    mean = jnp.mean(x1)
    var = jnp.maximum(jnp.mean(x1 * x1) - mean * mean, 0.0)
    inv_std = jax.lax.rsqrt(var + GN_EPS)

    # Wqkv @ ((x1 - mean) * inv_std) == inv_std * (Wqkv@x1 - mean * rowsum(Wqkv))
    qkv = inv_std * (t - mean * rs) + bqkv                    # f32

    # attn_scale is already folded into the q rows of wqkv/bqkv/rs.
    q = qkv[:qk_dim, :].astype(jnp.bfloat16)
    k = qkv[qk_dim:2 * qk_dim, :].astype(jnp.bfloat16)
    v = qkv[2 * qk_dim:, :]

    # attn[i, j] = sum_d q[d, i] * k[d, j]          (q^T k)
    attn = jax.lax.dot_general(q, k, (((0,), (0,)), ((), ())),
                               preferred_element_type=jnp.float32)
    attn = attn - jnp.max(attn, axis=-1, keepdims=True)
    p = jnp.exp(attn)
    p = p * pl.reciprocal(jnp.sum(p, axis=-1, keepdims=True), approx=True)

    # x1o[c, i] = sum_j v[c, j] * attn[i, j]        (v attn^T)
    x1o = jax.lax.dot_general(v.astype(jnp.bfloat16), p.astype(jnp.bfloat16),
                              (((1,), (1,)), ((), ())),
                              preferred_element_type=jnp.float32)

    # proj (ReLU -> 1x1 conv with the fuse-conv slice folded in); the channel
    # concat is replaced by a split weight: Wp1 @ relu(x1o) + Wp2 @ relu(x2).
    y = (jnp.dot(wp1_bf, jnp.maximum(x1o, 0.0).astype(jnp.bfloat16),
                 preferred_element_type=jnp.float32)
         + jnp.dot(wp2_bf, jnp.maximum(x2, 0.0).astype(jnp.bfloat16),
                   preferred_element_type=jnp.float32))
    return y


def _make_msshsa_kernel(has_resize, *, bb, dim, qk_dim, pdim):
    qk_out = 2 * qk_dim + pdim
    wcol = max(pdim, dim - pdim)

    def kernel(*refs):
        x_ref, slabs_ref = refs[0], refs[1]
        o_ref = refs[-1]
        bias_ref = refs[-2]
        resize_refs = refs[2:-2]

        # Unpack the packed weight slab once (shared across the batch loop).
        scale_w = []
        ri = 0
        for s, resize in enumerate(has_resize):
            slab = slabs_ref[s]                                   # (rows, cols) f32
            wqkv_bf = slab[0:qk_out, 0:pdim].astype(jnp.bfloat16)
            wp1_bf = slab[qk_out:qk_out + dim, 0:pdim].astype(jnp.bfloat16)
            wp2_bf = slab[qk_out + dim:qk_out + 2 * dim,
                          0:dim - pdim].astype(jnp.bfloat16)
            bqkv = slab[0:qk_out, wcol:wcol + 1]                  # (qk_out, 1) f32
            rs = slab[0:qk_out, wcol + 1:wcol + 2]                # (qk_out, 1) f32
            if resize:
                rd_t = resize_refs[ri][...]                       # (N, Ns) bf16
                ru_t = resize_refs[ri + 1][...]                   # (Ns, N) bf16
                ri += 2
            else:
                rd_t = ru_t = None
            scale_w.append((wqkv_bf, bqkv, rs, wp1_bf, wp2_bf, rd_t, ru_t))

        bias = bias_ref[...]                                      # (dim, 1) f32

        # Static unroll over the batch slab: independent chains interleave.
        for b in range(bb):
            x = x_ref[b].astype(jnp.float32)                      # (C, N)
            x_bf = x.astype(jnp.bfloat16)
            acc = None
            for (wqkv_bf, bqkv, rs, wp1_bf, wp2_bf, rd_t, ru_t) in scale_w:
                if rd_t is not None:
                    xs = jnp.dot(x_bf, rd_t, preferred_element_type=jnp.float32)
                else:
                    xs = x
                y = _shsa_one_scale(xs, wqkv_bf, bqkv, rs, wp1_bf, wp2_bf,
                                    pdim=pdim, qk_dim=qk_dim)
                if ru_t is not None:
                    y = jnp.dot(y.astype(jnp.bfloat16), ru_t,
                                preferred_element_type=jnp.float32)
                acc = y if acc is None else acc + y
            o_ref[b] = (acc + bias).astype(o_ref.dtype)

    return kernel


# ----------------------------------------------------------------------------
# pallas_call wrapper
# ----------------------------------------------------------------------------
def _full_spec(shape):
    nd = len(shape)
    return pl.BlockSpec(shape, lambda g, _nd=nd: (0,) * _nd)


def _has_two_tensorcores():
    """Best-effort detection of a 2-TensorCore chip (v7x)."""
    try:
        kind = jax.devices()[0].device_kind.lower()
    except Exception:
        return False
    return "v7" in kind


def multi_scale_shsa(x_nchw, folded, *, dim, qk_dim, pdim, scales,
                     core_split=False):
    B, C, H, W = x_nchw.shape
    N = H * W
    x_bcn = x_nchw.reshape(B, C, N)               # pure reshape, no transpose

    # 1 grid step on single-TC chips (whole batch unrolled in-kernel);
    # 2 CORE_PARALLEL steps on a 2-TC chip.
    num_blocks = 2 if (core_split and B >= 2 and B % 2 == 0) else 1
    bb = B // num_blocks

    has_resize = tuple(bool(sc < 1) for sc in scales)

    flat_args = [folded["slabs"]]
    flat_specs = [_full_spec(folded["slabs"].shape)]
    for r in folded["resize"]:
        if r is not None:
            for a in r:                           # rd_t, ru_t (bf16)
                flat_args.append(a)
                flat_specs.append(_full_spec(a.shape))
    flat_args.append(folded["bias"])
    flat_specs.append(_full_spec(folded["bias"].shape))

    kernel = _make_msshsa_kernel(has_resize, bb=bb, dim=dim,
                                 qk_dim=qk_dim, pdim=pdim)
    if num_blocks == 2:
        sems = (pltpu.CORE_PARALLEL,)
    else:
        sems = ("arbitrary",)

    out = pl.pallas_call(
        kernel,
        out_shape=jax.ShapeDtypeStruct((B, dim, N), x_nchw.dtype),
        grid=(num_blocks,),
        in_specs=[pl.BlockSpec((bb, C, N), lambda g: (g, 0, 0))] + flat_specs,
        out_specs=pl.BlockSpec((bb, dim, N), lambda g: (g, 0, 0)),
        compiler_params=pltpu.CompilerParams(dimension_semantics=sems),
    )(x_bcn, *flat_args)
    return out.reshape(B, dim, H, W)


# ----------------------------------------------------------------------------
# Parameter setup: raw PyTorch-layout params + offline folding
# ----------------------------------------------------------------------------
def _resize_matrix_1d(in_size, out_size):
    """PyTorch F.interpolate bilinear, align_corners=False, no antialias."""
    ratio = in_size / out_size
    dst = jnp.arange(out_size, dtype=jnp.float32)
    src = jnp.maximum((dst + 0.5) * ratio - 0.5, 0.0)
    i0 = jnp.clip(jnp.floor(src).astype(jnp.int32), 0, in_size - 1)
    i1 = jnp.minimum(i0 + 1, in_size - 1)
    w1 = src - i0.astype(jnp.float32)
    w0 = 1.0 - w1
    rows = jnp.arange(out_size)
    R = jnp.zeros((out_size, in_size), jnp.float32)
    R = R.at[rows, i0].add(w0)
    R = R.at[rows, i1].add(w1)
    return R


def _resize_matrix_2d(in_hw, out_hw):
    Rh = _resize_matrix_1d(in_hw[0], out_hw[0])
    Rw = _resize_matrix_1d(in_hw[1], out_hw[1])
    return jnp.kron(Rh, Rw)                       # (out_h*out_w, in_h*in_w)


def init_raw_params(key, dim, qk_dim, pdim, num_scales):
    qk_out = 2 * qk_dim + pdim
    keys = jax.random.split(key, 2 * num_scales + 1)
    shsa = []
    for s in range(num_scales):
        shsa.append(dict(
            wqkv=0.1 * jax.random.normal(keys[2 * s], (qk_out, pdim), jnp.float32),
            wproj=0.1 * jax.random.normal(keys[2 * s + 1], (dim, dim), jnp.float32),
            gamma=jnp.ones((pdim,), jnp.float32),   # GroupNorm weight (init)
            beta=jnp.zeros((pdim,), jnp.float32),   # GroupNorm bias (init)
        ))
    wfuse = 0.1 * jax.random.normal(keys[-1], (dim, dim * num_scales), jnp.float32)
    return dict(shsa=shsa, wfuse=wfuse)


def fold_params(raw, *, dim, qk_dim, pdim, H, W, scales):
    """Fold BatchNorm (init stats), GroupNorm affine, attn_scale and the fuse
    conv into per-scale weights; pack them into one slab; precompute the dense
    bilinear resize matrices (bf16)."""
    # TODO(synk): with a trained checkpoint, fold the actual BN running stats /
    # affine parameters instead of the __init__ values assumed here.
    s_bn = 1.0 / jnp.sqrt(jnp.float32(1.0 + BN_EPS))
    qk_out = 2 * qk_dim + pdim
    wcol = max(pdim, dim - pdim)
    width = wcol + 2
    rows = qk_out + 2 * dim
    attn_scale = qk_dim ** (-0.5)
    qscale = jnp.concatenate([
        jnp.full((qk_dim,), attn_scale, jnp.float32),
        jnp.ones((qk_out - qk_dim,), jnp.float32)])

    slabs, resize = [], []
    for s, sc in enumerate(scales):
        p = raw["shsa"][s]
        wqkv_eff = s_bn * p["wqkv"]                        # (qk_out, pdim)
        wqkv_f = wqkv_eff * p["gamma"][None, :]            # fold GN gamma
        bqkv_f = wqkv_eff @ p["beta"]                      # fold GN beta
        wqkv_f = wqkv_f * qscale[:, None]                  # fold attn_scale (q rows)
        bqkv_f = bqkv_f * qscale
        rs = jnp.sum(wqkv_f, axis=1)                       # rowsum for GN hoist

        wproj_eff = s_bn * p["wproj"]                      # (dim, dim)
        wfuse_s = s_bn * raw["wfuse"][:, s * dim:(s + 1) * dim]
        wcomb = wfuse_s @ wproj_eff                        # fuse folded into proj
        wp1, wp2 = wcomb[:, :pdim], wcomb[:, pdim:]

        slab = jnp.zeros((rows, width), jnp.float32)
        slab = slab.at[0:qk_out, 0:pdim].set(wqkv_f)
        slab = slab.at[qk_out:qk_out + dim, 0:pdim].set(wp1)
        slab = slab.at[qk_out + dim:qk_out + 2 * dim, 0:dim - pdim].set(wp2)
        slab = slab.at[0:qk_out, wcol].set(bqkv_f)
        slab = slab.at[0:qk_out, wcol + 1].set(rs)
        slabs.append(slab)

        if sc < 1:
            sh, sw = int(H * sc), int(W * sc)
            rd = _resize_matrix_2d((H, W), (sh, sw))       # (Ns, N)
            ru = _resize_matrix_2d((sh, sw), (H, W))       # (N, Ns)
            resize.append((rd.T.astype(jnp.bfloat16),      # (N, Ns)
                           ru.T.astype(jnp.bfloat16)))     # (Ns, N)
        else:
            resize.append(None)

    return dict(slabs=jnp.stack(slabs),                    # (num_scales, rows, width)
                resize=resize,
                bias=jnp.zeros((dim, 1), jnp.float32))     # folded biases are 0 at init


# ----------------------------------------------------------------------------
# Pure-JAX reference (mirrors the PyTorch module, BN eval with init stats)
# ----------------------------------------------------------------------------
def reference_forward(x_nchw, raw, *, dim, qk_dim, pdim, scales):
    P = jax.lax.Precision.HIGHEST
    B, C, H, W = x_nchw.shape
    N = H * W
    s_bn = 1.0 / jnp.sqrt(jnp.float32(1.0 + BN_EPS))
    x = x_nchw.reshape(B, C, N)
    feats = []
    for s, sc in enumerate(scales):
        p = raw["shsa"][s]
        if sc < 1:
            sh, sw = int(H * sc), int(W * sc)
            rd = _resize_matrix_2d((H, W), (sh, sw))
            ru = _resize_matrix_2d((sh, sw), (H, W))
            xs = jnp.einsum("sn,bcn->bcs", rd, x, precision=P)
        else:
            xs = x
        x1, x2 = xs[:, :pdim], xs[:, pdim:]
        mean = jnp.mean(x1, axis=(1, 2), keepdims=True)
        var = jnp.mean((x1 - mean) ** 2, axis=(1, 2), keepdims=True)
        xn = (x1 - mean) / jnp.sqrt(var + GN_EPS)
        xn = xn * p["gamma"][None, :, None] + p["beta"][None, :, None]
        qkv = s_bn * jnp.einsum("oc,bcn->bon", p["wqkv"], xn, precision=P)
        q, k, v = qkv[:, :qk_dim], qkv[:, qk_dim:2 * qk_dim], qkv[:, 2 * qk_dim:]
        attn = jnp.einsum("bdi,bdj->bij", q, k, precision=P) * (qk_dim ** -0.5)
        attn = jax.nn.softmax(attn, axis=-1)
        x1o = jnp.einsum("bpj,bij->bpi", v, attn, precision=P)
        y = jnp.maximum(jnp.concatenate([x1o, x2], axis=1), 0.0)
        y = s_bn * jnp.einsum("oc,bcn->bon", p["wproj"], y, precision=P)
        if sc < 1:
            y = jnp.einsum("ns,bcs->bcn", ru, y, precision=P)
        feats.append(y)
    cat = jnp.concatenate(feats, axis=1)
    out = s_bn * jnp.einsum("oc,bcn->bon", raw["wfuse"], cat, precision=P)
    return out.reshape(B, dim, H, W)


# ----------------------------------------------------------------------------
if __name__ == "__main__":
    dim, qk_dim, pdim = 16, 8, 8
    B, H, W = 2, 16, 16
    scales = (1, 0.5, 0.25)

    key = jax.random.PRNGKey(0)
    kx, kp = jax.random.split(key)
    x = jax.random.normal(kx, (B, dim, H, W), jnp.float32)   # NCHW input
    raw = init_raw_params(kp, dim, qk_dim, pdim, len(scales))
    folded = fold_params(raw, dim=dim, qk_dim=qk_dim, pdim=pdim,
                         H=H, W=W, scales=scales)

    def run(split):
        fwd = jax.jit(functools.partial(
            multi_scale_shsa, dim=dim, qk_dim=qk_dim, pdim=pdim,
            scales=scales, core_split=split))
        out = fwd(x, folded)
        jax.block_until_ready(out)
        return out

    use_split = _has_two_tensorcores() and B >= 2 and B % 2 == 0
    if use_split:
        try:
            out = run(True)
        except Exception:
            out = run(False)       # fall back to the single-block path
    else:
        out = run(False)

    assert out.shape == (B, dim, H, W), out.shape

    ref = reference_forward(x, raw, dim=dim, qk_dim=qk_dim, pdim=pdim,
                            scales=scales)
    max_err = float(jnp.max(jnp.abs(out - ref)))
    assert max_err < 2e-2, f"max abs err {max_err}"
    print("KERNEL_OK")
</pallas_src>

<mosaic_0001>
module attributes {stable_mosaic.version = 11 : i64} {
  func.func @kernel(%arg0: i32, %arg1: memref<2x16x256xf32, #tpu.memory_space<vmem>>, %arg2: memref<3x56x10xf32, #tpu.memory_space<vmem>>, %arg3: memref<256x64xbf16, #tpu.memory_space<vmem>>, %arg4: memref<64x256xbf16, #tpu.memory_space<vmem>>, %arg5: memref<256x16xbf16, #tpu.memory_space<vmem>>, %arg6: memref<16x256xbf16, #tpu.memory_space<vmem>>, %arg7: memref<16x1xf32, #tpu.memory_space<vmem>>, %arg8: memref<2x16x256xf32, #tpu.memory_space<vmem>>) attributes {dimension_semantics = [#tpu.dimension_semantics<arbitrary>], iteration_bounds = array<i64: 1>, scalar_prefetch = 0 : i64, scratch_operands = 0 : i64, tpu.core_type = #tpu.core_type<tc>, window_params = [{transform_indices = @transform_0, window_bounds = array<i64: 2, 16, 256>}, {pipeline_mode = #tpu.pipeline_mode<synchronous>, transform_indices = @transform_1, window_bounds = array<i64: 3, 56, 10>}, {pipeline_mode = #tpu.pipeline_mode<synchronous>, transform_indices = @transform_2, window_bounds = array<i64: 256, 64>}, {pipeline_mode = #tpu.pipeline_mode<synchronous>, transform_indices = @transform_3, window_bounds = array<i64: 64, 256>}, {pipeline_mode = #tpu.pipeline_mode<synchronous>, transform_indices = @transform_4, window_bounds = array<i64: 256, 16>}, {pipeline_mode = #tpu.pipeline_mode<synchronous>, transform_indices = @transform_5, window_bounds = array<i64: 16, 256>}, {pipeline_mode = #tpu.pipeline_mode<synchronous>, transform_indices = @transform_6, window_bounds = array<i64: 16, 1>}, {transform_indices = @transform_7, window_bounds = array<i64: 2, 16, 256>}]} {
    %c0 = arith.constant 0 : index
    %c0_0 = arith.constant 0 : index
    %c0_1 = arith.constant 0 : index
    %0 = vector.load %arg2[%c0, %c0_0, %c0_1] : memref<3x56x10xf32, #tpu.memory_space<vmem>>, vector<1x56x10xf32>
    %1 = vector.shape_cast %0 : vector<1x56x10xf32> to vector<56x10xf32>
    %2 = vector.extract_strided_slice %1 {offsets = [0, 0], sizes = [24, 8], strides = [1, 1]} : vector<56x10xf32> to vector<24x8xf32>
    %3 = arith.truncf %2 : vector<24x8xf32> to vector<24x8xbf16>
    %4 = vector.extract_strided_slice %1 {offsets = [24, 0], sizes = [16, 8], strides = [1, 1]} : vector<56x10xf32> to vector<16x8xf32>
    %5 = arith.truncf %4 : vector<16x8xf32> to vector<16x8xbf16>
    %6 = vector.extract_strided_slice %1 {offsets = [40, 0], sizes = [16, 8], strides = [1, 1]} : vector<56x10xf32> to vector<16x8xf32>
    %7 = arith.truncf %6 : vector<16x8xf32> to vector<16x8xbf16>
    %8 = vector.extract_strided_slice %1 {offsets = [0, 8], sizes = [24, 1], strides = [1, 1]} : vector<56x10xf32> to vector<24x1xf32>
    %9 = vector.extract_strided_slice %1 {offsets = [0, 9], sizes = [24, 1], strides = [1, 1]} : vector<56x10xf32> to vector<24x1xf32>
    %c1 = arith.constant 1 : index
    %c0_2 = arith.constant 0 : index
    %c0_3 = arith.constant 0 : index
    %10 = vector.load %arg2[%c1, %c0_2, %c0_3] : memref<3x56x10xf32, #tpu.memory_space<vmem>>, vector<1x56x10xf32>
    %11 = vector.shape_cast %10 : vector<1x56x10xf32> to vector<56x10xf32>
    %12 = vector.extract_strided_slice %11 {offsets = [0, 0], sizes = [24, 8], strides = [1, 1]} : vector<56x10xf32> to vector<24x8xf32>
    %13 = arith.truncf %12 : vector<24x8xf32> to vector<24x8xbf16>
    %14 = vector.extract_strided_slice %11 {offsets = [24, 0], sizes = [16, 8], strides = [1, 1]} : vector<56x10xf32> to vector<16x8xf32>
    %15 = arith.truncf %14 : vector<16x8xf32> to vector<16x8xbf16>
    %16 = vector.extract_strided_slice %11 {offsets = [40, 0], sizes = [16, 8], strides = [1, 1]} : vector<56x10xf32> to vector<16x8xf32>
    %17 = arith.truncf %16 : vector<16x8xf32> to vector<16x8xbf16>
    %18 = vector.extract_strided_slice %11 {offsets = [0, 8], sizes = [24, 1], strides = [1, 1]} : vector<56x10xf32> to vector<24x1xf32>
    %19 = vector.extract_strided_slice %11 {offsets = [0, 9], sizes = [24, 1], strides = [1, 1]} : vector<56x10xf32> to vector<24x1xf32>
    %c0_4 = arith.constant 0 : index
    %c0_5 = arith.constant 0 : index
    %20 = vector.load %arg3[%c0_4, %c0_5] : memref<256x64xbf16, #tpu.memory_space<vmem>>, vector<256x64xbf16>
    %c0_6 = arith.constant 0 : index
    %c0_7 = arith.constant 0 : index
    %21 = vector.load %arg4[%c0_6, %c0_7] : memref<64x256xbf16, #tpu.memory_space<vmem>>, vector<64x256xbf16>
    %c2 = arith.constant 2 : index
    %c0_8 = arith.constant 0 : index
    %c0_9 = arith.constant 0 : index
    %22 = vector.load %arg2[%c2, %c0_8, %c0_9] : memref<3x56x10xf32, #tpu.memory_space<vmem>>, vector<1x56x10xf32>
    %23 = vector.shape_cast %22 : vector<1x56x10xf32> to vector<56x10xf32>
    %24 = vector.extract_strided_slice %23 {offsets = [0, 0], sizes = [24, 8], strides = [1, 1]} : vector<56x10xf32> to vector<24x8xf32>
    %25 = arith.truncf %24 : vector<24x8xf32> to vector<24x8xbf16>
    %26 = vector.extract_strided_slice %23 {offsets = [24, 0], sizes = [16, 8], strides = [1, 1]} : vector<56x10xf32> to vector<16x8xf32>
    %27 = arith.truncf %26 : vector<16x8xf32> to vector<16x8xbf16>
    %28 = vector.extract_strided_slice %23 {offsets = [40, 0], sizes = [16, 8], strides = [1, 1]} : vector<56x10xf32> to vector<16x8xf32>
    %29 = arith.truncf %28 : vector<16x8xf32> to vector<16x8xbf16>
    %30 = vector.extract_strided_slice %23 {offsets = [0, 8], sizes = [24, 1], strides = [1, 1]} : vector<56x10xf32> to vector<24x1xf32>
    %31 = vector.extract_strided_slice %23 {offsets = [0, 9], sizes = [24, 1], strides = [1, 1]} : vector<56x10xf32> to vector<24x1xf32>
    %c0_10 = arith.constant 0 : index
    %c0_11 = arith.constant 0 : index
    %32 = vector.load %arg5[%c0_10, %c0_11] : memref<256x16xbf16, #tpu.memory_space<vmem>>, vector<256x16xbf16>
    %c0_12 = arith.constant 0 : index
    %c0_13 = arith.constant 0 : index
    %33 = vector.load %arg6[%c0_12, %c0_13] : memref<16x256xbf16, #tpu.memory_space<vmem>>, vector<16x256xbf16>
    %c0_14 = arith.constant 0 : index
    %c0_15 = arith.constant 0 : index
    %34 = vector.load %arg7[%c0_14, %c0_15] : memref<16x1xf32, #tpu.memory_space<vmem>>, vector<16x1xf32>
    %c0_16 = arith.constant 0 : index
    %c0_17 = arith.constant 0 : index
    %c0_18 = arith.constant 0 : index
    %35 = vector.load %arg1[%c0_16, %c0_17, %c0_18] : memref<2x16x256xf32, #tpu.memory_space<vmem>>, vector<1x16x256xf32>
    %36 = vector.shape_cast %35 : vector<1x16x256xf32> to vector<16x256xf32>
    %37 = arith.truncf %36 : vector<16x256xf32> to vector<16x256xbf16>
    %38 = vector.extract_strided_slice %36 {offsets = [0, 0], sizes = [8, 256], strides = [1, 1]} : vector<16x256xf32> to vector<8x256xf32>
    %39 = vector.extract_strided_slice %36 {offsets = [8, 0], sizes = [8, 256], strides = [1, 1]} : vector<16x256xf32> to vector<8x256xf32>
    %40 = arith.truncf %38 : vector<8x256xf32> to vector<8x256xbf16>
    %cst = arith.constant dense<0.000000e+00> : vector<24x256xf32>
    %41 = tpu.matmul %3, %40, %cst {dimension_numbers = #tpu.dot_dimension_numbers<[1], [0], [0], [1], [0, 0, 1, 1], [], []>} : vector<24x8xbf16>, vector<8x256xbf16>, vector<24x256xf32> -> vector<24x256xf32>
    %42 = vector.shape_cast %38 : vector<8x256xf32> to vector<1x8x256xf32>
    %cst_19 = arith.constant dense<0.000000e+00> : vector<1xf32>
    %43 = vector.multi_reduction <add>, %42, %cst_19 [1, 2] : vector<1x8x256xf32> to vector<1xf32>
    %44 = vector.shape_cast %43 : vector<1xf32> to vector<1x1x1xf32>
    %45 = vector.extract %44[0, 0, 0] : f32 from vector<1x1x1xf32>
    %cst_20 = arith.constant 2.048000e+03 : f32
    %46 = arith.divf %45, %cst_20 : f32
    %47 = arith.mulf %38, %38 : vector<8x256xf32>
    %48 = vector.shape_cast %47 : vector<8x256xf32> to vector<1x8x256xf32>
    %cst_21 = arith.constant dense<0.000000e+00> : vector<1xf32>
    %49 = vector.multi_reduction <add>, %48, %cst_21 [1, 2] : vector<1x8x256xf32> to vector<1xf32>
    %50 = vector.shape_cast %49 : vector<1xf32> to vector<1x1x1xf32>
    %51 = vector.extract %50[0, 0, 0] : f32 from vector<1x1x1xf32>
    %cst_22 = arith.constant 2.048000e+03 : f32
    %52 = arith.divf %51, %cst_22 : f32
    %53 = arith.mulf %46, %46 : f32
    %54 = arith.subf %52, %53 : f32
    %cst_23 = arith.constant 0.000000e+00 : f32
    %55 = arith.maximumf %54, %cst_23 : f32
    %cst_24 = arith.constant 9.99999974E-6 : f32
    %56 = arith.addf %55, %cst_24 : f32
    %57 = math.rsqrt %56 : f32
    %58 = vector.broadcast %46 : f32 to vector<24x1xf32>
    %59 = arith.mulf %58, %9 : vector<24x1xf32>
    %60 = vector.broadcast %59 : vector<24x1xf32> to vector<24x256xf32>
    %61 = arith.subf %41, %60 : vector<24x256xf32>
    %62 = vector.broadcast %57 : f32 to vector<24x256xf32>
    %63 = arith.mulf %62, %61 : vector<24x256xf32>
    %64 = vector.broadcast %8 : vector<24x1xf32> to vector<24x256xf32>
    %65 = arith.addf %63, %64 : vector<24x256xf32>
    %66 = vector.extract_strided_slice %65 {offsets = [0, 0], sizes = [8, 256], strides = [1, 1]} : vector<24x256xf32> to vector<8x256xf32>
    %67 = arith.truncf %66 : vector<8x256xf32> to vector<8x256xbf16>
    %68 = vector.extract_strided_slice %65 {offsets = [8, 0], sizes = [8, 256], strides = [1, 1]} : vector<24x256xf32> to vector<8x256xf32>
    %69 = arith.truncf %68 : vector<8x256xf32> to vector<8x256xbf16>
    %70 = vector.extract_strided_slice %65 {offsets = [16, 0], sizes = [8, 256], strides = [1, 1]} : vector<24x256xf32> to vector<8x256xf32>
    %cst_25 = arith.constant dense<0.000000e+00> : vector<256x256xf32>
    %71 = tpu.matmul %67, %69, %cst_25 {dimension_numbers = #tpu.dot_dimension_numbers<[0], [0], [1], [1], [0, 1, 1, 1], [], []>} : vector<8x256xbf16>, vector<8x256xbf16>, vector<256x256xf32> -> vector<256x256xf32>
    %cst_26 = arith.constant dense<0xFF800000> : vector<256xf32>
    %72 = vector.multi_reduction <maximumf>, %71, %cst_26 [1] : vector<256x256xf32> to vector<256xf32>
    %73 = vector.shape_cast %72 : vector<256xf32> to vector<256x1xf32>
    %74 = vector.broadcast %73 : vector<256x1xf32> to vector<256x256xf32>
    %75 = arith.subf %71, %74 : vector<256x256xf32>
    %76 = math.exp %75 : vector<256x256xf32>
    %cst_27 = arith.constant dense<0.000000e+00> : vector<256xf32>
    %77 = vector.multi_reduction <add>, %76, %cst_27 [1] : vector<256x256xf32> to vector<256xf32>
    %78 = vector.shape_cast %77 : vector<256xf32> to vector<256x1xf32>
    %79 = tpu.reciprocal %78 {approx = true} : vector<256x1xf32> -> vector<256x1xf32>
    %80 = vector.broadcast %79 : vector<256x1xf32> to vector<256x256xf32>
    %81 = arith.mulf %76, %80 : vector<256x256xf32>
    %82 = arith.truncf %70 : vector<8x256xf32> to vector<8x256xbf16>
    %83 = arith.truncf %81 : vector<256x256xf32> to vector<256x256xbf16>
    %cst_28 = arith.constant dense<0.000000e+00> : vector<8x256xf32>
    %84 = tpu.matmul %82, %83, %cst_28 {dimension_numbers = #tpu.dot_dimension_numbers<[1], [1], [0], [0], [0, 0, 1, 0], [], []>} : vector<8x256xbf16>, vector<256x256xbf16>, vector<8x256xf32> -> vector<8x256xf32>
    %cst_29 = arith.constant 0.000000e+00 : f32
    %85 = vector.broadcast %cst_29 : f32 to vector<8x256xf32>
    %86 = arith.maximumf %84, %85 : vector<8x256xf32>
    %87 = arith.truncf %86 : vector<8x256xf32> to vector<8x256xbf16>
    %cst_30 = arith.constant dense<0.000000e+00> : vector<16x256xf32>
    %88 = tpu.matmul %5, %87, %cst_30 {dimension_numbers = #tpu.dot_dimension_numbers<[1], [0], [0], [1], [0, 0, 1, 1], [], []>} : vector<16x8xbf16>, vector<8x256xbf16>, vector<16x256xf32> -> vector<16x256xf32>
    %cst_31 = arith.constant 0.000000e+00 : f32
    %89 = vector.broadcast %cst_31 : f32 to vector<8x256xf32>
    %90 = arith.maximumf %39, %89 : vector<8x256xf32>
    %91 = arith.truncf %90 : vector<8x256xf32> to vector<8x256xbf16>
    %cst_32 = arith.constant dense<0.000000e+00> : vector<16x256xf32>
    %92 = tpu.matmul %7, %91, %cst_32 {dimension_numbers = #tpu.dot_dimension_numbers<[1], [0], [0], [1], [0, 0, 1, 1], [], []>} : vector<16x8xbf16>, vector<8x256xbf16>, vector<16x256xf32> -> vector<16x256xf32>
    %93 = arith.addf %88, %92 : vector<16x256xf32>
    %cst_33 = arith.constant dense<0.000000e+00> : vector<16x64xf32>
    %94 = tpu.matmul %37, %20, %cst_33 {dimension_numbers = #tpu.dot_dimension_numbers<[1], [0], [0], [1], [0, 0, 1, 1], [], []>} : vector<16x256xbf16>, vector<256x64xbf16>, vector<16x64xf32> -> vector<16x64xf32>
    %95 = vector.extract_strided_slice %94 {offsets = [0, 0], sizes = [8, 64], strides = [1, 1]} : vector<16x64xf32> to vector<8x64xf32>
    %96 = vector.extract_strided_slice %94 {offsets = [8, 0], sizes = [8, 64], strides = [1, 1]} : vector<16x64xf32> to vector<8x64xf32>
    %97 = arith.truncf %95 : vector<8x64xf32> to vector<8x64xbf16>
    %cst_34 = arith.constant dense<0.000000e+00> : vector<24x64xf32>
    %98 = tpu.matmul %13, %97, %cst_34 {dimension_numbers = #tpu.dot_dimension_numbers<[1], [0], [0], [1], [0, 0, 1, 1], [], []>} : vector<24x8xbf16>, vector<8x64xbf16>, vector<24x64xf32> -> vector<24x64xf32>
    %99 = vector.shape_cast %95 : vector<8x64xf32> to vector<1x8x64xf32>
    %cst_35 = arith.constant dense<0.000000e+00> : vector<1xf32>
    %100 = vector.multi_reduction <add>, %99, %cst_35 [1, 2] : vector<1x8x64xf32> to vector<1xf32>
    %101 = vector.shape_cast %100 : vector<1xf32> to vector<1x1x1xf32>
    %102 = vector.extract %101[0, 0, 0] : f32 from vector<1x1x1xf32>
    %cst_36 = arith.constant 5.120000e+02 : f32
    %103 = arith.divf %102, %cst_36 : f32
    %104 = arith.mulf %95, %95 : vector<8x64xf32>
    %105 = vector.shape_cast %104 : vector<8x64xf32> to vector<1x8x64xf32>
    %cst_37 = arith.constant dense<0.000000e+00> : vector<1xf32>
    %106 = vector.multi_reduction <add>, %105, %cst_37 [1, 2] : vector<1x8x64xf32> to vector<1xf32>
    %107 = vector.shape_cast %106 : vector<1xf32> to vector<1x1x1xf32>
    %108 = vector.extract %107[0, 0, 0] : f32 from vector<1x1x1xf32>
    %cst_38 = arith.constant 5.120000e+02 : f32
    %109 = arith.divf %108, %cst_38 : f32
    %110 = arith.mulf %103, %103 : f32
    %111 = arith.subf %109, %110 : f32
    %cst_39 = arith.constant 0.000000e+00 : f32
    %112 = arith.maximumf %111, %cst_39 : f32
    %cst_40 = arith.constant 9.99999974E-6 : f32
    %113 = arith.addf %112, %cst_40 : f32
    %114 = math.rsqrt %113 : f32
    %115 = vector.broadcast %103 : f32 to vector<24x1xf32>
    %116 = arith.mulf %115, %19 : vector<24x1xf32>
    %117 = vector.broadcast %116 : vector<24x1xf32> to vector<24x64xf32>
    %118 = arith.subf %98, %117 : vector<24x64xf32>
    %119 = vector.broadcast %114 : f32 to vector<24x64xf32>
    %120 = arith.mulf %119, %118 : vector<24x64xf32>
    %121 = vector.broadcast %18 : vector<24x1xf32> to vector<24x64xf32>
    %122 = arith.addf %120, %121 : vector<24x64xf32>
    %123 = vector.extract_strided_slice %122 {offsets = [0, 0], sizes = [8, 64], strides = [1, 1]} : vector<24x64xf32> to vector<8x64xf32>
    %124 = arith.truncf %123 : vector<8x64xf32> to vector<8x64xbf16>
    %125 = vector.extract_strided_slice %122 {offsets = [8, 0], sizes = [8, 64], strides = [1, 1]} : vector<24x64xf32> to vector<8x64xf32>
    %126 = arith.truncf %125 : vector<8x64xf32> to vector<8x64xbf16>
    %127 = vector.extract_strided_slice %122 {offsets = [16, 0], sizes = [8, 64], strides = [1, 1]} : vector<24x64xf32> to vector<8x64xf32>
    %cst_41 = arith.constant dense<0.000000e+00> : vector<64x64xf32>
    %128 = tpu.matmul %124, %126, %cst_41 {dimension_numbers = #tpu.dot_dimension_numbers<[0], [0], [1], [1], [0, 1, 1, 1], [], []>} : vector<8x64xbf16>, vector<8x64xbf16>, vector<64x64xf32> -> vector<64x64xf32>
    %cst_42 = arith.constant dense<0xFF800000> : vector<64xf32>
    %129 = vector.multi_reduction <maximumf>, %128, %cst_42 [1] : vector<64x64xf32> to vector<64xf32>
    %130 = vector.shape_cast %129 : vector<64xf32> to vector<64x1xf32>
    %131 = vector.broadcast %130 : vector<64x1xf32> to vector<64x64xf32>
    %132 = arith.subf %128, %131 : vector<64x64xf32>
    %133 = math.exp %132 : vector<64x64xf32>
    %cst_43 = arith.constant dense<0.000000e+00> : vector<64xf32>
    %134 = vector.multi_reduction <add>, %133, %cst_43 [1] : vector<64x64xf32> to vector<64xf32>
    %135 = vector.shape_cast %134 : vector<64xf32> to vector<64x1xf32>
    %136 = tpu.reciprocal %135 {approx = true} : vector<64x1xf32> -> vector<64x1xf32>
    %137 = vector.broadcast %136 : vector<64x1xf32> to vector<64x64xf32>
    %138 = arith.mulf %133, %137 : vector<64x64xf32>
    %139 = arith.truncf %127 : vector<8x64xf32> to vector<8x64xbf16>
    %140 = arith.truncf %138 : vector<64x64xf32> to vector<64x64xbf16>
    %cst_44 = arith.constant dense<0.000000e+00> : vector<8x64xf32>
    %141 = tpu.matmul %139, %140, %cst_44 {dimension_numbers = #tpu.dot_dimension_numbers<[1], [1], [0], [0], [0, 0, 1, 0], [], []>} : vector<8x64xbf16>, vector<64x64xbf16>, vector<8x64xf32> -> vector<8x64xf32>
    %cst_45 = arith.constant 0.000000e+00 : f32
    %142 = vector.broadcast %cst_45 : f32 to vector<8x64xf32>
    %143 = arith.maximumf %141, %142 : vector<8x64xf32>
    %144 = arith.truncf %143 : vector<8x64xf32> to vector<8x64xbf16>
    %cst_46 = arith.constant dense<0.000000e+00> : vector<16x64xf32>
    %145 = tpu.matmul %15, %144, %cst_46 {dimension_numbers = #tpu.dot_dimension_numbers<[1], [0], [0], [1], [0, 0, 1, 1], [], []>} : vector<16x8xbf16>, vector<8x64xbf16>, vector<16x64xf32> -> vector<16x64xf32>
    %cst_47 = arith.constant 0.000000e+00 : f32
    %146 = vector.broadcast %cst_47 : f32 to vector<8x64xf32>
    %147 = arith.maximumf %96, %146 : vector<8x64xf32>
    %148 = arith.truncf %147 : vector<8x64xf32> to vector<8x64xbf16>
    %cst_48 = arith.constant dense<0.000000e+00> : vector<16x64xf32>
    %149 = tpu.matmul %17, %148, %cst_48 {dimension_numbers = #tpu.dot_dimension_numbers<[1], [0], [0], [1], [0, 0, 1, 1], [], []>} : vector<16x8xbf16>, vector<8x64xbf16>, vector<16x64xf32> -> vector<16x64xf32>
    %150 = arith.addf %145, %149 : vector<16x64xf32>
    %151 = arith.truncf %150 : vector<16x64xf32> to vector<16x64xbf16>
    %cst_49 = arith.constant dense<0.000000e+00> : vector<16x256xf32>
    %152 = tpu.matmul %151, %21, %cst_49 {dimension_numbers = #tpu.dot_dimension_numbers<[1], [0], [0], [1], [0, 0, 1, 1], [], []>} : vector<16x64xbf16>, vector<64x256xbf16>, vector<16x256xf32> -> vector<16x256xf32>
    %153 = arith.addf %93, %152 : vector<16x256xf32>
    %cst_50 = arith.constant dense<0.000000e+00> : vector<16x16xf32>
    %154 = tpu.matmul %37, %32, %cst_50 {dimension_numbers = #tpu.dot_dimension_numbers<[1], [0], [0], [1], [0, 0, 1, 1], [], []>} : vector<16x256xbf16>, vector<256x16xbf16>, vector<16x16xf32> -> vector<16x16xf32>
    %155 = vector.extract_strided_slice %154 {offsets = [0, 0], sizes = [8, 16], strides = [1, 1]} : vector<16x16xf32> to vector<8x16xf32>
    %156 = vector.extract_strided_slice %154 {offsets = [8, 0], sizes = [8, 16], strides = [1, 1]} : vector<16x16xf32> to vector<8x16xf32>
    %157 = arith.truncf %155 : vector<8x16xf32> to vector<8x16xbf16>
    %cst_51 = arith.constant dense<0.000000e+00> : vector<24x16xf32>
    %158 = tpu.matmul %25, %157, %cst_51 {dimension_numbers = #tpu.dot_dimension_numbers<[1], [0], [0], [1], [0, 0, 1, 1], [], []>} : vector<24x8xbf16>, vector<8x16xbf16>, vector<24x16xf32> -> vector<24x16xf32>
    %159 = vector.shape_cast %155 : vector<8x16xf32> to vector<1x8x16xf32>
    %cst_52 = arith.constant dense<0.000000e+00> : vector<1xf32>
    %160 = vector.multi_reduction <add>, %159, %cst_52 [1, 2] : vector<1x8x16xf32> to vector<1xf32>
    %161 = vector.shape_cast %160 : vector<1xf32> to vector<1x1x1xf32>
    %162 = vector.extract %161[0, 0, 0] : f32 from vector<1x1x1xf32>
    %cst_53 = arith.constant 1.280000e+02 : f32
    %163 = arith.divf %162, %cst_53 : f32
    %164 = arith.mulf %155, %155 : vector<8x16xf32>
    %165 = vector.shape_cast %164 : vector<8x16xf32> to vector<1x8x16xf32>
    %cst_54 = arith.constant dense<0.000000e+00> : vector<1xf32>
    %166 = vector.multi_reduction <add>, %165, %cst_54 [1, 2] : vector<1x8x16xf32> to vector<1xf32>
    %167 = vector.shape_cast %166 : vector<1xf32> to vector<1x1x1xf32>
    %168 = vector.extract %167[0, 0, 0] : f32 from vector<1x1x1xf32>
    %cst_55 = arith.constant 1.280000e+02 : f32
    %169 = arith.divf %168, %cst_55 : f32
    %170 = arith.mulf %163, %163 : f32
    %171 = arith.subf %169, %170 : f32
    %cst_56 = arith.constant 0.000000e+00 : f32
    %172 = arith.maximumf %171, %cst_56 : f32
    %cst_57 = arith.constant 9.99999974E-6 : f32
    %173 = arith.addf %172, %cst_57 : f32
    %174 = math.rsqrt %173 : f32
    %175 = vector.broadcast %163 : f32 to vector<24x1xf32>
    %176 = arith.mulf %175, %31 : vector<24x1xf32>
    %177 = vector.broadcast %176 : vector<24x1xf32> to vector<24x16xf32>
    %178 = arith.subf %158, %177 : vector<24x16xf32>
    %179 = vector.broadcast %174 : f32 to vector<24x16xf32>
    %180 = arith.mulf %179, %178 : vector<24x16xf32>
    %181 = vector.broadcast %30 : vector<24x1xf32> to vector<24x16xf32>
    %182 = arith.addf %180, %181 : vector<24x16xf32>
    %183 = vector.extract_strided_slice %182 {offsets = [0, 0], sizes = [8, 16], strides = [1, 1]} : vector<24x16xf32> to vector<8x16xf32>
    %184 = arith.truncf %183 : vector<8x16xf32> to vector<8x16xbf16>
    %185 = vector.extract_strided_slice %182 {offsets = [8, 0], sizes = [8, 16], strides = [1, 1]} : vector<24x16xf32> to vector<8x16xf32>
    %186 = arith.truncf %185 : vector<8x16xf32> to vector<8x16xbf16>
    %187 = vector.extract_strided_slice %182 {offsets = [16, 0], sizes = [8, 16], strides = [1, 1]} : vector<24x16xf32> to vector<8x16xf32>
    %cst_58 = arith.constant dense<0.000000e+00> : vector<16x16xf32>
    %188 = tpu.matmul %184, %186, %cst_58 {dimension_numbers = #tpu.dot_dimension_numbers<[0], [0], [1], [1], [0, 1, 1, 1], [], []>} : vector<8x16xbf16>, vector<8x16xbf16>, vector<16x16xf32> -> vector<16x16xf32>
    %cst_59 = arith.constant dense<0xFF800000> : vector<16xf32>
    %189 = vector.multi_reduction <maximumf>, %188, %cst_59 [1] : vector<16x16xf32> to vector<16xf32>
    %190 = vector.shape_cast %189 : vector<16xf32> to vector<16x1xf32>
    %191 = vector.broadcast %190 : vector<16x1xf32> to vector<16x16xf32>
    %192 = arith.subf %188, %191 : vector<16x16xf32>
    %193 = math.exp %192 : vector<16x16xf32>
    %cst_60 = arith.constant dense<0.000000e+00> : vector<16xf32>
    %194 = vector.multi_reduction <add>, %193, %cst_60 [1] : vector<16x16xf32> to vector<16xf32>
    %195 = vector.shape_cast %194 : vector<16xf32> to vector<16x1xf32>
    %196 = tpu.reciprocal %195 {approx = true} : vector<16x1xf32> -> vector<16x1xf32>
    %197 = vector.broadcast %196 : vector<16x1xf32> to vector<16x16xf32>
    %198 = arith.mulf %193, %197 : vector<16x16xf32>
    %199 = arith.truncf %187 : vector<8x16xf32> to vector<8x16xbf16>
    %200 = arith.truncf %198 : vector<16x16xf32> to vector<16x16xbf16>
    %cst_61 = arith.constant dense<0.000000e+00> : vector<8x16xf32>
    %201 = tpu.matmul %199, %200, %cst_61 {dimension_numbers = #tpu.dot_dimension_numbers<[1], [1], [0], [0], [0, 0, 1, 0], [], []>} : vector<8x16xbf16>, vector<16x16xbf16>, vector<8x16xf32> -> vector<8x16xf32>
    %cst_62 = arith.constant 0.000000e+00 : f32
    %202 = vector.broadcast %cst_62 : f32 to vector<8x16xf32>
    %203 = arith.maximumf %201, %202 : vector<8x16xf32>
    %204 = arith.truncf %203 : vector<8x16xf32> to vector<8x16xbf16>
    %cst_63 = arith.constant dense<0.000000e+00> : vector<16x16xf32>
    %205 = tpu.matmul %27, %204, %cst_63 {dimension_numbers = #tpu.dot_dimension_numbers<[1], [0], [0], [1], [0, 0, 1, 1], [], []>} : vector<16x8xbf16>, vector<8x16xbf16>, vector<16x16xf32> -> vector<16x16xf32>
    %cst_64 = arith.constant 0.000000e+00 : f32
    %206 = vector.broadcast %cst_64 : f32 to vector<8x16xf32>
    %207 = arith.maximumf %156, %206 : vector<8x16xf32>
    %208 = arith.truncf %207 : vector<8x16xf32> to vector<8x16xbf16>
    %cst_65 = arith.constant dense<0.000000e+00> : vector<16x16xf32>
    %209 = tpu.matmul %29, %208, %cst_65 {dimension_numbers = #tpu.dot_dimension_numbers<[1], [0], [0], [1], [0, 0, 1, 1], [], []>} : vector<16x8xbf16>, vector<8x16xbf16>, vector<16x16xf32> -> vector<16x16xf32>
    %210 = arith.addf %205, %209 : vector<16x16xf32>
    %211 = arith.truncf %210 : vector<16x16xf32> to vector<16x16xbf16>
    %cst_66 = arith.constant dense<0.000000e+00> : vector<16x256xf32>
    %212 = tpu.matmul %211, %33, %cst_66 {dimension_numbers = #tpu.dot_dimension_numbers<[1], [0], [0], [1], [0, 0, 1, 1], [], []>} : vector<16x16xbf16>, vector<16x256xbf16>, vector<16x256xf32> -> vector<16x256xf32>
    %213 = arith.addf %153, %212 : vector<16x256xf32>
    %214 = vector.broadcast %34 : vector<16x1xf32> to vector<16x256xf32>
    %215 = arith.addf %213, %214 : vector<16x256xf32>
    %c0_67 = arith.constant 0 : index
    %c0_68 = arith.constant 0 : index
    %c0_69 = arith.constant 0 : index
    %216 = vector.load %arg8[%c0_67, %c0_68, %c0_69] : memref<2x16x256xf32, #tpu.memory_space<vmem>>, vector<1x16x256xf32>
    %217 = vector.shape_cast %216 : vector<1x16x256xf32> to vector<16x256xf32>
    %218 = vector.shape_cast %215 : vector<16x256xf32> to vector<1x16x256xf32>
    tpu.vector_store %arg8[%c0_67, %c0_68, %c0_69], %218 {strides = array<i32>} : memref<2x16x256xf32, #tpu.memory_space<vmem>>, vector<1x16x256xf32>,
    %c1_70 = arith.constant 1 : index
    %c0_71 = arith.constant 0 : index
    %c0_72 = arith.constant 0 : index
    %219 = vector.load %arg1[%c1_70, %c0_71, %c0_72] : memref<2x16x256xf32, #tpu.memory_space<vmem>>, vector<1x16x256xf32>
    %220 = vector.shape_cast %219 : vector<1x16x256xf32> to vector<16x256xf32>
    %221 = arith.truncf %220 : vector<16x256xf32> to vector<16x256xbf16>
    %222 = vector.extract_strided_slice %220 {offsets = [0, 0], sizes = [8, 256], strides = [1, 1]} : vector<16x256xf32> to vector<8x256xf32>
    %223 = vector.extract_strided_slice %220 {offsets = [8, 0], sizes = [8, 256], strides = [1, 1]} : vector<16x256xf32> to vector<8x256xf32>
    %224 = arith.truncf %222 : vector<8x256xf32> to vector<8x256xbf16>
    %cst_73 = arith.constant dense<0.000000e+00> : vector<24x256xf32>
    %225 = tpu.matmul %3, %224, %cst_73 {dimension_numbers = #tpu.dot_dimension_numbers<[1], [0], [0], [1], [0, 0, 1, 1], [], []>} : vector<24x8xbf16>, vector<8x256xbf16>, vector<24x256xf32> -> vector<24x256xf32>
    %226 = vector.shape_cast %222 : vector<8x256xf32> to vector<1x8x256xf32>
    %cst_74 = arith.constant dense<0.000000e+00> : vector<1xf32>
    %227 = vector.multi_reduction <add>, %226, %cst_74 [1, 2] : vector<1x8x256xf32> to vector<1xf32>
    %228 = vector.shape_cast %227 : vector<1xf32> to vector<1x1x1xf32>
    %229 = vector.extract %228[0, 0, 0] : f32 from vector<1x1x1xf32>
    %cst_75 = arith.constant 2.048000e+03 : f32
    %230 = arith.divf %229, %cst_75 : f32
    %231 = arith.mulf %222, %222 : vector<8x256xf32>
    %232 = vector.shape_cast %231 : vector<8x256xf32> to vector<1x8x256xf32>
    %cst_76 = arith.constant dense<0.000000e+00> : vector<1xf32>
    %233 = vector.multi_reduction <add>, %232, %cst_76 [1, 2] : vector<1x8x256xf32> to vector<1xf32>
    %234 = vector.shape_cast %233 : vector<1xf32> to vector<1x1x1xf32>
    %235 = vector.extract %234[0, 0, 0] : f32 from vector<1x1x1xf32>
    %cst_77 = arith.constant 2.048000e+03 : f32
    %236 = arith.divf %235, %cst_77 : f32
    %237 = arith.mulf %230, %230 : f32
    %238 = arith.subf %236, %237 : f32
    %cst_78 = arith.constant 0.000000e+00 : f32
    %239 = arith.maximumf %238, %cst_78 : f32
    %cst_79 = arith.constant 9.99999974E-6 : f32
    %240 = arith.addf %239, %cst_79 : f32
    %241 = math.rsqrt %240 : f32
    %242 = vector.broadcast %230 : f32 to vector<24x1xf32>
    %243 = arith.mulf %242, %9 : vector<24x1xf32>
    %244 = vector.broadcast %243 : vector<24x1xf32> to vector<24x256xf32>
    %245 = arith.subf %225, %244 : vector<24x256xf32>
    %246 = vector.broadcast %241 : f32 to vector<24x256xf32>
    %247 = arith.mulf %246, %245 : vector<24x256xf32>
    %248 = vector.broadcast %8 : vector<24x1xf32> to vector<24x256xf32>
    %249 = arith.addf %247, %248 : vector<24x256xf32>
    %250 = vector.extract_strided_slice %249 {offsets = [0, 0], sizes = [8, 256], strides = [1, 1]} : vector<24x256xf32> to vector<8x256xf32>
    %251 = arith.truncf %250 : vector<8x256xf32> to vector<8x256xbf16>
    %252 = vector.extract_strided_slice %249 {offsets = [8, 0], sizes = [8, 256], strides = [1, 1]} : vector<24x256xf32> to vector<8x256xf32>
    %253 = arith.truncf %252 : vector<8x256xf32> to vector<8x256xbf16>
    %254 = vector.extract_strided_slice %249 {offsets = [16, 0], sizes = [8, 256], strides = [1, 1]} : vector<24x256xf32> to vector<8x256xf32>
    %cst_80 = arith.constant dense<0.000000e+00> : vector<256x256xf32>
    %255 = tpu.matmul %251, %253, %cst_80 {dimension_numbers = #tpu.dot_dimension_numbers<[0], [0], [1], [1], [0, 1, 1, 1], [], []>} : vector<8x256xbf16>, vector<8x256xbf16>, vector<256x256xf32> -> vector<256x256xf32>
    %cst_81 = arith.constant dense<0xFF800000> : vector<256xf32>
    %256 = vector.multi_reduction <maximumf>, %255, %cst_81 [1] : vector<256x256xf32> to vector<256xf32>
    %257 = vector.shape_cast %256 : vector<256xf32> to vector<256x1xf32>
    %258 = vector.broadcast %257 : vector<256x1xf32> to vector<256x256xf32>
    %259 = arith.subf %255, %258 : vector<256x256xf32>
    %260 = math.exp %259 : vector<256x256xf32>
    %cst_82 = arith.constant dense<0.000000e+00> : vector<256xf32>
    %261 = vector.multi_reduction <add>, %260, %cst_82 [1] : vector<256x256xf32> to vector<256xf32>
    %262 = vector.shape_cast %261 : vector<256xf32> to vector<256x1xf32>
    %263 = tpu.reciprocal %262 {approx = true} : vector<256x1xf32> -> vector<256x1xf32>
    %264 = vector.broadcast %263 : vector<256x1xf32> to vector<256x256xf32>
    %265 = arith.mulf %260, %264 : vector<256x256xf32>
    %266 = arith.truncf %254 : vector<8x256xf32> to vector<8x256xbf16>
    %267 = arith.truncf %265 : vector<256x256xf32> to vector<256x256xbf16>
    %cst_83 = arith.constant dense<0.000000e+00> : vector<8x256xf32>
    %268 = tpu.matmul %266, %267, %cst_83 {dimension_numbers = #tpu.dot_dimension_numbers<[1], [1], [0], [0], [0, 0, 1, 0], [], []>} : vector<8x256xbf16>, vector<256x256xbf16>, vector<8x256xf32> -> vector<8x256xf32>
    %cst_84 = arith.constant 0.000000e+00 : f32
    %269 = vector.broadcast %cst_84 : f32 to vector<8x256xf32>
    %270 = arith.maximumf %268, %269 : vector<8x256xf32>
    %271 = arith.truncf %270 : vector<8x256xf32> to vector<8x256xbf16>
    %cst_85 = arith.constant dense<0.000000e+00> : vector<16x256xf32>
    %272 = tpu.matmul %5, %271, %cst_85 {dimension_numbers = #tpu.dot_dimension_numbers<[1], [0], [0], [1], [0, 0, 1, 1], [], []>} : vector<16x8xbf16>, vector<8x256xbf16>, vector<16x256xf32> -> vector<16x256xf32>
    %cst_86 = arith.constant 0.000000e+00 : f32
    %273 = vector.broadcast %cst_86 : f32 to vector<8x256xf32>
    %274 = arith.maximumf %223, %273 : vector<8x256xf32>
    %275 = arith.truncf %274 : vector<8x256xf32> to vector<8x256xbf16>
    %cst_87 = arith.constant dense<0.000000e+00> : vector<16x256xf32>
    %276 = tpu.matmul %7, %275, %cst_87 {dimension_numbers = #tpu.dot_dimension_numbers<[1], [0], [0], [1], [0, 0, 1, 1], [], []>} : vector<16x8xbf16>, vector<8x256xbf16>, vector<16x256xf32> -> vector<16x256xf32>
    %277 = arith.addf %272, %276 : vector<16x256xf32>
    %cst_88 = arith.constant dense<0.000000e+00> : vector<16x64xf32>
    %278 = tpu.matmul %221, %20, %cst_88 {dimension_numbers = #tpu.dot_dimension_numbers<[1], [0], [0], [1], [0, 0, 1, 1], [], []>} : vector<16x256xbf16>, vector<256x64xbf16>, vector<16x64xf32> -> vector<16x64xf32>
    %279 = vector.extract_strided_slice %278 {offsets = [0, 0], sizes = [8, 64], strides = [1, 1]} : vector<16x64xf32> to vector<8x64xf32>
    %280 = vector.extract_strided_slice %278 {offsets = [8, 0], sizes = [8, 64], strides = [1, 1]} : vector<16x64xf32> to vector<8x64xf32>
    %281 = arith.truncf %279 : vector<8x64xf32> to vector<8x64xbf16>
    %cst_89 = arith.constant dense<0.000000e+00> : vector<24x64xf32>
    %282 = tpu.matmul %13, %281, %cst_89 {dimension_numbers = #tpu.dot_dimension_numbers<[1], [0], [0], [1], [0, 0, 1, 1], [], []>} : vector<24x8xbf16>, vector<8x64xbf16>, vector<24x64xf32> -> vector<24x64xf32>
    %283 = vector.shape_cast %279 : vector<8x64xf32> to vector<1x8x64xf32>
    %cst_90 = arith.constant dense<0.000000e+00> : vector<1xf32>
    %284 = vector.multi_reduction <add>, %283, %cst_90 [1, 2] : vector<1x8x64xf32> to vector<1xf32>
    %285 = vector.shape_cast %284 : vector<1xf32> to vector<1x1x1xf32>
    %286 = vector.extract %285[0, 0, 0] : f32 from vector<1x1x1xf32>
    %cst_91 = arith.constant 5.120000e+02 : f32
    %287 = arith.divf %286, %cst_91 : f32
    %288 = arith.mulf %279, %279 : vector<8x64xf32>
    %289 = vector.shape_cast %288 : vector<8x64xf32> to vector<1x8x64xf32>
    %cst_92 = arith.constant dense<0.000000e+00> : vector<1xf32>
    %290 = vector.multi_reduction <add>, %289, %cst_92 [1, 2] : vector<1x8x64xf32> to vector<1xf32>
    %291 = vector.shape_cast %290 : vector<1xf32> to vector<1x1x1xf32>
    %292 = vector.extract %291[0, 0, 0] : f32 from vector<1x1x1xf32>
    %cst_93 = arith.constant 5.120000e+02 : f32
    %293 = arith.divf %292, %cst_93 : f32
    %294 = arith.mulf %287, %287 : f32
    %295 = arith.subf %293, %294 : f32
    %cst_94 = arith.constant 0.000000e+00 : f32
    %296 = arith.maximumf %295, %cst_94 : f32
    %cst_95 = arith.constant 9.99999974E-6 : f32
    %297 = arith.addf %296, %cst_95 : f32
    %298 = math.rsqrt %297 : f32
    %299 = vector.broadcast %287 : f32 to vector<24x1xf32>
    %300 = arith.mulf %299, %19 : vector<24x1xf32>
    %301 = vector.broadcast %300 : vector<24x1xf32> to vector<24x64xf32>
    %302 = arith.subf %282, %301 : vector<24x64xf32>
    %303 = vector.broadcast %298 : f32 to vector<24x64xf32>
    %304 = arith.mulf %303, %302 : vector<24x64xf32>
    %305 = vector.broadcast %18 : vector<24x1xf32> to vector<24x64xf32>
    %306 = arith.addf %304, %305 : vector<24x64xf32>
    %307 = vector.extract_strided_slice %306 {offsets = [0, 0], sizes = [8, 64], strides = [1, 1]} : vector<24x64xf32> to vector<8x64xf32>
    %308 = arith.truncf %307 : vector<8x64xf32> to vector<8x64xbf16>
    %309 = vector.extract_strided_slice %306 {offsets = [8, 0], sizes = [8, 64], strides = [1, 1]} : vector<24x64xf32> to vector<8x64xf32>
    %310 = arith.truncf %309 : vector<8x64xf32> to vector<8x64xbf16>
    %311 = vector.extract_strided_slice %306 {offsets = [16, 0], sizes = [8, 64], strides = [1, 1]} : vector<24x64xf32> to vector<8x64xf32>
    %cst_96 = arith.constant dense<0.000000e+00> : vector<64x64xf32>
    %312 = tpu.matmul %308, %310, %cst_96 {dimension_numbers = #tpu.dot_dimension_numbers<[0], [0], [1], [1], [0, 1, 1, 1], [], []>} : vector<8x64xbf16>, vector<8x64xbf16>, vector<64x64xf32> -> vector<64x64xf32>
    %cst_97 = arith.constant dense<0xFF800000> : vector<64xf32>
    %313 = vector.multi_reduction <maximumf>, %312, %cst_97 [1] : vector<64x64xf32> to vector<64xf32>
    %314 = vector.shape_cast %313 : vector<64xf32> to vector<64x1xf32>
    %315 = vector.broadcast %314 : vector<64x1xf32> to vector<64x64xf32>
    %316 = arith.subf %312, %315 : vector<64x64xf32>
    %317 = math.exp %316 : vector<64x64xf32>
    %cst_98 = arith.constant dense<0.000000e+00> : vector<64xf32>
    %318 = vector.multi_reduction <add>, %317, %cst_98 [1] : vector<64x64xf32> to vector<64xf32>
    %319 = vector.shape_cast %318 : vector<64xf32> to vector<64x1xf32>
    %320 = tpu.reciprocal %319 {approx = true} : vector<64x1xf32> -> vector<64x1xf32>
    %321 = vector.broadcast %320 : vector<64x1xf32> to vector<64x64xf32>
    %322 = arith.mulf %317, %321 : vector<64x64xf32>
    %323 = arith.truncf %311 : vector<8x64xf32> to vector<8x64xbf16>
    %324 = arith.truncf %322 : vector<64x64xf32> to vector<64x64xbf16>
    %cst_99 = arith.constant dense<0.000000e+00> : vector<8x64xf32>
    %325 = tpu.matmul %323, %324, %cst_99 {dimension_numbers = #tpu.dot_dimension_numbers<[1], [1], [0], [0], [0, 0, 1, 0], [], []>} : vector<8x64xbf16>, vector<64x64xbf16>, vector<8x64xf32> -> vector<8x64xf32>
    %cst_100 = arith.constant 0.000000e+00 : f32
    %326 = vector.broadcast %cst_100 : f32 to vector<8x64xf32>
    %327 = arith.maximumf %325, %326 : vector<8x64xf32>
    %328 = arith.truncf %327 : vector<8x64xf32> to vector<8x64xbf16>
    %cst_101 = arith.constant dense<0.000000e+00> : vector<16x64xf32>
    %329 = tpu.matmul %15, %328, %cst_101 {dimension_numbers = #tpu.dot_dimension_numbers<[1], [0], [0], [1], [0, 0, 1, 1], [], []>} : vector<16x8xbf16>, vector<8x64xbf16>, vector<16x64xf32> -> vector<16x64xf32>
    %cst_102 = arith.constant 0.000000e+00 : f32
    %330 = vector.broadcast %cst_102 : f32 to vector<8x64xf32>
    %331 = arith.maximumf %280, %330 : vector<8x64xf32>
    %332 = arith.truncf %331 : vector<8x64xf32> to vector<8x64xbf16>
    %cst_103 = arith.constant dense<0.000000e+00> : vector<16x64xf32>
    %333 = tpu.matmul %17, %332, %cst_103 {dimension_numbers = #tpu.dot_dimension_numbers<[1], [0], [0], [1], [0, 0, 1, 1], [], []>} : vector<16x8xbf16>, vector<8x64xbf16>, vector<16x64xf32> -> vector<16x64xf32>
    %334 = arith.addf %329, %333 : vector<16x64xf32>
    %335 = arith.truncf %334 : vector<16x64xf32> to vector<16x64xbf16>
    %cst_104 = arith.constant dense<0.000000e+00> : vector<16x256xf32>
    %336 = tpu.matmul %335, %21, %cst_104 {dimension_numbers = #tpu.dot_dimension_numbers<[1], [0], [0], [1], [0, 0, 1, 1], [], []>} : vector<16x64xbf16>, vector<64x256xbf16>, vector<16x256xf32> -> vector<16x256xf32>
    %337 = arith.addf %277, %336 : vector<16x256xf32>
    %cst_105 = arith.constant dense<0.000000e+00> : vector<16x16xf32>
    %338 = tpu.matmul %221, %32, %cst_105 {dimension_numbers = #tpu.dot_dimension_numbers<[1], [0], [0], [1], [0, 0, 1, 1], [], []>} : vector<16x256xbf16>, vector<256x16xbf16>, vector<16x16xf32> -> vector<16x16xf32>
    %339 = vector.extract_strided_slice %338 {offsets = [0, 0], sizes = [8, 16], strides = [1, 1]} : vector<16x16xf32> to vector<8x16xf32>
    %340 = vector.extract_strided_slice %338 {offsets = [8, 0], sizes = [8, 16], strides = [1, 1]} : vector<16x16xf32> to vector<8x16xf32>
    %341 = arith.truncf %339 : vector<8x16xf32> to vector<8x16xbf16>
    %cst_106 = arith.constant dense<0.000000e+00> : vector<24x16xf32>
    %342 = tpu.matmul %25, %341, %cst_106 {dimension_numbers = #tpu.dot_dimension_numbers<[1], [0], [0], [1], [0, 0, 1, 1], [], []>} : vector<24x8xbf16>, vector<8x16xbf16>, vector<24x16xf32> -> vector<24x16xf32>
    %343 = vector.shape_cast %339 : vector<8x16xf32> to vector<1x8x16xf32>
    %cst_107 = arith.constant dense<0.000000e+00> : vector<1xf32>
    %344 = vector.multi_reduction <add>, %343, %cst_107 [1, 2] : vector<1x8x16xf32> to vector<1xf32>
    %345 = vector.shape_cast %344 : vector<1xf32> to vector<1x1x1xf32>
    %346 = vector.extract %345[0, 0, 0] : f32 from vector<1x1x1xf32>
    %cst_108 = arith.constant 1.280000e+02 : f32
    %347 = arith.divf %346, %cst_108 : f32
    %348 = arith.mulf %339, %339 : vector<8x16xf32>
    %349 = vector.shape_cast %348 : vector<8x16xf32> to vector<1x8x16xf32>
    %cst_109 = arith.constant dense<0.000000e+00> : vector<1xf32>
    %350 = vector.multi_reduction <add>, %349, %cst_109 [1, 2] : vector<1x8x16xf32> to vector<1xf32>
    %351 = vector.shape_cast %350 : vector<1xf32> to vector<1x1x1xf32>
    %352 = vector.extract %351[0, 0, 0] : f32 from vector<1x1x1xf32>
    %cst_110 = arith.constant 1.280000e+02 : f32
    %353 = arith.divf %352, %cst_110 : f32
    %354 = arith.mulf %347, %347 : f32
    %355 = arith.subf %353, %354 : f32
    %cst_111 = arith.constant 0.000000e+00 : f32
    %356 = arith.maximumf %355, %cst_111 : f32
    %cst_112 = arith.constant 9.99999974E-6 : f32
    %357 = arith.addf %356, %cst_112 : f32
    %358 = math.rsqrt %357 : f32
    %359 = vector.broadcast %347 : f32 to vector<24x1xf32>
    %360 = arith.mulf %359, %31 : vector<24x1xf32>
    %361 = vector.broadcast %360 : vector<24x1xf32> to vector<24x16xf32>
    %362 = arith.subf %342, %361 : vector<24x16xf32>
    %363 = vector.broadcast %358 : f32 to vector<24x16xf32>
    %364 = arith.mulf %363, %362 : vector<24x16xf32>
    %365 = vector.broadcast %30 : vector<24x1xf32> to vector<24x16xf32>
    %366 = arith.addf %364, %365 : vector<24x16xf32>
    %367 = vector.extract_strided_slice %366 {offsets = [0, 0], sizes = [8, 16], strides = [1, 1]} : vector<24x16xf32> to vector<8x16xf32>
    %368 = arith.truncf %367 : vector<8x16xf32> to vector<8x16xbf16>
    %369 = vector.extract_strided_slice %366 {offsets = [8, 0], sizes = [8, 16], strides = [1, 1]} : vector<24x16xf32> to vector<8x16xf32>
    %370 = arith.truncf %369 : vector<8x16xf32> to vector<8x16xbf16>
    %371 = vector.extract_strided_slice %366 {offsets = [16, 0], sizes = [8, 16], strides = [1, 1]} : vector<24x16xf32> to vector<8x16xf32>
    %cst_113 = arith.constant dense<0.000000e+00> : vector<16x16xf32>
    %372 = tpu.matmul %368, %370, %cst_113 {dimension_numbers = #tpu.dot_dimension_numbers<[0], [0], [1], [1], [0, 1, 1, 1], [], []>} : vector<8x16xbf16>, vector<8x16xbf16>, vector<16x16xf32> -> vector<16x16xf32>
    %cst_114 = arith.constant dense<0xFF800000> : vector<16xf32>
    %373 = vector.multi_reduction <maximumf>, %372, %cst_114 [1] : vector<16x16xf32> to vector<16xf32>
    %374 = vector.shape_cast %373 : vector<16xf32> to vector<16x1xf32>
    %375 = vector.broadcast %374 : vector<16x1xf32> to vector<16x16xf32>
    %376 = arith.subf %372, %375 : vector<16x16xf32>
    %377 = math.exp %376 : vector<16x16xf32>
    %cst_115 = arith.constant dense<0.000000e+00> : vector<16xf32>
    %378 = vector.multi_reduction <add>, %377, %cst_115 [1] : vector<16x16xf32> to vector<16xf32>
    %379 = vector.shape_cast %378 : vector<16xf32> to vector<16x1xf32>
    %380 = tpu.reciprocal %379 {approx = true} : vector<16x1xf32> -> vector<16x1xf32>
    %381 = vector.broadcast %380 : vector<16x1xf32> to vector<16x16xf32>
    %382 = arith.mulf %377, %381 : vector<16x16xf32>
    %383 = arith.truncf %371 : vector<8x16xf32> to vector<8x16xbf16>
    %384 = arith.truncf %382 : vector<16x16xf32> to vector<16x16xbf16>
    %cst_116 = arith.constant dense<0.000000e+00> : vector<8x16xf32>
    %385 = tpu.matmul %383, %384, %cst_116 {dimension_numbers = #tpu.dot_dimension_numbers<[1], [1], [0], [0], [0, 0, 1, 0], [], []>} : vector<8x16xbf16>, vector<16x16xbf16>, vector<8x16xf32> -> vector<8x16xf32>
    %cst_117 = arith.constant 0.000000e+00 : f32
    %386 = vector.broadcast %cst_117 : f32 to vector<8x16xf32>
    %387 = arith.maximumf %385, %386 : vector<8x16xf32>
    %388 = arith.truncf %387 : vector<8x16xf32> to vector<8x16xbf16>
    %cst_118 = arith.constant dense<0.000000e+00> : vector<16x16xf32>
    %389 = tpu.matmul %27, %388, %cst_118 {dimension_numbers = #tpu.dot_dimension_numbers<[1], [0], [0], [1], [0, 0, 1, 1], [], []>} : vector<16x8xbf16>, vector<8x16xbf16>, vector<16x16xf32> -> vector<16x16xf32>
    %cst_119 = arith.constant 0.000000e+00 : f32
    %390 = vector.broadcast %cst_119 : f32 to vector<8x16xf32>
    %391 = arith.maximumf %340, %390 : vector<8x16xf32>
    %392 = arith.truncf %391 : vector<8x16xf32> to vector<8x16xbf16>
    %cst_120 = arith.constant dense<0.000000e+00> : vector<16x16xf32>
    %393 = tpu.matmul %29, %392, %cst_120 {dimension_numbers = #tpu.dot_dimension_numbers<[1], [0], [0], [1], [0, 0, 1, 1], [], []>} : vector<16x8xbf16>, vector<8x16xbf16>, vector<16x16xf32> -> vector<16x16xf32>
    %394 = arith.addf %389, %393 : vector<16x16xf32>
    %395 = arith.truncf %394 : vector<16x16xf32> to vector<16x16xbf16>
    %cst_121 = arith.constant dense<0.000000e+00> : vector<16x256xf32>
    %396 = tpu.matmul %395, %33, %cst_121 {dimension_numbers = #tpu.dot_dimension_numbers<[1], [0], [0], [1], [0, 0, 1, 1], [], []>} : vector<16x16xbf16>, vector<16x256xbf16>, vector<16x256xf32> -> vector<16x256xf32>
    %397 = arith.addf %337, %396 : vector<16x256xf32>
    %398 = vector.broadcast %34 : vector<16x1xf32> to vector<16x256xf32>
    %399 = arith.addf %397, %398 : vector<16x256xf32>
    %c1_122 = arith.constant 1 : index
    %c0_123 = arith.constant 0 : index
    %c0_124 = arith.constant 0 : index
    %400 = vector.load %arg8[%c1_122, %c0_123, %c0_124] : memref<2x16x256xf32, #tpu.memory_space<vmem>>, vector<1x16x256xf32>
    %401 = vector.shape_cast %400 : vector<1x16x256xf32> to vector<16x256xf32>
    %402 = vector.shape_cast %399 : vector<16x256xf32> to vector<1x16x256xf32>
    tpu.vector_store %arg8[%c1_122, %c0_123, %c0_124], %402 {strides = array<i32>} : memref<2x16x256xf32, #tpu.memory_space<vmem>>, vector<1x16x256xf32>,
    return
  }
  func.func @transform_0(%arg0: i32) -> (i32, i32, i32) {
    %c0_i32 = arith.constant 0 : i32
    %c0_i32_0 = arith.constant 0 : i32
    %c0_i32_1 = arith.constant 0 : i32
    return %arg0, %c0_i32, %c0_i32_0 : i32, i32, i32
  }
  func.func @transform_1(%arg0: i32) -> (i32, i32, i32) {
    %c0_i32 = arith.constant 0 : i32
    %c0_i32_0 = arith.constant 0 : i32
    %c0_i32_1 = arith.constant 0 : i32
    %c0_i32_2 = arith.constant 0 : i32
    return %c0_i32, %c0_i32_0, %c0_i32_1 : i32, i32, i32
  }
  func.func @transform_2(%arg0: i32) -> (i32, i32) {
    %c0_i32 = arith.constant 0 : i32
    %c0_i32_0 = arith.constant 0 : i32
    %c0_i32_1 = arith.constant 0 : i32
    return %c0_i32, %c0_i32_0 : i32, i32
  }
  func.func @transform_3(%arg0: i32) -> (i32, i32) {
    %c0_i32 = arith.constant 0 : i32
    %c0_i32_0 = arith.constant 0 : i32
    %c0_i32_1 = arith.constant 0 : i32
    return %c0_i32, %c0_i32_0 : i32, i32
  }
  func.func @transform_4(%arg0: i32) -> (i32, i32) {
    %c0_i32 = arith.constant 0 : i32
    %c0_i32_0 = arith.constant 0 : i32
    %c0_i32_1 = arith.constant 0 : i32
    return %c0_i32, %c0_i32_0 : i32, i32
  }
  func.func @transform_5(%arg0: i32) -> (i32, i32) {
    %c0_i32 = arith.constant 0 : i32
    %c0_i32_0 = arith.constant 0 : i32
    %c0_i32_1 = arith.constant 0 : i32
    return %c0_i32, %c0_i32_0 : i32, i32
  }
  func.func @transform_6(%arg0: i32) -> (i32, i32) {
    %c0_i32 = arith.constant 0 : i32
    %c0_i32_0 = arith.constant 0 : i32
    %c0_i32_1 = arith.constant 0 : i32
    return %c0_i32, %c0_i32_0 : i32, i32
  }
  func.func @transform_7(%arg0: i32) -> (i32, i32, i32) {
    %c0_i32 = arith.constant 0 : i32
    %c0_i32_0 = arith.constant 0 : i32
    %c0_i32_1 = arith.constant 0 : i32
    return %arg0, %c0_i32, %c0_i32_0 : i32, i32, i32
  }
}

</mosaic_0001>

<bundles_post_ra>
// kernel: multi_scale_shsa.1
= control target key start
LH: loop header
LB: loop body
LE: loop exit
PB: predicated region body
PF: predicated region fallthrough
CT: control target
= control target key end

     0   :  { %vm153_vm0 = vcmask 1043456   ;;  %v7792_v2 = vmov 0   ;;  %vm146_vm1 = vcmask 64512   ;;  %v7794_v13 = vmov 9   ;;  %s5682_s15 = smov 0.0   ;;  %s7782_s0 = inlined_call_operand.vmem [shape: f32[2,16,256], index: 0, kind: input, shape index: {}]   ;;  %s7783_s1 = inlined_call_operand.vmem [shape: f32[3,56,10], index: 1, kind: input, shape index: {}]   ;;  %s7784_s2 = inlined_call_operand.vmem [shape: bf16[256,64], index: 2, kind: input, shape index: {}]   ;;  %s7785_s4 = inlined_call_operand.vmem [shape: bf16[256,16], index: 4, kind: input, shape index: {}]   ;;  %s7786_s3 = inlined_call_operand.vmem [shape: bf16[64,256], index: 3, kind: input, shape index: {}]   ;;  %s7787_s5 = inlined_call_operand.vmem [shape: bf16[16,256], index: 5, kind: input, shape index: {}]   ;;  %s7788_s6 = inlined_call_operand.vmem [shape: f32[16,1], index: 6, kind: input, shape index: {}]   ;;  %s7789_s7 = inlined_call_operand.vmem [shape: f32[2,16,256], index: 7, kind: output, shape index: {}]  }
   0x1   :  { %v5729_v0 = vld [vmem:[%s7782_s0] sm:$0xff]  ;;  %v5734_v1 = vld [vmem:[%s7782_s0 + $0x8] sm:$0xff]  ;;  %192 = vmatprep.mubr.bf16.mxu0 %v7792_v2  ;;  %421 = vmatprep.mubr.bf16.mxu1 %v7792_v2  ;;  %v7790_v31 = vmov 8   ;;  %vm1444_vm2 = vcmask 523264   ;;  %vm5685_vm3 = vmmov 0   ;;  %vm2153_vm4 = vcmask 130048  }
   0x2   :  { %v211_v3 = vadd.f32 %v5734_v1, %v5729_v0  ;;  %v224_v4 = vmul.f32 %v5729_v0, %v5729_v0  ;;  %v225_v5 = vmul.f32 %v5734_v1, %v5734_v1  ;;  %v145_v6 = vpack.c.bf16 %v5734_v1, %v5734_v1  ;;  %v27_v7 = vld [vmem:[%s7783_s1] sm:$0xff]  ;;  %v28_v8 = vld [vmem:[%s7783_s1 + $0x8] sm:$0xff]  ;;  %5099 = vset.pattern.permute.xlu0 %v7794_v13 }
   0x3   :  { %v144_v9 = vpack.c.bf16 %v5729_v0, %v5729_v0  ;;  %v5756_v12 = vpack.c.bf16 %v28_v8, %v27_v7  ;;  %5097 = vset.pattern.permute.xlu1 %v7794_v13 }
   0x4   :  { %212 = vadd.xlane.f32.xlu0 %v211_v3  ;;  %v226_v10 = vadd.f32 %v225_v5, %v224_v4  ;;  %4633 = vmatprep.subr.msk.bf16.mxu0 %vm153_vm0, %v145_v6 }
   0x5   :  { %v155_v11 = vsel %vm153_vm0, %v144_v9, 0  ;;  %7893 = vst [vmem:[#allocation2_spill] sm:$0xff] %v5756_v12 }
   0x6   :  { %175 = vmatpush1.bf16.msra.mxu0 %v155_v11 }
   0x8   :  { %227 = vadd.xlane.f32.xlu0 %v226_v10 }
   0x9   :  { %4634 = vmatmul.mubr.msk.bf16.vlgmr.msra.gmra.mxu0 %vm146_vm1, %v5756_v12 }
   0xa   :  { %202 = vmatprep.mubr.bf16.mxu0 %v7792_v2 }
  0x8d   :  { %v213_v14 = vpop.xlane.xlu0 %212 }
  0x8e   :  { %v214_v15 = vrot.slane %v213_v14, 4 }
  0x90   :  { %v215_v16 = vadd.f32 %v214_v15, %v213_v14 }
  0x91   :  { %v228_v17 = vpop.xlane.xlu0 %227 }
  0x92   :  { %v229_v18 = vrot.slane %v228_v17, 4  ;;  %v216_v19 = vrot.slane %v215_v16, 2 }
  0x94   :  { %v230_v20 = vadd.f32 %v229_v18, %v228_v17  ;;  %v217_v21 = vadd.f32 %v216_v19, %v215_v16 }
  0x96   :  { %v218_v22 = vrot.slane %v217_v21, 1  ;;  %v231_v23 = vrot.slane %v230_v20, 2 }
  0x98   :  { %v219_v24 = vadd.f32 %v218_v22, %v217_v21  ;;  %v232_v25 = vadd.f32 %v231_v23, %v230_v20 }
  0x9a   :  { %5055 = vpush %v219_v24  ;;  %v233_v26 = vrot.slane %v232_v25, 1 }
  0x9c   :  { %v234_v27 = vadd.f32 %v233_v26, %v232_v25 }
  0x9e   :  { %5057 = vpush %v234_v27 }
  0xc9   :  { %v194_v34 = vpop.f32.mrf.mxu0 }
  0xcb   :  { %s5056_s9 = spop %5055  ;;  %v196_v35 = vpop.f32.mrf.mxu0 }
  0xcc   :  { %s223_s10 = smul.f32 0.00048828125, %s5056_s9 }
  0xcd   :  { %v198_v36 = vpop.f32.mrf.mxu0 }
  0xce   :  { %v5763_v28 = vstv %s223_s10  ;;  %s239_s11 = smul.f32 %s223_s10, %s223_s10 }
  0xcf   :  { %7894 = vst [vmem:[#allocation3_spill] sm:$0xff] %v5763_v28  ;;  %s5058_s12 = spop %5057  ;;  %v248_v29 = vmul.f32 %v5763_v28, %v28_v8  ;;  %v247_v30 = vmul.f32 %v5763_v28, %v27_v7  ;;  %v200_v40 = vpop.f32.mrf.mxu0 }
  0xd0   :  { %s238_s13 = smul.f32 0.00048828125, %s5058_s12 }
  0xd1   :  { %257 = vperm.xlu0 %5099, %v248_v29   ;;  %252 = vperm.xlu1 %5097, %v247_v30  }
  0xd2   :  { %s240_s14 = ssub.f32 %s238_s13, %s239_s11 }
  0xd4   :  { %s241_s16 = smax.f32 %s5682_s15, %s240_s14 }
  0xd5   :  { %s242_s17 = sadd.f32 1e-05, %s241_s16  ;;  %5098 = vset.pattern.permute.xlu1 %v7790_v31 }
  0xd6   :  { %280 = vperm.xlu1 %5098, %v27_v7  }
  0xd7   :  { %v243_v32 = vstv %s242_s17 }
  0xd8   :  { %5153 = vrsqrt.f32 %v243_v32 }
  0xda   :  { %285 = vperm.xlu1 %5098, %v28_v8  }
  0xe5   :  { %v5154_v33 = vpop.eup %5153 }
  0xe6   :  { %5059 = vpush %v5154_v33 }
 0x117   :  { %s5060_s18 = spop %5059 }
 0x118   :  { %v5769_v41 = vstv %s5060_s18 }
 0x119   :  { %7895 = vst [vmem:[#allocation4_spill] sm:$0xff] %v5769_v41 }
 0x14c   :  { %v253_v37 = vpop.permute.xlu1 %252  ;;  %v258_v39 = vpop.permute.xlu0 %257 }
 0x14d   :  { %v265_v38 = vsub.f32 %v194_v34, %v253_v37  ;;  %v267_v43 = vsub.f32 %v198_v36, %v258_v39  ;;  %v268_v44 = vsub.f32 %v200_v40, %v258_v39  ;;  %v266_v56 = vsub.f32 %v196_v35, %v253_v37 }
 0x14f   :  { %v272_v42 = vmul.f32 %v5769_v41, %v265_v38  ;;  %v275_v47 = vmul.f32 %v5769_v41, %v268_v44  ;;  %v274_v49 = vmul.f32 %v5769_v41, %v267_v43  ;;  %v273_v57 = vmul.f32 %v5769_v41, %v266_v56 }
 0x151   :  { %v5772_v45 = vpop.permute.xlu1 %280 }
 0x152   :  { %7896 = vst [vmem:[#allocation5_spill] sm:$0xff] %v5772_v45  ;;  %v293_v46 = vadd.f32 %v5772_v45, %v272_v42  ;;  %v294_v58 = vadd.f32 %v5772_v45, %v273_v57 }
 0x154   :  { %v299_v48 = vpack.c.bf16 %v293_v46, %v293_v46  ;;  %v300_v59 = vpack.c.bf16 %v294_v58, %v294_v58 }
 0x155   :  { %v5777_v50 = vpop.permute.xlu1 %285 }
 0x156   :  { %7897 = vst [vmem:[#allocation6_spill] sm:$0xff] %v5777_v50  ;;  %303 = vxpose.xlu1.c.b16.start.end [1/1] (short) %v299_v48, 128  ;;  %v296_v51 = vadd.f32 %v5777_v50, %v275_v47  ;;  %v295_v52 = vadd.f32 %v5777_v50, %v274_v49 }
 0x158   :  { %v302_v53 = vpack.c.bf16 %v296_v51, %v296_v51  ;;  %v301_v54 = vpack.c.bf16 %v295_v52, %v295_v52 }
 0x15a   :  { %4636 = vmatprep.subr.msk.bf16.mxu1 %vm153_vm0, %v302_v53  ;;  %v384_v55 = vsel %vm153_vm0, %v301_v54, 0 }
 0x15b   :  { %404 = vmatpush1.bf16.msra.mxu1 %v384_v55 }
 0x173   :  { %319 = vxpose.xlu1.c.b16.start.end [1/1] (short) %v300_v59, 128 }
 0x1b8   :  { %v311_v60 = vpop.trf.xlu1 }
 0x1b9   :  { %4637 = vmatmul.mubr.msk.bf16.vlgmr.msra.gmra.mxu1 %vm146_vm1, %v311_v60 }
 0x1ba   :  { %431 = vmatprep.mubr.bf16.mxu1 %v7792_v2 }
 0x1bc   :  { %v312_v61 = vpop.trf.xlu1 }
 0x1c0   :  { %v313_v62 = vpop.trf.xlu1 }
 0x1c1   :  { %4638 = vmatmul.mubr.msk.bf16.gmra.mxu1 %vm146_vm1, %v312_v61 }
 0x1c2   :  { %441 = vmatprep.mubr.bf16.mxu1 %v7792_v2 }
 0x1c4   :  { %v314_v63 = vpop.trf.xlu1 }
 0x1c8   :  { %v315_v3 = vpop.trf.xlu1 }
 0x1c9   :  { %4639 = vmatmul.mubr.msk.bf16.gmra.mxu1 %vm146_vm1, %v313_v62 }
 0x1ca   :  { %451 = vmatprep.mubr.bf16.mxu1 %v7792_v2 }
 0x1cc   :  { %v316_v4 = vpop.trf.xlu1 }
 0x1d0   :  { %v317_v5 = vpop.trf.xlu1 }
 0x1d1   :  { %4640 = vmatmul.mubr.msk.bf16.gmra.mxu1 %vm146_vm1, %v314_v63 }
 0x1d2   :  { %461 = vmatprep.mubr.bf16.mxu1 %v7792_v2 }
 0x1d4   :  { %v318_v6 = vpop.trf.xlu1 }
 0x1d8   :  { %v327_v7 = vpop.trf.xlu1 }
 0x1d9   :  { %4641 = vmatmul.mubr.msk.bf16.gmra.mxu1 %vm146_vm1, %v315_v3 }
 0x1da   :  { %471 = vmatprep.mubr.bf16.mxu1 %v7792_v2 }
 0x1dc   :  { %v328_v8 = vpop.trf.xlu1 }
 0x1e0   :  { %v329_v9 = vpop.trf.xlu1 }
 0x1e1   :  { %4642 = vmatmul.mubr.msk.bf16.gmra.mxu1 %vm146_vm1, %v316_v4 }
 0x1e2   :  { %481 = vmatprep.mubr.bf16.mxu1 %v7792_v2 }
 0x1e4   :  { %v330_v10 = vpop.trf.xlu1 }
 0x1e8   :  { %v331_v11 = vpop.trf.xlu1 }
 0x1e9   :  { %4643 = vmatmul.mubr.msk.bf16.gmra.mxu1 %vm146_vm1, %v317_v5 }
 0x1ea   :  { %491 = vmatprep.mubr.bf16.mxu1 %v7792_v2 }
 0x1ec   :  { %v332_v14 = vpop.trf.xlu1 }
 0x1f0   :  { %v333_v15 = vpop.trf.xlu1 }
 0x1f1   :  { %4644 = vmatmul.mubr.msk.bf16.gmra.mxu1 %vm146_vm1, %v318_v6 }
 0x1f2   :  { %501 = vmatprep.mubr.bf16.mxu1 %v7792_v2 }
 0x1f4   :  { %v334_v16 = vpop.trf.xlu1 }
 0x1f9   :  { %4645 = vmatmul.mubr.msk.bf16.gmra.mxu1 %vm146_vm1, %v327_v7 }
 0x1fa   :  { %511 = vmatprep.mubr.bf16.mxu1 %v7792_v2 }
 0x201   :  { %4646 = vmatmul.mubr.msk.bf16.gmra.mxu1 %vm146_vm1, %v328_v8 }
 0x202   :  { %521 = vmatprep.mubr.bf16.mxu1 %v7792_v2 }
 0x209   :  { %4647 = vmatmul.mubr.msk.bf16.gmra.mxu1 %vm146_vm1, %v329_v9 }
 0x20a   :  { %531 = vmatprep.mubr.bf16.mxu1 %v7792_v2 }
 0x211   :  { %4648 = vmatmul.mubr.msk.bf16.gmra.mxu1 %vm146_vm1, %v330_v10 }
 0x212   :  { %541 = vmatprep.mubr.bf16.mxu1 %v7792_v2 }
 0x219   :  { %4649 = vmatmul.mubr.msk.bf16.gmra.mxu1 %vm146_vm1, %v331_v11 }
 0x21a   :  { %551 = vmatprep.mubr.bf16.mxu1 %v7792_v2 }
 0x221   :  { %4650 = vmatmul.mubr.msk.bf16.gmra.mxu1 %vm146_vm1, %v332_v14 }
 0x222   :  { %561 = vmatprep.mubr.bf16.mxu1 %v7792_v2 }
 0x229   :  { %4651 = vmatmul.mubr.msk.bf16.gmra.mxu1 %vm146_vm1, %v333_v15 }
 0x22a   :  { %571 = vmatprep.mubr.bf16.mxu1 %v7792_v2 }
 0x231   :  { %4652 = vmatmul.mubr.msk.bf16.gmra.mxu1 %vm146_vm1, %v334_v16 }
 0x232   :  { %1186 = vmatprep.mubr.bf16.mxu1 %v7792_v2 }
 0x279   :  { %v5817_v17 = vpop.f32.mrf.mxu1 }
 0x27a   :  { %7898 = vst [vmem:[#allocation7_spill] sm:$0xff] %v5817_v17 }
 0x27b   :  { %v5819_v18 = vpop.f32.mrf.mxu1 }
 0x27c   :  { %7899 = vst [vmem:[#allocation8_spill] sm:$0xff] %v5819_v18  ;;  %v582_v12 = vmax.f32 %v5817_v17, %v5819_v18  ;;  %v5116_v17 = vld [vmem:[%s7784_s2 + $0x50] sm:$0xff]  }
 0x27d   :  { %v5821_v19 = vpop.f32.mrf.mxu1 }
 0x27e   :  { %7900 = vst [vmem:[#allocation9_spill] sm:$0xff] %v5821_v19 }
 0x27f   :  { %v5823_v20 = vpop.f32.mrf.mxu1 }
 0x280   :  { %7901 = vst [vmem:[#allocation10_spill] sm:$0xff] %v5823_v20  ;;  %v585_v7 = vmax.f32 %v5821_v19, %v5823_v20  ;;  %v5115_v20 = vld [vmem:[%s7784_s2 + $0x18] sm:$0xff]  }
 0x281   :  { %v5825_v21 = vpop.f32.mrf.mxu1 }
 0x283   :  { %v5827_v22 = vpop.f32.mrf.mxu1 }
 0x285   :  { %v5829_v23 = vpop.f32.mrf.mxu1 }
 0x287   :  { %v5831_v24 = vpop.f32.mrf.mxu1 }
 0x288   :  { %v591_v3 = vmax.f32 %v5829_v23, %v5831_v24 }
 0x289   :  { %v5833_v25 = vpop.f32.mrf.mxu1 }
 0x28b   :  { %v5835_v26 = vpop.f32.mrf.mxu1 }
 0x28d   :  { %v5837_v27 = vpop.f32.mrf.mxu1 }
 0x28f   :  { %v5839_v29 = vpop.f32.mrf.mxu1 }
 0x290   :  { %v597_v60 = vmax.f32 %v5837_v27, %v5839_v29 }
 0x291   :  { %v5841_v30 = vpop.f32.mrf.mxu1 }
 0x293   :  { %v5843_v32 = vpop.f32.mrf.mxu1 }
 0x295   :  { %v5845_v33 = vpop.f32.mrf.mxu1 }
 0x297   :  { %v5847_v34 = vpop.f32.mrf.mxu1 }
 0x299   :  { %v5849_v35 = vpop.f32.mrf.mxu1 }
 0x29b   :  { %v5851_v36 = vpop.f32.mrf.mxu1 }
 0x29c   :  { %v606_v10 = vmax.f32 %v5849_v35, %v5851_v36 }
 0x29d   :  { %v5853_v37 = vpop.f32.mrf.mxu1 }
 0x29f   :  { %v5855_v38 = vpop.f32.mrf.mxu1 }
 0x2a0   :  { %v609_v15 = vmax.f32 %v5853_v37, %v5855_v38 }
 0x2a1   :  { %v5857_v39 = vpop.f32.mrf.mxu1 }
 0x2a3   :  { %v5859_v40 = vpop.f32.mrf.mxu1 }
 0x2a4   :  { %v612_v63 = vmax.f32 %v5857_v39, %v5859_v40 }
 0x2a5   :  { %v5861_v42 = vpop.f32.mrf.mxu1 }
 0x2a7   :  { %v5863_v43 = vpop.f32.mrf.mxu1 }
 0x2a8   :  { %v615_v6 = vmax.f32 %v5861_v42, %v5863_v43 }
 0x2a9   :  { %v5865_v44 = vpop.f32.mrf.mxu1 }
 0x2ab   :  { %v5867_v46 = vpop.f32.mrf.mxu1 }
 0x2ac   :  { %v618_v55 = vmax.f32 %v5865_v44, %v5867_v46 }
 0x2ad   :  { %v5869_v47 = vpop.f32.mrf.mxu1 }
 0x2af   :  { %v5871_v48 = vpop.f32.mrf.mxu1 }
 0x2b0   :  { %v621_v59 = vmax.f32 %v5869_v47, %v5871_v48 }
 0x2b1   :  { %v5873_v49 = vpop.f32.mrf.mxu1 }
 0x2b3   :  { %v5875_v51 = vpop.f32.mrf.mxu1 }
 0x2b4   :  { %v624_v52 = vmax.f32 %v5873_v49, %v5875_v51 }
 0x2b5   :  { %v5879_v53 = vpop.f32.mrf.mxu1 }
 0x2b6   :  { %625 = vmax.xlane.f32.xlu0 %v624_v52 }
 0x2b7   :  { %v5881_v54 = vpop.f32.mrf.mxu1 }
 0x2b8   :  { %v627_v56 = vmax.f32 %v5879_v53, %v5881_v54 }
 0x2b9   :  { %v5887_v57 = vpop.f32.mrf.mxu1 }
 0x2ba   :  { %7902 = vst [vmem:[#allocation11_spill] sm:$0xff] %v5887_v57  ;;  %619 = vmax.xlane.f32.xlu0 %v618_v55  ;;  %628 = vmax.xlane.f32.xlu1 %v627_v56  ;;  %v600_v55 = vmax.f32 %v5841_v30, %v5843_v32 }
 0x2bb   :  { %v5889_v58 = vpop.f32.mrf.mxu1 }
 0x2bc   :  { %7903 = vst [vmem:[#allocation12_spill] sm:$0xff] %v5889_v58 }
 0x2bd   :  { %v5895_v61 = vpop.f32.mrf.mxu1 }
 0x2be   :  { %7904 = vst [vmem:[#allocation13_spill] sm:$0xff] %v5895_v61  ;;  %622 = vmax.xlane.f32.xlu0 %v621_v59  ;;  %598 = vmax.xlane.f32.xlu1 %v597_v60  ;;  %v603_v60 = vmax.f32 %v5845_v33, %v5847_v34  ;;  %v5106_v61 = vld [vmem:[%s7784_s2 + $0x78] sm:$0xff]  }
 0x2bf   :  { %v5897_v62 = vpop.f32.mrf.mxu1 }
 0x2c0   :  { %7905 = vst [vmem:[#allocation14_spill] sm:$0xff] %v5897_v62 }
 0x2c1   :  { %v5903_v4 = vpop.f32.mrf.mxu1 }
 0x2c2   :  { %613 = vmax.xlane.f32.xlu0 %v612_v63  ;;  %592 = vmax.xlane.f32.xlu1 %v591_v3 }
 0x2c3   :  { %v5905_v5 = vpop.f32.mrf.mxu1 }
 0x2c5   :  { %v5911_v8 = vpop.f32.mrf.mxu1 }
 0x2c6   :  { %7906 = vst [vmem:[#allocation15_spill] sm:$0xff] %v5911_v8  ;;  %616 = vmax.xlane.f32.xlu0 %v615_v6  ;;  %586 = vmax.xlane.f32.xlu1 %v585_v7  ;;  %v594_v6 = vmax.f32 %v5833_v25, %v5835_v26  ;;  %v5113_v8 = vld [vmem:[%s7784_s2 + $0x20] sm:$0xff]  }
 0x2c7   :  { %v5913_v9 = vpop.f32.mrf.mxu1 }
 0x2c8   :  { %7907 = vst [vmem:[#allocation16_spill] sm:$0xff] %v5913_v9 }
 0x2c9   :  { %v5917_v11 = vpop.f32.mrf.mxu1 }
 0x2ca   :  { %607 = vmax.xlane.f32.xlu0 %v606_v10 }
 0x2cb   :  { %v5919_v14 = vpop.f32.mrf.mxu1 }
 0x2cd   :  { %v5923_v16 = vpop.f32.mrf.mxu1 }
 0x2ce   :  { %610 = vmax.xlane.f32.xlu0 %v609_v15  ;;  %v5948_v15 = vld [vmem:[%s7782_s0 + $0x18] sm:$0xff] }
 0x2cf   :  { %v5925_v52 = vpop.f32.mrf.mxu1  ;;  %v1142_v31 = vmax.f32 %v5948_v15, 0.0 }
 0x2d1   :  { %v5929_v56 = vpop.f32.mrf.mxu1  ;;  %v1144_v13 = vpack.c.bf16 %v1142_v31, %v1142_v31 }
 0x2d2   :  { %601 = vmax.xlane.f32.xlu0 %v600_v55  ;;  %v5953_v55 = vld [vmem:[%s7782_s0 + $0x10] sm:$0xff] }
 0x2d3   :  { %v5931_v59 = vpop.f32.mrf.mxu1  ;;  %v1141_v2 = vmax.f32 %v5953_v55, 0.0  ;;  %4653 = vmatprep.subr.msk.bf16.mxu1 %vm153_vm0, %v1144_v13  ;;  %v33_v13 = vld [vmem:[%s7783_s1 + $0x30] sm:$0xff] }
 0x2d5   :  { %v5935_v63 = vpop.f32.mrf.mxu1  ;;  %v1143_v50 = vpack.c.bf16 %v1141_v2, %v1141_v2  ;;  %v32_v2 = vld [vmem:[%s7783_s1 + $0x28] sm:$0xff] }
 0x2d6   :  { %604 = vmax.xlane.f32.xlu0 %v603_v60  ;;  %v588_v60 = vmax.f32 %v5825_v21, %v5827_v22  ;;  %v5980_v31 = vpack.c.bf16 %v33_v13, %v32_v2  ;;  %v5110_v13 = vld [vmem:[%s7784_s2 + $0x68] sm:$0xff]  }
 0x2d7   :  { %v5937_v3 = vpop.f32.mrf.mxu1  ;;  %v1149_v41 = vsel %vm153_vm0, %v1143_v50, 0  ;;  %v5108_v50 = vld [vmem:[%s7784_s2 + $0x70] sm:$0xff]  }
 0x2d8   :  { %1169 = vmatpush1.bf16.msra.mxu1 %v1149_v41  ;;  %7910 = vst [vmem:[#allocation19_spill] sm:$0xff] %v5980_v31 }
 0x2d9   :  { %v5941_v7 = vpop.f32.mrf.mxu1  ;;  %4765 = vmatprep.subr.bf16.mxu1 %v5106_v61  ;;  %v5109_v61 = vld [vmem:[%s7784_s2 + $0x30] sm:$0xff]  }
 0x2da   :  { %595 = vmax.xlane.f32.xlu0 %v594_v6 }
 0x2db   :  { %v5943_v10 = vpop.f32.mrf.mxu1  ;;  %4654 = vmatmul.mubr.msk.bf16.vlgmr.msra.gmra.mxu1 %vm146_vm1, %v5980_v31  ;;  %v5111_v31 = vld [vmem:[%s7784_s2 + $0x28] sm:$0xff]  }
 0x2dd   :  { %v5959_v6 = vpop.f32.mrf.mxu1 }
 0x2de   :  { %7908 = vst [vmem:[#allocation17_spill] sm:$0xff] %v5959_v6  ;;  %589 = vmax.xlane.f32.xlu0 %v588_v60 }
 0x2df   :  { %v5961_v45 = vpop.f32.mrf.mxu1 }
 0x2e0   :  { %7909 = vst [vmem:[#allocation18_spill] sm:$0xff] %v5961_v45 }
 0x2e1   :  { %v5967_v28 = vpop.f32.mrf.mxu1 }
 0x2e2   :  { %583 = vmax.xlane.f32.xlu0 %v582_v12  ;;  %v5107_v12 = vld [vmem:[%s7784_s2 + $0x38] sm:$0xff]  }
 0x2e3   :  { %v5972_v60 = vpop.f32.mrf.mxu1  ;;  %4766 = vmatpush3.bf16.msra.mxu1 %v5107_v12 }
 0x2e4   :  { %4767 = vmatprep.subr.bf16.mxu1 %v5108_v50  ;;  %v5112_v50 = vld [vmem:[%s7784_s2 + $0x60] sm:$0xff]  }
 0x2e5   :  { %v5985_v41 = vpop.f32.mrf.mxu1 }
 0x2e7   :  { %v5992_v62 = vpop.f32.mrf.mxu1  ;;  %4768 = vmatpush3.bf16.msra.mxu1 %v5109_v61 }
 0x2e8   :  { %7911 = vst [vmem:[#allocation20_spill] sm:$0xff] %v5992_v62  ;;  %4769 = vmatprep.subr.bf16.mxu1 %v5110_v13  ;;  %v5114_v13 = vld [vmem:[%s7784_s2 + $0x58] sm:$0xff]  }
 0x2e9   :  { %v5997_v2 = vpop.f32.mrf.mxu1 }
 0x2ea   :  { %7912 = vst [vmem:[#allocation21_spill] sm:$0xff] %v5997_v2 }
 0x2eb   :  { %v6002_v57 = vpop.f32.mrf.mxu1  ;;  %4770 = vmatpush3.bf16.msra.mxu1 %v5111_v31 }
 0x2ec   :  { %7913 = vst [vmem:[#allocation22_spill] sm:$0xff] %v6002_v57  ;;  %4771 = vmatprep.subr.bf16.mxu1 %v5112_v50  ;;  %v666_v50 = vmax.f32 %v5997_v2, %v6002_v57  ;;  %v5119_v2 = vld [vmem:[%s7784_s2 + $0x8] sm:$0xff]  }
 0x2ed   :  { %v6007_v12 = vpop.f32.mrf.mxu1 }
 0x2ef   :  { %v6012_v58 = vpop.f32.mrf.mxu1  ;;  %4772 = vmatpush3.bf16.msra.mxu1 %v5113_v8  ;;  %v5117_v8 = vld [vmem:[%s7784_s2 + $0x10] sm:$0xff]  }
 0x2f0   :  { %4773 = vmatprep.subr.bf16.mxu1 %v5114_v13  ;;  %v669_v57 = vmax.f32 %v6007_v12, %v6012_v58 }
 0x2f1   :  { %v6017_v61 = vpop.f32.mrf.mxu1 }
 0x2f3   :  { %v6022_v9 = vpop.f32.mrf.mxu1  ;;  %4774 = vmatpush3.bf16.msra.mxu1 %v5115_v20  ;;  %v5118_v20 = vld [vmem:[%s7784_s2 + $0x48] sm:$0xff]  }
 0x2f4   :  { %v672_v31 = vmax.f32 %v6017_v61, %v6022_v9  ;;  %4775 = vmatprep.subr.bf16.mxu1 %v5116_v17  ;;  %v654_v17 = vmax.f32 %v5941_v7, %v5943_v10 }
 0x2f5   :  { %v6029_v18 = vpop.f32.mrf.mxu1 }
 0x2f6   :  { %673 = vmax.xlane.f32.xlu0 %v672_v31  ;;  %v660_v31 = vmax.f32 %v5967_v28, %v5972_v60 }
 0x2f7   :  { %v6036_v19 = vpop.f32.mrf.mxu1  ;;  %4776 = vmatpush3.bf16.msra.mxu1 %v5117_v8  ;;  %v5121_v8 = vld [vmem:[%s7784_s2] sm:$0xff]  }
 0x2f8   :  { %v675_v13 = vmax.f32 %v6029_v18, %v6036_v19  ;;  %4777 = vmatprep.subr.bf16.mxu1 %v5118_v20  ;;  %v6071_v20 = vpack.c.bf16 %v5953_v55, %v5729_v0 }
 0x2fa   :  { %667 = vmax.xlane.f32.xlu0 %v666_v50  ;;  %676 = vmax.xlane.f32.xlu1 %v675_v13  ;;  %v663_v50 = vmax.f32 %v5985_v41, %v5992_v62  ;;  %v5120_v13 = vld [vmem:[%s7784_s2 + $0x40] sm:$0xff]   ;;  %7915 = vst [vmem:[#allocation24_spill] sm:$0xff] %v6071_v20 }
 0x2fb   :  { %4778 = vmatpush3.bf16.msra.mxu1 %v5119_v2 }
 0x2fc   :  { %4779 = vmatprep.subr.bf16.mxu1 %v5120_v13 }
 0x2fe   :  { %661 = vmax.xlane.f32.xlu0 %v660_v31  ;;  %670 = vmax.xlane.f32.xlu1 %v669_v57  ;;  %v6065_v31 = vpack.c.bf16 %v5948_v15, %v5734_v1  ;;  %v657_v57 = vmax.f32 %v5959_v6, %v5961_v45  ;;  %v6078_v1 = vld [vmem:[%s7783_s1 + $0x10] sm:$0xff] }
 0x2ff   :  { %4780 = vmatpush3.bf16.msra.mxu1 %v5121_v8  ;;  %7916 = vst [vmem:[#allocation25_spill] sm:$0xff] %v6078_v1  ;;  %v6082_v15 = vpack.c.bf16 %v6078_v1, %v6078_v1 }
 0x300   :  { %7914 = vst [vmem:[#allocation23_spill] sm:$0xff] %v6065_v31  ;;  %1377 = vmatprep.mubr.bf16.mxu1 %v6065_v31 }
 0x301   :  { %7917 = vst [vmem:[#allocation26_spill] sm:$0xff] %v6082_v15  ;;  %4635 = vmatmul.mubr.msk.bf16.gmra.mxu0 %vm146_vm1, %v6082_v15 }
 0x302   :  { %655 = vmax.xlane.f32.xlu0 %v654_v17  ;;  %664 = vmax.xlane.f32.xlu1 %v663_v50 }
 0x303   :  { %1378 = vmatmul.mubr.bf16.vlgmr.msra.gmra.mxu1 %v6071_v20 }
 0x306   :  { %658 = vmax.xlane.f32.xlu1 %v657_v57 }
 0x33f   :  { %v626_v0 = vpop.xlane.xlu0 %625 }
 0x340   :  { %v706_v55 = vsub.f32 %v5873_v49, %v626_v0  ;;  %v707_v2 = vsub.f32 %v5875_v51, %v626_v0 }
 0x342   :  { %v798_v17 = vmul.f32 1.442695, %v706_v55  ;;  %v800_v50 = vmul.f32 1.442695, %v707_v2 }
 0x343   :  { %v620_v13 = vpop.xlane.xlu0 %619  ;;  %v629_v8 = vpop.xlane.xlu1 %628 }
 0x344   :  { %5155 = vpow2.f32 %v798_v17  ;;  %v702_v57 = vsub.f32 %v5865_v44, %v620_v13  ;;  %v703_v20 = vsub.f32 %v5867_v46, %v620_v13  ;;  %v708_v31 = vsub.f32 %v5879_v53, %v629_v8 }
 0x345   :  { %5157 = vpow2.f32 %v800_v50  ;;  %v709_v1 = vsub.f32 %v5881_v54, %v629_v8 }
 0x346   :  { %v790_v15 = vmul.f32 1.442695, %v702_v57  ;;  %v792_v45 = vmul.f32 1.442695, %v703_v20  ;;  %v802_v6 = vmul.f32 1.442695, %v708_v31 }
 0x347   :  { %v804_v49 = vmul.f32 1.442695, %v709_v1  ;;  %v623_v62 = vpop.xlane.xlu0 %622 }
 0x348   :  { %5159 = vpow2.f32 %v790_v15  ;;  %v704_v51 = vsub.f32 %v5869_v47, %v623_v62  ;;  %v705_v0 = vsub.f32 %v5871_v48, %v623_v62 }
 0x349   :  { %5161 = vpow2.f32 %v792_v45 }
 0x34a   :  { %5163 = vpow2.f32 %v802_v6  ;;  %v794_v46 = vmul.f32 1.442695, %v704_v51  ;;  %v796_v54 = vmul.f32 1.442695, %v705_v0 }
 0x34b   :  { %5165 = vpow2.f32 %v804_v49  ;;  %v614_v44 = vpop.xlane.xlu0 %613  ;;  %v648_v49 = vmax.f32 %v5929_v56, %v5931_v59 }
 0x34c   :  { %v698_v53 = vsub.f32 %v5857_v39, %v614_v44  ;;  %v699_v55 = vsub.f32 %v5859_v40, %v614_v44  ;;  %5167 = vpow2.f32 %v794_v46 }
 0x34d   :  { %5169 = vpow2.f32 %v796_v54 }
 0x34e   :  { %v782_v2 = vmul.f32 1.442695, %v698_v53  ;;  %v784_v20 = vmul.f32 1.442695, %v699_v55 }
 0x34f   :  { %v617_v31 = vpop.xlane.xlu0 %616 }
 0x350   :  { %v700_v1 = vsub.f32 %v5861_v42, %v617_v31  ;;  %v701_v45 = vsub.f32 %v5863_v43, %v617_v31  ;;  %5171 = vpow2.f32 %v782_v2  ;;  %v599_v2 = vpop.xlane.xlu1 %598 }
 0x351   :  { %v6097_v15 = vpop.eup %5155  ;;  %5173 = vpow2.f32 %v784_v20  ;;  %v651_v20 = vmax.f32 %v5935_v63, %v5937_v3 }
 0x352   :  { %v6100_v47 = vpop.eup %5157  ;;  %v786_v40 = vmul.f32 1.442695, %v700_v1  ;;  %v788_v42 = vmul.f32 1.442695, %v701_v45 }
 0x353   :  { %v608_v48 = vpop.xlane.xlu0 %607  ;;  %v912_v39 = vadd.f32 %v6100_v47, %v6097_v15 }
 0x354   :  { %v694_v62 = vsub.f32 %v5849_v35, %v608_v48  ;;  %v695_v6 = vsub.f32 %v5851_v36, %v608_v48  ;;  %5175 = vpow2.f32 %v786_v40 }
 0x355   :  { %v6106_v17 = vpop.eup %5159  ;;  %913 = vadd.xlane.f32.xlu0 %v912_v39  ;;  %5177 = vpow2.f32 %v788_v42 }
 0x356   :  { %v6108_v50 = vpop.eup %5161  ;;  %v774_v43 = vmul.f32 1.442695, %v694_v62  ;;  %v776_v8 = vmul.f32 1.442695, %v695_v6  ;;  %v688_v6 = vsub.f32 %v5837_v27, %v599_v2 }
 0x357   :  { %v6110_v13 = vpop.eup %5163  ;;  %v611_v57 = vpop.xlane.xlu0 %610  ;;  %v906_v46 = vadd.f32 %v6108_v50, %v6106_v17 }
 0x358   :  { %v6114_v51 = vpop.eup %5165  ;;  %v696_v35 = vsub.f32 %v5853_v37, %v611_v57  ;;  %v697_v36 = vsub.f32 %v5855_v38, %v611_v57  ;;  %5179 = vpow2.f32 %v774_v43  ;;  %v593_v57 = vpop.xlane.xlu1 %592 }
 0x359   :  { %649 = vmax.xlane.f32.xlu0 %v648_v49  ;;  %v915_v0 = vadd.f32 %v6114_v51, %v6110_v13  ;;  %5181 = vpow2.f32 %v776_v8  ;;  %v6124_v37 = vpop.eup %5167  ;;  %v689_v8 = vsub.f32 %v5839_v29, %v599_v2 }
 0x35a   :  { %v778_v53 = vmul.f32 1.442695, %v696_v35  ;;  %v780_v38 = vmul.f32 1.442695, %v697_v36  ;;  %v6128_v31 = vpop.eup %5169 }
 0x35b   :  { %916 = vadd.xlane.f32.xlu1 %v915_v0  ;;  %v602_v44 = vpop.xlane.xlu0 %601  ;;  %v909_v42 = vadd.f32 %v6128_v31, %v6124_v37  ;;  %v762_v0 = vmul.f32 1.442695, %v688_v6  ;;  %v764_v2 = vmul.f32 1.442695, %v689_v8 }
 0x35c   :  { %v690_v55 = vsub.f32 %v5841_v30, %v602_v44  ;;  %v691_v54 = vsub.f32 %v5843_v32, %v602_v44  ;;  %v642_v30 = vmax.f32 %v5917_v11, %v5919_v14  ;;  %5183 = vpow2.f32 %v778_v53 }
 0x35d   :  { %907 = vadd.xlane.f32.xlu0 %v906_v46  ;;  %v6130_v45 = vpop.eup %5171  ;;  %5185 = vpow2.f32 %v780_v38  ;;  %v645_v44 = vmax.f32 %v5923_v16, %v5925_v52  ;;  %v684_v46 = vsub.f32 %v5829_v23, %v593_v57  ;;  %v636_v38 = vmax.f32 %v5903_v4, %v5905_v5 }
 0x35e   :  { %v766_v1 = vmul.f32 1.442695, %v690_v55  ;;  %v768_v48 = vmul.f32 1.442695, %v691_v54  ;;  %v6134_v32 = vpop.eup %5173 }
 0x35f   :  { %652 = vmax.xlane.f32.xlu1 %v651_v20  ;;  %v605_v39 = vpop.xlane.xlu0 %604 }
 0x360   :  { %v692_v40 = vsub.f32 %v5845_v33, %v605_v39  ;;  %v693_v62 = vsub.f32 %v5847_v34, %v605_v39  ;;  %5187 = vpow2.f32 %v766_v1  ;;  %v900_v33 = vadd.f32 %v6134_v32, %v6130_v45 }
 0x361   :  { %643 = vmax.xlane.f32.xlu0 %v642_v30  ;;  %5189 = vpow2.f32 %v768_v48  ;;  %v6146_v36 = vpop.eup %5175  ;;  %v587_v48 = vpop.xlane.xlu1 %586 }
 0x362   :  { %v770_v43 = vmul.f32 1.442695, %v692_v40  ;;  %v772_v49 = vmul.f32 1.442695, %v693_v62  ;;  %v6150_v29 = vpop.eup %5177 }
 0x363   :  { %910 = vadd.xlane.f32.xlu1 %v909_v42  ;;  %v596_v35 = vpop.xlane.xlu0 %595  ;;  %v903_v39 = vadd.f32 %v6150_v29, %v6146_v36 }
 0x364   :  { %v686_v34 = vsub.f32 %v5833_v25, %v596_v35  ;;  %v687_v27 = vsub.f32 %v5835_v26, %v596_v35  ;;  %5191 = vpow2.f32 %v770_v43  ;;  %v685_v25 = vsub.f32 %v5831_v24, %v593_v57  ;;  %v7920_v57 = vld [vmem:[#allocation8_spill] sm:$0xff] }
 0x365   :  { %901 = vadd.xlane.f32.xlu0 %v900_v33  ;;  %v6153_v54 = vpop.eup %5179  ;;  %5193 = vpow2.f32 %v772_v49  ;;  %v754_v24 = vmul.f32 1.442695, %v684_v46  ;;  %v7921_v33 = vld [vmem:[#allocation10_spill] sm:$0xff] }
 0x366   :  { %v758_v53 = vmul.f32 1.442695, %v686_v34  ;;  %v760_v55 = vmul.f32 1.442695, %v687_v27  ;;  %v6158_v20 = vpop.eup %5181  ;;  %v756_v62 = vmul.f32 1.442695, %v685_v25  ;;  %v681_v34 = vsub.f32 %v7921_v33, %v587_v48 }
 0x367   :  { %646 = vmax.xlane.f32.xlu1 %v645_v44  ;;  %v590_v26 = vpop.xlane.xlu0 %589  ;;  %v894_v42 = vadd.f32 %v6158_v20, %v6153_v54  ;;  %v7922_v27 = vld [vmem:[#allocation16_spill] sm:$0xff] }
 0x368   :  { %5195 = vpow2.f32 %v758_v53  ;;  %v682_v1 = vsub.f32 %v5825_v21, %v590_v26  ;;  %v683_v23 = vsub.f32 %v5827_v22, %v590_v26  ;;  %v7918_v21 = vld [vmem:[#allocation9_spill] sm:$0xff]  ;;  %v7919_v22 = vld [vmem:[#allocation7_spill] sm:$0xff]  ;;  %v7924_v25 = vld [vmem:[#allocation12_spill] sm:$0xff] }
 0x369   :  { %5197 = vpow2.f32 %v760_v55  ;;  %637 = vmax.xlane.f32.xlu0 %v636_v38  ;;  %v680_v43 = vsub.f32 %v7918_v21, %v587_v48  ;;  %v6169_v35 = vpop.eup %5183  ;;  %v7925_v26 = vld [vmem:[#allocation11_spill] sm:$0xff]  ;;  %v748_v48 = vmul.f32 1.442695, %v681_v34 }
 0x36a   :  { %5199 = vpow2.f32 %v762_v0  ;;  %v750_v30 = vmul.f32 1.442695, %v682_v1  ;;  %v752_v40 = vmul.f32 1.442695, %v683_v23  ;;  %v7923_v0 = vld [vmem:[#allocation15_spill] sm:$0xff]  ;;  %v6174_v46 = vpop.eup %5185  ;;  %v630_v38 = vmax.f32 %v7925_v26, %v7924_v25 }
 0x36b   :  { %5201 = vpow2.f32 %v764_v2  ;;  %904 = vadd.xlane.f32.xlu1 %v903_v39  ;;  %v584_v6 = vpop.xlane.xlu0 %583  ;;  %v639_v44 = vmax.f32 %v7923_v0, %v7922_v27  ;;  %v746_v23 = vmul.f32 1.442695, %v680_v43  ;;  %v897_v39 = vadd.f32 %v6174_v46, %v6169_v35 }
 0x36c   :  { %5203 = vpow2.f32 %v750_v30  ;;  %v678_v8 = vsub.f32 %v7919_v22, %v584_v6  ;;  %v679_v49 = vsub.f32 %v7920_v57, %v584_v6  ;;  %v7927_v6 = vld [vmem:[#allocation14_spill] sm:$0xff] }
 0x36d   :  { %5205 = vpow2.f32 %v752_v40  ;;  %895 = vadd.xlane.f32.xlu0 %v894_v42  ;;  %v6176_v2 = vpop.eup %5187  ;;  %v7928_v42 = vld [vmem:[#allocation13_spill] sm:$0xff] }
 0x36e   :  { %5207 = vpow2.f32 %v754_v24  ;;  %v742_v53 = vmul.f32 1.442695, %v678_v8  ;;  %v744_v55 = vmul.f32 1.442695, %v679_v49  ;;  %v6180_v1 = vpop.eup %5189  ;;  %v633_v21 = vmax.f32 %v7928_v42, %v7927_v6 }
 0x36f   :  { %5209 = vpow2.f32 %v756_v62  ;;  %640 = vmax.xlane.f32.xlu1 %v639_v44  ;;  %v888_v30 = vadd.f32 %v6180_v1, %v6176_v2 }
 0x370   :  { %5211 = vpow2.f32 %v742_v53 }
 0x371   :  { %5213 = vpow2.f32 %v744_v55  ;;  %631 = vmax.xlane.f32.xlu0 %v630_v38  ;;  %v6184_v24 = vpop.eup %5191 }
 0x372   :  { %v6188_v40 = vpop.eup %5193  ;;  %5215 = vpow2.f32 %v746_v23 }
 0x373   :  { %898 = vadd.xlane.f32.xlu1 %v897_v39  ;;  %5217 = vpow2.f32 %v748_v48  ;;  %v891_v33 = vadd.f32 %v6188_v40, %v6184_v24 }
 0x375   :  { %v6190_v62 = vpop.eup %5195  ;;  %889 = vadd.xlane.f32.xlu0 %v888_v30 }
 0x376   :  { %7926 = vst [vmem:[#allocation9_spill] sm:$0xff] %v6190_v62  ;;  %v6194_v43 = vpop.eup %5197 }
 0x377   :  { %7929 = vst [vmem:[#allocation7_spill] sm:$0xff] %v6194_v43  ;;  %v6196_v22 = vpop.eup %5199  ;;  %634 = vmax.xlane.f32.xlu1 %v633_v21  ;;  %v882_v8 = vadd.f32 %v6194_v43, %v6190_v62 }
 0x378   :  { %7930 = vst [vmem:[#allocation8_spill] sm:$0xff] %v6196_v22  ;;  %v6200_v57 = vpop.eup %5201 }
 0x379   :  { %7931 = vst [vmem:[#allocation10_spill] sm:$0xff] %v6200_v57  ;;  %v6202_v49 = vpop.eup %5203  ;;  %883 = vadd.xlane.f32.xlu0 %v882_v8  ;;  %v885_v23 = vadd.f32 %v6200_v57, %v6196_v22  ;;  %v7938_v57 = vld [vmem:[#allocation21_spill] sm:$0xff] }
 0x37a   :  { %7932 = vst [vmem:[#allocation16_spill] sm:$0xff] %v6202_v49  ;;  %v6206_v34 = vpop.eup %5205 }
 0x37b   :  { %7933 = vst [vmem:[#allocation15_spill] sm:$0xff] %v6206_v34  ;;  %v6208_v44 = vpop.eup %5207  ;;  %892 = vadd.xlane.f32.xlu1 %v891_v33  ;;  %v876_v53 = vadd.f32 %v6206_v34, %v6202_v49 }
 0x37c   :  { %7934 = vst [vmem:[#allocation12_spill] sm:$0xff] %v6208_v44  ;;  %v6212_v55 = vpop.eup %5209 }
 0x37d   :  { %7935 = vst [vmem:[#allocation11_spill] sm:$0xff] %v6212_v55  ;;  %v6214_v38 = vpop.eup %5211  ;;  %877 = vadd.xlane.f32.xlu0 %v876_v53  ;;  %v879_v53 = vadd.f32 %v6212_v55, %v6208_v44 }
 0x37e   :  { %7936 = vst [vmem:[#allocation14_spill] sm:$0xff] %v6214_v38  ;;  %v6218_v48 = vpop.eup %5213 }
 0x37f   :  { %7937 = vst [vmem:[#allocation13_spill] sm:$0xff] %v6218_v48  ;;  %886 = vadd.xlane.f32.xlu1 %v885_v23  ;;  %v674_v39 = vpop.xlane.xlu0 %673  ;;  %v870_v30 = vadd.f32 %v6218_v48, %v6214_v38  ;;  %v6224_v33 = vpop.eup %5215  ;;  %v7939_v48 = vld [vmem:[#allocation22_spill] sm:$0xff] }
 0x380   :  { %v738_v21 = vsub.f32 %v6017_v61, %v674_v39  ;;  %v739_v8 = vsub.f32 %v6022_v9, %v674_v39  ;;  %v6228_v49 = vpop.eup %5217 }
 0x381   :  { %871 = vadd.xlane.f32.xlu0 %v870_v30  ;;  %v873_v30 = vadd.f32 %v6228_v49, %v6224_v33 }
 0x382   :  { %v862_v34 = vmul.f32 1.442695, %v738_v21  ;;  %v864_v62 = vmul.f32 1.442695, %v739_v8 }
 0x383   :  { %880 = vadd.xlane.f32.xlu1 %v879_v53  ;;  %v668_v23 = vpop.xlane.xlu0 %667  ;;  %v677_v22 = vpop.xlane.xlu1 %676 }
 0x384   :  { %5219 = vpow2.f32 %v862_v34  ;;  %v734_v38 = vsub.f32 %v7938_v57, %v668_v23  ;;  %v735_v61 = vsub.f32 %v7939_v48, %v668_v23  ;;  %v740_v9 = vsub.f32 %v6029_v18, %v677_v22 }
 0x385   :  { %5221 = vpow2.f32 %v864_v62  ;;  %v741_v39 = vsub.f32 %v6036_v19, %v677_v22 }
 0x386   :  { %v854_v44 = vmul.f32 1.442695, %v734_v38  ;;  %v856_v55 = vmul.f32 1.442695, %v735_v61  ;;  %v866_v21 = vmul.f32 1.442695, %v740_v9 }
 0x387   :  { %v868_v8 = vmul.f32 1.442695, %v741_v39  ;;  %874 = vadd.xlane.f32.xlu1 %v873_v30  ;;  %v662_v53 = vpop.xlane.xlu0 %661  ;;  %v671_v43 = vpop.xlane.xlu1 %670 }
 0x388   :  { %5223 = vpow2.f32 %v854_v44  ;;  %v730_v57 = vsub.f32 %v5967_v28, %v662_v53  ;;  %v731_v34 = vsub.f32 %v5972_v60, %v662_v53  ;;  %v736_v18 = vsub.f32 %v6007_v12, %v671_v43  ;;  %v7940_v12 = vld [vmem:[#allocation20_spill] sm:$0xff]  ;;  %v7942_v53 = vld [vmem:[#allocation18_spill] sm:$0xff] }
 0x389   :  { %5225 = vpow2.f32 %v856_v55  ;;  %v737_v19 = vsub.f32 %v6012_v58, %v671_v43 }
 0x38a   :  { %5227 = vpow2.f32 %v866_v21  ;;  %v846_v62 = vmul.f32 1.442695, %v730_v57  ;;  %v848_v22 = vmul.f32 1.442695, %v731_v34  ;;  %v858_v38 = vmul.f32 1.442695, %v736_v18 }
 0x38b   :  { %5229 = vpow2.f32 %v868_v8  ;;  %v860_v48 = vmul.f32 1.442695, %v737_v19  ;;  %v656_v23 = vpop.xlane.xlu0 %655  ;;  %v665_v61 = vpop.xlane.xlu1 %664  ;;  %v7941_v21 = vld [vmem:[#allocation17_spill] sm:$0xff] }
 0x38c   :  { %5231 = vpow2.f32 %v846_v62  ;;  %v726_v44 = vsub.f32 %v5941_v7, %v656_v23  ;;  %v727_v28 = vsub.f32 %v5943_v10, %v656_v23  ;;  %v732_v60 = vsub.f32 %v5985_v41, %v665_v61 }
 0x38d   :  { %5233 = vpow2.f32 %v848_v22  ;;  %v733_v55 = vsub.f32 %v7940_v12, %v665_v61 }
 0x38e   :  { %5235 = vpow2.f32 %v858_v38  ;;  %v838_v58 = vmul.f32 1.442695, %v726_v44  ;;  %v840_v43 = vmul.f32 1.442695, %v727_v28  ;;  %v850_v9 = vmul.f32 1.442695, %v732_v60 }
 0x38f   :  { %5237 = vpow2.f32 %v860_v48  ;;  %v852_v39 = vmul.f32 1.442695, %v733_v55  ;;  %v659_v30 = vpop.xlane.xlu1 %658 }
 0x390   :  { %5239 = vpow2.f32 %v838_v58  ;;  %v728_v8 = vsub.f32 %v7941_v21, %v659_v30  ;;  %v729_v57 = vsub.f32 %v7942_v53, %v659_v30 }
 0x391   :  { %v6246_v7 = vpop.eup %5219  ;;  %5241 = vpow2.f32 %v840_v43 }
 0x392   :  { %v6248_v10 = vpop.eup %5221  ;;  %5243 = vpow2.f32 %v850_v9  ;;  %v842_v41 = vmul.f32 1.442695, %v728_v8  ;;  %v844_v34 = vmul.f32 1.442695, %v729_v57 }
 0x393   :  { %5245 = vpow2.f32 %v852_v39  ;;  %v960_v18 = vadd.f32 %v6248_v10, %v6246_v7 }
 0x394   :  { %5247 = vpow2.f32 %v842_v41 }
 0x395   :  { %v6252_v19 = vpop.eup %5223  ;;  %5249 = vpow2.f32 %v844_v34  ;;  %961 = vadd.xlane.f32.xlu0 %v960_v18 }
 0x396   :  { %v6254_v62 = vpop.eup %5225 }
 0x397   :  { %v6256_v22 = vpop.eup %5227  ;;  %v954_v38 = vadd.f32 %v6254_v62, %v6252_v19 }
 0x398   :  { %v6260_v48 = vpop.eup %5229 }
 0x399   :  { %v6262_v23 = vpop.eup %5231  ;;  %955 = vadd.xlane.f32.xlu0 %v954_v38  ;;  %v963_v61 = vadd.f32 %v6260_v48, %v6256_v22 }
 0x39a   :  { %7943 = vst [vmem:[#allocation21_spill] sm:$0xff] %v6262_v23  ;;  %v6266_v44 = vpop.eup %5233 }
 0x39b   :  { %v6268_v28 = vpop.eup %5235  ;;  %964 = vadd.xlane.f32.xlu1 %v963_v61  ;;  %v948_v60 = vadd.f32 %v6266_v44, %v6262_v23 }
 0x39c   :  { %v6272_v12 = vpop.eup %5237 }
 0x39d   :  { %v6274_v55 = vpop.eup %5239  ;;  %949 = vadd.xlane.f32.xlu0 %v948_v60  ;;  %v957_v58 = vadd.f32 %v6272_v12, %v6268_v28 }
 0x39e   :  { %7944 = vst [vmem:[#allocation22_spill] sm:$0xff] %v6274_v55  ;;  %v6278_v43 = vpop.eup %5241 }
 0x39f   :  { %7945 = vst [vmem:[#allocation20_spill] sm:$0xff] %v6278_v43  ;;  %v6280_v9 = vpop.eup %5243  ;;  %958 = vadd.xlane.f32.xlu1 %v957_v58  ;;  %v942_v39 = vadd.f32 %v6278_v43, %v6274_v55 }
 0x3a0   :  { %v6284_v30 = vpop.eup %5245 }
 0x3a1   :  { %v6286_v21 = vpop.eup %5247  ;;  %943 = vadd.xlane.f32.xlu0 %v942_v39  ;;  %v951_v8 = vadd.f32 %v6284_v30, %v6280_v9 }
 0x3a2   :  { %7946 = vst [vmem:[#allocation17_spill] sm:$0xff] %v6286_v21  ;;  %v6290_v53 = vpop.eup %5249 }
 0x3a3   :  { %952 = vadd.xlane.f32.xlu1 %v951_v8  ;;  %v945_v57 = vadd.f32 %v6290_v53, %v6286_v21 }
 0x3a7   :  { %946 = vadd.xlane.f32.xlu1 %v945_v57 }
 0x3de   :  { %v914_v41 = vpop.xlane.xlu0 %913 }
 0x3df   :  { %5251 = vrcp.f32 %v914_v41 }
 0x3e2   :  { %v650_v34 = vpop.xlane.xlu0 %649 }
 0x3e3   :  { %v722_v18 = vsub.f32 %v5929_v56, %v650_v34  ;;  %v723_v38 = vsub.f32 %v5931_v59, %v650_v34 }
 0x3e4   :  { %v917_v61 = vpop.xlane.xlu1 %916 }
 0x3e5   :  { %v830_v60 = vmul.f32 1.442695, %v722_v18  ;;  %v832_v58 = vmul.f32 1.442695, %v723_v38  ;;  %5253 = vrcp.f32 %v917_v61 }
 0x3e6   :  { %v908_v39 = vpop.xlane.xlu0 %907 }
 0x3e7   :  { %5255 = vpow2.f32 %v830_v60 }
 0x3e8   :  { %5257 = vpow2.f32 %v832_v58  ;;  %v653_v55 = vpop.xlane.xlu1 %652 }
 0x3e9   :  { %v724_v8 = vsub.f32 %v5935_v63, %v653_v55  ;;  %v725_v21 = vsub.f32 %v5937_v3, %v653_v55  ;;  %5259 = vrcp.f32 %v908_v39 }
 0x3ea   :  { %v644_v57 = vpop.xlane.xlu0 %643 }
 0x3eb   :  { %v834_v43 = vmul.f32 1.442695, %v724_v8  ;;  %v836_v41 = vmul.f32 1.442695, %v725_v21  ;;  %v718_v23 = vsub.f32 %v5917_v11, %v644_v57  ;;  %v719_v56 = vsub.f32 %v5919_v14, %v644_v57 }
 0x3ec   :  { %v911_v59 = vpop.xlane.xlu1 %910  ;;  %v5252_v61 = vpop.eup %5251 }
 0x3ed   :  { %5261 = vpow2.f32 %v834_v43  ;;  %v822_v34 = vmul.f32 1.442695, %v718_v23  ;;  %v824_v18 = vmul.f32 1.442695, %v719_v56  ;;  %v1027_v14 = vmul.f32 %v5252_v61, %v6100_v47 }
 0x3ee   :  { %5263 = vpow2.f32 %v836_v41  ;;  %v902_v38 = vpop.xlane.xlu0 %901 }
 0x3ef   :  { %5265 = vpow2.f32 %v822_v34 }
 0x3f0   :  { %5267 = vpow2.f32 %v824_v18  ;;  %v647_v63 = vpop.xlane.xlu1 %646 }
 0x3f1   :  { %5269 = vrcp.f32 %v911_v59  ;;  %v720_v3 = vsub.f32 %v5923_v16, %v647_v63  ;;  %v721_v55 = vsub.f32 %v5925_v52, %v647_v63  ;;  %v1026_v16 = vmul.f32 %v5252_v61, %v6097_v15 }
 0x3f2   :  { %v5254_v21 = vpop.eup %5253  ;;  %v638_v11 = vpop.xlane.xlu0 %637  ;;  %5271 = vrcp.f32 %v902_v38 }
 0x3f3   :  { %v826_v60 = vmul.f32 1.442695, %v720_v3  ;;  %v828_v58 = vmul.f32 1.442695, %v721_v55  ;;  %v714_v23 = vsub.f32 %v5903_v4, %v638_v11  ;;  %v715_v43 = vsub.f32 %v5905_v5, %v638_v11 }
 0x3f4   :  { %v6305_v39 = vpop.eup %5255  ;;  %v905_v8 = vpop.xlane.xlu1 %904  ;;  %v1029_v57 = vmul.f32 %v5254_v21, %v6114_v51  ;;  %v1028_v52 = vmul.f32 %v5254_v21, %v6110_v13 }
 0x3f5   :  { %v6310_v41 = vpop.eup %5257  ;;  %5273 = vpow2.f32 %v826_v60  ;;  %v814_v47 = vmul.f32 1.442695, %v714_v23  ;;  %v816_v56 = vmul.f32 1.442695, %v715_v43 }
 0x3f6   :  { %5275 = vpow2.f32 %v828_v58  ;;  %v1079_v59 = vpack.c.bf16 %v1029_v57, %v1027_v14  ;;  %v896_v4 = vpop.xlane.xlu0 %895  ;;  %v1078_v34 = vpack.c.bf16 %v1028_v52, %v1026_v16  ;;  %v936_v5 = vadd.f32 %v6310_v41, %v6305_v39  ;;  %v5260_v15 = vpop.eup %5259 }
 0x3f7   :  { %5277 = vpow2.f32 %v814_v47  ;;  %v1022_v16 = vmul.f32 %v5260_v15, %v6106_v17 }
 0x3f8   :  { %5279 = vpow2.f32 %v816_v56  ;;  %1096 = vmatprep.subr.bf16.mxu0 %v1079_v59  ;;  %v641_v51 = vpop.xlane.xlu1 %640  ;;  %937 = vadd.xlane.f32.xlu0 %v936_v5 }
 0x3f9   :  { %5281 = vrcp.f32 %v905_v8  ;;  %1097 = vmatpush1.bf16.xpose.msra.mxu0 %v1078_v34  ;;  %v716_v13 = vsub.f32 %v7923_v0, %v641_v51  ;;  %v717_v18 = vsub.f32 %v7922_v27, %v641_v51  ;;  %v1023_v8 = vmul.f32 %v5260_v15, %v6108_v50 }
 0x3fa   :  { %v6316_v38 = vpop.eup %5261  ;;  %v632_v61 = vpop.xlane.xlu0 %631  ;;  %5283 = vrcp.f32 %v896_v4 }
 0x3fb   :  { %v6318_v63 = vpop.eup %5263  ;;  %v818_v3 = vmul.f32 1.442695, %v716_v13  ;;  %v820_v55 = vmul.f32 1.442695, %v717_v18  ;;  %v710_v21 = vsub.f32 %v7925_v26, %v632_v61  ;;  %v711_v11 = vsub.f32 %v7924_v25, %v632_v61 }
 0x3fc   :  { %v6322_v14 = vpop.eup %5265  ;;  %v899_v60 = vpop.xlane.xlu1 %898  ;;  %v939_v0 = vadd.f32 %v6318_v63, %v6316_v38 }
 0x3fd   :  { %v6326_v58 = vpop.eup %5267  ;;  %5285 = vpow2.f32 %v818_v3  ;;  %v806_v27 = vmul.f32 1.442695, %v710_v21  ;;  %v808_v23 = vmul.f32 1.442695, %v711_v11 }
 0x3fe   :  { %v5270_v43 = vpop.eup %5269  ;;  %5287 = vpow2.f32 %v820_v55  ;;  %940 = vadd.xlane.f32.xlu1 %v939_v0  ;;  %v890_v26 = vpop.xlane.xlu0 %889  ;;  %v930_v25 = vadd.f32 %v6326_v58, %v6322_v14 }
 0x3ff   :  { %5289 = vpow2.f32 %v806_v27  ;;  %v1025_v57 = vmul.f32 %v5270_v43, %v6128_v31  ;;  %v1024_v52 = vmul.f32 %v5270_v43, %v6124_v37  ;;  %v5272_v56 = vpop.eup %5271 }
 0x400   :  { %5291 = vpow2.f32 %v808_v23  ;;  %v635_v47 = vpop.xlane.xlu1 %634  ;;  %931 = vadd.xlane.f32.xlu0 %v930_v25  ;;  %v1018_v21 = vmul.f32 %v5272_v56, %v6130_v45 }
 0x401   :  { %5293 = vrcp.f32 %v899_v60  ;;  %v1077_v59 = vpack.c.bf16 %v1025_v57, %v1023_v8  ;;  %v1076_v4 = vpack.c.bf16 %v1024_v52, %v1022_v16  ;;  %v712_v50 = vsub.f32 %v7928_v42, %v635_v47 }
 0x402   :  { %v6335_v34 = vpop.eup %5273  ;;  %v713_v5 = vsub.f32 %v7927_v6, %v635_v47  ;;  %v884_v51 = vpop.xlane.xlu0 %883  ;;  %5295 = vrcp.f32 %v890_v26  ;;  %v1019_v6 = vmul.f32 %v5272_v56, %v6134_v32 }
 0x403   :  { %v6338_v13 = vpop.eup %5275  ;;  %1098 = vmatprep.subr.bf16.mxu0 %v1077_v59  ;;  %v810_v17 = vmul.f32 1.442695, %v712_v50  ;;  %5297 = vrcp.f32 %v884_v51 }
 0x404   :  { %v6340_v37 = vpop.eup %5277  ;;  %1099 = vmatpush1.bf16.xpose.msra.mxu0 %v1076_v4  ;;  %v812_v31 = vmul.f32 1.442695, %v713_v5  ;;  %v893_v15 = vpop.xlane.xlu1 %892  ;;  %v933_v18 = vadd.f32 %v6338_v13, %v6335_v34 }
 0x405   :  { %v6344_v42 = vpop.eup %5279  ;;  %5299 = vpow2.f32 %v810_v17 }
 0x406   :  { %v5282_v61 = vpop.eup %5281  ;;  %5301 = vpow2.f32 %v812_v31  ;;  %934 = vadd.xlane.f32.xlu1 %v933_v18  ;;  %v924_v3 = vadd.f32 %v6344_v42, %v6340_v37  ;;  %v878_v25 = vpop.xlane.xlu0 %877 }
 0x407   :  { %5303 = vrcp.f32 %v893_v15  ;;  %v1021_v55 = vmul.f32 %v5282_v61, %v6150_v29  ;;  %v1020_v11 = vmul.f32 %v5282_v61, %v6146_v36  ;;  %v5284_v0 = vpop.eup %5283 }
 0x408   :  { %v887_v60 = vpop.xlane.xlu1 %886  ;;  %925 = vadd.xlane.f32.xlu0 %v924_v3  ;;  %v1015_v57 = vmul.f32 %v5284_v0, %v6158_v20  ;;  %v1014_v47 = vmul.f32 %v5284_v0, %v6153_v54 }
 0x409   :  { %v1075_v27 = vpack.c.bf16 %v1021_v55, %v1019_v6  ;;  %v1074_v23 = vpack.c.bf16 %v1020_v11, %v1018_v21  ;;  %5305 = vrcp.f32 %v887_v60  ;;  %v7947_v55 = vld [vmem:[#allocation7_spill] sm:$0xff]  ;;  %v7948_v11 = vld [vmem:[#allocation10_spill] sm:$0xff] }
 0x40a   :  { %v6352_v43 = vpop.eup %5285  ;;  %v872_v61 = vpop.xlane.xlu0 %871 }
 0x40b   :  { %v6354_v8 = vpop.eup %5287  ;;  %1100 = vmatprep.subr.bf16.mxu0 %v1075_v27 }
 0x40c   :  { %v6356_v32 = vpop.eup %5289  ;;  %1101 = vmatpush1.bf16.xpose.msra.mxu0 %v1074_v23  ;;  %v881_v26 = vpop.xlane.xlu1 %880  ;;  %v927_v45 = vadd.f32 %v6354_v8, %v6352_v43  ;;  %v7949_v23 = vld [vmem:[#allocation8_spill] sm:$0xff] }
 0x40d   :  { %v6360_v29 = vpop.eup %5291  ;;  %5307 = vrcp.f32 %v881_v26 }
 0x40e   :  { %v5294_v36 = vpop.eup %5293  ;;  %928 = vadd.xlane.f32.xlu1 %v927_v45  ;;  %v918_v16 = vadd.f32 %v6360_v29, %v6356_v32  ;;  %5309 = vrcp.f32 %v878_v25  ;;  %v7950_v45 = vld [vmem:[#allocation11_spill] sm:$0xff] }
 0x40f   :  { %v1017_v52 = vmul.f32 %v5294_v36, %v6174_v46  ;;  %v1016_v56 = vmul.f32 %v5294_v36, %v6169_v35  ;;  %v5296_v59 = vpop.eup %5295 }
 0x410   :  { %919 = vadd.xlane.f32.xlu0 %v918_v16  ;;  %v5298_v4 = vpop.eup %5297  ;;  %v875_v31 = vpop.xlane.xlu1 %874  ;;  %v1011_v54 = vmul.f32 %v5296_v59, %v6180_v1  ;;  %v1010_v6 = vmul.f32 %v5296_v59, %v6176_v2  ;;  %v7951_v2 = vld [vmem:[#allocation9_spill] sm:$0xff] }
 0x411   :  { %v1073_v50 = vpack.c.bf16 %v1017_v52, %v1015_v57  ;;  %v1072_v5 = vpack.c.bf16 %v1016_v56, %v1014_v47  ;;  %5311 = vrcp.f32 %v875_v31  ;;  %v1007_v21 = vmul.f32 %v5298_v4, %v7947_v55  ;;  %v7952_v57 = vld [vmem:[#allocation15_spill] sm:$0xff]  ;;  %v6384_v47 = vpop.f32.mrf.mxu0 }
 0x412   :  { %v6368_v51 = vpop.eup %5299  ;;  %5313 = vrcp.f32 %v872_v61  ;;  %v1006_v25 = vmul.f32 %v5298_v4, %v7951_v2  ;;  %v7954_v31 = vld [vmem:[#allocation3_spill] sm:$0xff]  ;;  %v7956_v61 = vld [vmem:[#allocation16_spill] sm:$0xff] }
 0x413   :  { %v6370_v17 = vpop.eup %5301  ;;  %1102 = vmatprep.subr.bf16.mxu0 %v1073_v50 }
 0x414   :  { %v5304_v20 = vpop.eup %5303  ;;  %1103 = vmatpush1.bf16.xpose.msra.mxu0 %v1072_v5  ;;  %v921_v46 = vadd.f32 %v6370_v17, %v6368_v51 }
 0x415   :  { %v1013_v35 = vmul.f32 %v5304_v20, %v6188_v40  ;;  %v1012_v15 = vmul.f32 %v5304_v20, %v6184_v24  ;;  %v7953_v20 = vld [vmem:[#allocation25_spill] sm:$0xff] }
 0x416   :  { %v5306_v18 = vpop.eup %5305  ;;  %922 = vadd.xlane.f32.xlu1 %v921_v46  ;;  %v249_v46 = vmul.f32 %v7954_v31, %v7953_v20 }
 0x417   :  { %v1071_v3 = vpack.c.bf16 %v1013_v35, %v1011_v54  ;;  %v1009_v60 = vmul.f32 %v5306_v18, %v7948_v11  ;;  %v1070_v0 = vpack.c.bf16 %v1012_v15, %v1010_v6  ;;  %v1008_v26 = vmul.f32 %v5306_v18, %v7949_v23  ;;  %v7955_v35 = vld [vmem:[#allocation12_spill] sm:$0xff]  ;;  %v6389_v15 = vpop.f32.mrf.mxu0 }
 0x419   :  { %1104 = vmatprep.subr.bf16.mxu0 %v1071_v3  ;;  %v1069_v27 = vpack.c.bf16 %v1009_v60, %v1007_v21  ;;  %v1068_v52 = vpack.c.bf16 %v1008_v26, %v1006_v25  ;;  %v208_v55 = vpop.f32.mrf.mxu0  ;;  %v7957_v21 = vld [vmem:[#allocation13_spill] sm:$0xff] }
 0x41a   :  { %v5308_v1 = vpop.eup %5307 }
 0x41b   :  { %v5310_v40 = vpop.eup %5309  ;;  %v1005_v36 = vmul.f32 %v5308_v1, %v7950_v45  ;;  %v1004_v4 = vmul.f32 %v5308_v1, %v7955_v35  ;;  %v6395_v1 = vpop.f32.mrf.mxu1  ;;  %v7958_v45 = vld [vmem:[#allocation14_spill] sm:$0xff] }
 0x41c   :  { %1105 = vmatpush1.bf16.xpose.msra.mxu0 %v1070_v0  ;;  %v1003_v16 = vmul.f32 %v5310_v40, %v7952_v57  ;;  %v1002_v6 = vmul.f32 %v5310_v40, %v7956_v61  ;;  %v209_v0 = vpop.f32.mrf.mxu0 }
 0x41d   :  { %1106 = vmatprep.subr.bf16.mxu0 %v1069_v27 }
 0x41e   :  { %v962_v24 = vpop.xlane.xlu0 %961  ;;  %v1067_v56 = vpack.c.bf16 %v1005_v36, %v1003_v16  ;;  %v5312_v59 = vpop.eup %5311  ;;  %v1066_v60 = vpack.c.bf16 %v1004_v4, %v1002_v6 }
 0x41f   :  { %5315 = vrcp.f32 %v962_v24  ;;  %v5314_v54 = vpop.eup %5313  ;;  %v1001_v18 = vmul.f32 %v5312_v59, %v6228_v49  ;;  %v1000_v26 = vmul.f32 %v5312_v59, %v6224_v33  ;;  %v6399_v36 = vpop.f32.mrf.mxu1 }
 0x420   :  { %v999_v11 = vmul.f32 %v5314_v54, %v7957_v21  ;;  %v998_v40 = vmul.f32 %v5314_v54, %v7958_v45 }
 0x421   :  { %v6404_v33 = vpop.f32.mrf.mxu1 }
 0x422   :  { %v956_v50 = vpop.xlane.xlu0 %955  ;;  %v1065_v27 = vpack.c.bf16 %v1001_v18, %v999_v11  ;;  %v1064_v25 = vpack.c.bf16 %v1000_v26, %v998_v40  ;;  %v7963_v40 = vld [vmem:[#allocation22_spill] sm:$0xff] }
 0x423   :  { %v6409_v35 = vpop.f32.mrf.mxu1 }
 0x424   :  { %1107 = vmatpush1.bf16.xpose.msra.mxu0 %v1068_v52  ;;  %v965_v5 = vpop.xlane.xlu1 %964  ;;  %7959 = vst [vmem:[#allocation18_spill] sm:$0xff] %v6409_v35 }
 0x425   :  { %1108 = vmatprep.subr.bf16.mxu0 %v1067_v56  ;;  %5317 = vrcp.f32 %v965_v5 }
 0x426   :  { %262 = vperm.xlu0 %5099, %v249_v46   ;;  %5319 = vrcp.f32 %v956_v50  ;;  %v950_v23 = vpop.xlane.xlu0 %949 }
 0x427   :  { %290 = vperm.xlu1 %5098, %v7953_v20  }
 0x428   :  { %v959_v3 = vpop.xlane.xlu1 %958 }
 0x429   :  { %5321 = vrcp.f32 %v959_v3 }
 0x42a   :  { %v944_v20 = vpop.xlane.xlu0 %943 }
 0x42c   :  { %1109 = vmatpush1.bf16.xpose.msra.mxu0 %v1066_v60  ;;  %v953_v24 = vpop.xlane.xlu1 %952  ;;  %v5316_v49 = vpop.eup %5315 }
 0x42d   :  { %1110 = vmatprep.subr.bf16.mxu0 %v1065_v27  ;;  %5323 = vrcp.f32 %v953_v24  ;;  %v1059_v57 = vmul.f32 %v5316_v49, %v6248_v10  ;;  %v1058_v31 = vmul.f32 %v5316_v49, %v6246_v7  ;;  %v7960_v27 = vld [vmem:[#allocation21_spill] sm:$0xff] }
 0x42e   :  { %5325 = vrcp.f32 %v950_v23  ;;  %v7962_v49 = vld [vmem:[#allocation17_spill] sm:$0xff] }
 0x430   :  { %v947_v56 = vpop.xlane.xlu1 %946 }
 0x431   :  { %5327 = vrcp.f32 %v947_v56 }
 0x432   :  { %v5318_v2 = vpop.eup %5317  ;;  %5329 = vrcp.f32 %v944_v20 }
 0x433   :  { %v1061_v16 = vmul.f32 %v5318_v2, %v6260_v48  ;;  %v5320_v52 = vpop.eup %5319  ;;  %v1060_v50 = vmul.f32 %v5318_v2, %v6256_v22  ;;  %v4781_v22 = vpop.f32.mrf.mxu1 }
 0x434   :  { %1111 = vmatpush1.bf16.xpose.msra.mxu0 %v1064_v25  ;;  %v1055_v46 = vmul.f32 %v5320_v52, %v6254_v62  ;;  %v1054_v6 = vmul.f32 %v5320_v52, %v6252_v19  ;;  %v7840_v52 = vmov 0.0  }
 0x435   :  { %v1095_v5 = vpack.c.bf16 %v1061_v16, %v1059_v57  ;;  %v1094_v54 = vpack.c.bf16 %v1060_v50, %v1058_v31  ;;  %v4782_v3 = vpop.f32.mrf.mxu1  ;;  %4937 = vmatprep.subr.bf16.mxu1 %v7840_v52  ;;  %4939 = vmatprep.mubr.msk.bf16.mxu1 %vm5685_vm3, %v7840_v52 }
 0x436   :  { %v5322_v59 = vpop.eup %5321  ;;  %v6415_v11 = vadd.f32 %v4782_v3, %v4781_v22 }
 0x437   :  { %1112 = vmatprep.subr.bf16.mxu0 %v1095_v5  ;;  %v1057_v10 = vmul.f32 %v5322_v59, %v6272_v12  ;;  %v1056_v61 = vmul.f32 %v5322_v59, %v6268_v28  ;;  %v4784_v57 = vpop.f32.mrf.mxu1 }
 0x438   :  { %v1445_v19 = vsel %vm1444_vm2, %v6415_v11, 0.0  ;;  %v1458_v16 = vmul.f32 %v6415_v11, %v6415_v11 }
 0x439   :  { %v1093_v48 = vpack.c.bf16 %v1057_v10, %v1055_v46  ;;  %v1092_v12 = vpack.c.bf16 %v1056_v61, %v1054_v6  ;;  %v4785_v56 = vpop.f32.mrf.mxu1 }
 0x43a   :  { %v5324_v4 = vpop.eup %5323  ;;  %v1459_v50 = vsel %vm1444_vm2, %v1458_v16, 0.0  ;;  %v4786_v5 = vadd.f32 %v4785_v56, %v4784_v57 }
 0x43b   :  { %v5326_v18 = vpop.eup %5325  ;;  %v1053_v7 = vmul.f32 %v5324_v4, %v6284_v30  ;;  %v1052_v0 = vmul.f32 %v5324_v4, %v6280_v9  ;;  %v6428_v9 = vld [vmem:[%s7783_s1 + $0x38] sm:$0xff] }
 0x43c   :  { %1113 = vmatpush2.bf16.xpose.msra.mxu0 %v1094_v54  ;;  %v1051_v62 = vmul.f32 %v5326_v18, %v6266_v44  ;;  %v1050_v30 = vmul.f32 %v5326_v18, %v7960_v27  ;;  %v7961_v44 = vld [vmem:[#allocation20_spill] sm:$0xff]  ;;  %v1771_v59 = vmax.f32 %v4786_v5, 0.0 }
 0x43d   :  { %1114 = vmatprep.subr.bf16.mxu0 %v1093_v48 }
 0x43e   :  { %v1091_v55 = vpack.c.bf16 %v1053_v7, %v1051_v62  ;;  %v5328_v21 = vpop.eup %5327  ;;  %v1090_v23 = vpack.c.bf16 %v1052_v0, %v1050_v30  ;;  %v1772_v20 = vpack.c.bf16 %v1771_v59, %v1771_v59 }
 0x43f   :  { %v5330_v60 = vpop.eup %5329  ;;  %v1049_v28 = vmul.f32 %v5328_v21, %v6290_v53  ;;  %v1048_v45 = vmul.f32 %v5328_v21, %v7962_v49  ;;  %v7964_v53 = vmov 9  }
 0x440   :  { %v1047_v24 = vmul.f32 %v5330_v60, %v7961_v44  ;;  %v1046_v2 = vmul.f32 %v5330_v60, %v7963_v40  ;;  %v1777_v31 = vsel %vm153_vm0, %v1772_v20, 0 }
 0x441   :  { %4938 = vmatpush3.bf16.msra.mxu1 %v1777_v31 }
 0x442   :  { %v1089_v26 = vpack.c.bf16 %v1049_v28, %v1047_v24  ;;  %v1088_v25 = vpack.c.bf16 %v1048_v45, %v1046_v2  ;;  %4943 = vmatprep.subr.bf16.mxu1 %v7840_v52 }
 0x444   :  { %1115 = vmatpush2.bf16.xpose.msra.mxu0 %v1092_v12 }
 0x445   :  { %1116 = vmatprep.subr.bf16.mxu0 %v1091_v55  ;;  %1460 = vadd.xlane.f32.xlu0 %v1459_v50 }
 0x44b   :  { %1446 = vadd.xlane.f32.xlu1 %v1445_v19 }
 0x44c   :  { %1117 = vmatpush2.bf16.xpose.msra.mxu0 %v1090_v23  ;;  %v7965_v23 = vld [vmem:[#allocation4_spill] sm:$0xff] }
 0x44d   :  { %1118 = vmatprep.subr.bf16.mxu0 %v1089_v26 }
 0x454   :  { %1119 = vmatpush2.bf16.xpose.msra.mxu0 %v1088_v25 }
 0x45c   :  { %1507 = vperm.xlu1 %5098, %v6428_v9  }
 0x460   :  { %5100 = vset.pattern.permute.xlu1 %v7964_v53 }
 0x481   :  { %v938_v46 = vpop.xlane.xlu0 %937 }
 0x482   :  { %5331 = vrcp.f32 %v938_v46 }
 0x487   :  { %v941_v10 = vpop.xlane.xlu1 %940 }
 0x488   :  { %5333 = vrcp.f32 %v941_v10 }
 0x489   :  { %v932_v54 = vpop.xlane.xlu0 %931 }
 0x48a   :  { %5335 = vrcp.f32 %v932_v54 }
 0x48f   :  { %v935_v48 = vpop.xlane.xlu1 %934  ;;  %v5332_v22 = vpop.eup %5331 }
 0x490   :  { %5337 = vrcp.f32 %v935_v48  ;;  %v1043_v61 = vmul.f32 %v5332_v22, %v6310_v41  ;;  %v1042_v6 = vmul.f32 %v5332_v22, %v6305_v39 }
 0x491   :  { %v926_v4 = vpop.xlane.xlu0 %925 }
 0x492   :  { %5339 = vrcp.f32 %v926_v4 }
 0x495   :  { %v5334_v18 = vpop.eup %5333 }
 0x496   :  { %v1045_v7 = vmul.f32 %v5334_v18, %v6318_v63  ;;  %v1044_v62 = vmul.f32 %v5334_v18, %v6316_v38 }
 0x497   :  { %v929_v3 = vpop.xlane.xlu1 %928  ;;  %v5336_v21 = vpop.eup %5335 }
 0x498   :  { %5341 = vrcp.f32 %v929_v3  ;;  %v1087_v12 = vpack.c.bf16 %v1045_v7, %v1043_v61  ;;  %v1086_v55 = vpack.c.bf16 %v1044_v62, %v1042_v6  ;;  %v1039_v28 = vmul.f32 %v5336_v21, %v6326_v58  ;;  %v4620_v7 = vld [vmem:[%s7783_s1 + $0x40] sm:$0xff] }
 0x499   :  { %v920_v60 = vpop.xlane.xlu0 %919  ;;  %v1038_v63 = vmul.f32 %v5336_v21, %v6322_v14  ;;  %v7968_v21 = vmov 8  }
 0x49a   :  { %1120 = vmatprep.subr.bf16.mxu0 %v1087_v12  ;;  %5343 = vrcp.f32 %v920_v60 }
 0x49b   :  { %1121 = vmatpush2.bf16.xpose.msra.mxu0 %v1086_v55 }
 0x49d   :  { %v5338_v0 = vpop.eup %5337 }
 0x49e   :  { %v1041_v41 = vmul.f32 %v5338_v0, %v6338_v13  ;;  %v1040_v39 = vmul.f32 %v5338_v0, %v6335_v34 }
 0x49f   :  { %v923_v27 = vpop.xlane.xlu1 %922  ;;  %v5340_v44 = vpop.eup %5339 }
 0x4a0   :  { %5345 = vrcp.f32 %v923_v27  ;;  %v1085_v38 = vpack.c.bf16 %v1041_v41, %v1039_v28  ;;  %v1084_v30 = vpack.c.bf16 %v1040_v39, %v1038_v63  ;;  %v1035_v13 = vmul.f32 %v5340_v44, %v6344_v42 }
 0x4a1   :  { %v263_v19 = vpop.permute.xlu0 %262  ;;  %v1034_v34 = vmul.f32 %v5340_v44, %v6340_v37 }
 0x4a2   :  { %1122 = vmatprep.subr.bf16.mxu0 %v1085_v38  ;;  %v270_v24 = vsub.f32 %v6389_v15, %v263_v19  ;;  %v269_v16 = vsub.f32 %v6384_v47, %v263_v19  ;;  %v7967_v47 = vmov 0   ;;  %v31_v19 = vld [vmem:[%s7783_s1 + $0x20] sm:$0xff] }
 0x4a3   :  { %1123 = vmatpush2.bf16.xpose.msra.mxu0 %v1084_v30  ;;  %v6448_v49 = vpop.permute.xlu1 %290  ;;  %v30_v30 = vld [vmem:[%s7783_s1 + $0x18] sm:$0xff] }
 0x4a4   :  { %v277_v26 = vmul.f32 %v7965_v23, %v270_v24  ;;  %7966 = vst [vmem:[#allocation7_spill] sm:$0xff] %v6448_v49  ;;  %v276_v50 = vmul.f32 %v7965_v23, %v269_v16  ;;  %v1386_v23 = vpack.c.bf16 %v6415_v11, %v6415_v11  ;;  %v6495_v11 = vld [vmem:[%s7783_s1 + $0x48] sm:$0xff] }
 0x4a5   :  { %v5342_v58 = vpop.eup %5341 }
 0x4a6   :  { %v1037_v14 = vmul.f32 %v5342_v58, %v6354_v8  ;;  %v1036_v45 = vmul.f32 %v5342_v58, %v6352_v43  ;;  %v298_v40 = vadd.f32 %v6448_v49, %v277_v26  ;;  %v297_v20 = vadd.f32 %v6448_v49, %v276_v50 }
 0x4a7   :  { %v5344_v15 = vpop.eup %5343  ;;  %v6483_v58 = vpack.c.bf16 %v31_v19, %v30_v30 }
 0x4a8   :  { %v1083_v2 = vpack.c.bf16 %v1037_v14, %v1035_v13  ;;  %v1082_v25 = vpack.c.bf16 %v1036_v45, %v1034_v34  ;;  %v1063_v57 = vpack.c.bf16 %v298_v40, %v298_v40  ;;  %v1031_v42 = vmul.f32 %v5344_v15, %v6360_v29 }
 0x4a9   :  { %v1030_v37 = vmul.f32 %v5344_v15, %v6356_v32  ;;  %v1062_v31 = vpack.c.bf16 %v297_v20, %v297_v20  ;;  %7969 = vst [vmem:[#allocation10_spill] sm:$0xff] %v6483_v58  ;;  %v6486_v13 = vpack.c.bf16 %v4620_v7, %v6428_v9  ;;  %v1394_v14 = vsel %vm153_vm0, %v1386_v23, 0 }
 0x4aa   :  { %1124 = vmatprep.subr.bf16.mxu0 %v1083_v2  ;;  %1128 = vmatprep.mubr.bf16.mxu0 %v1063_v57 }
 0x4ab   :  { %1125 = vmatpush2.bf16.xpose.msra.mxu0 %v1082_v25  ;;  %7970 = vst [vmem:[#allocation8_spill] sm:$0xff] %v6486_v13 }
 0x4ad   :  { %v5346_v56 = vpop.eup %5345 }
 0x4ae   :  { %v1033_v8 = vmul.f32 %v5346_v56, %v6370_v17  ;;  %v1032_v43 = vmul.f32 %v5346_v56, %v6368_v51 }
 0x4b0   :  { %v1081_v5 = vpack.c.bf16 %v1033_v8, %v1031_v42  ;;  %v1080_v59 = vpack.c.bf16 %v1032_v43, %v1030_v37 }
 0x4b2   :  { %1126 = vmatprep.subr.bf16.mxu0 %v1081_v5 }
 0x4b3   :  { %1127 = vmatpush2.bf16.xpose.msra.mxu0 %v1080_v59 }
 0x4ba   :  { %1129 = vmatmul.mubr.bf16.vlgmr.msra.gmra.mxu0 %v1062_v31 }
 0x4bb   :  { %1238 = vmatprep.mubr.bf16.mxu0 %v7967_v47 }
 0x4ce   :  { %v1461_v51 = vpop.xlane.xlu0 %1460 }
 0x4cf   :  { %v1462_v4 = vrot.slane %v1461_v51, 4 }
 0x4d1   :  { %v1463_v22 = vadd.f32 %v1462_v4, %v1461_v51 }
 0x4d3   :  { %v1464_v18 = vrot.slane %v1463_v22, 2 }
 0x4d4   :  { %v1447_v46 = vpop.xlane.xlu1 %1446 }
 0x4d5   :  { %v1448_v29 = vrot.slane %v1447_v46, 4  ;;  %v1465_v61 = vadd.f32 %v1464_v18, %v1463_v22 }
 0x4d7   :  { %v1449_v10 = vadd.f32 %v1448_v29, %v1447_v46  ;;  %v1466_v12 = vrot.slane %v1465_v61, 1 }
 0x4d8   :  { %v6515_v57 = vpop.permute.xlu1 %1507 }
 0x4d9   :  { %v1450_v17 = vrot.slane %v1449_v10, 2  ;;  %v1467_v55 = vadd.f32 %v1466_v12, %v1465_v61  ;;  %7973 = vst [vmem:[#allocation15_spill] sm:$0xff] %v6515_v57 }
 0x4db   :  { %v1451_v54 = vadd.f32 %v1450_v17, %v1449_v10 }
 0x4dd   :  { %v1452_v32 = vrot.slane %v1451_v54, 1 }
 0x4df   :  { %v1453_v48 = vadd.f32 %v1452_v32, %v1451_v54 }
 0x4e1   :  { %5061 = vpush %v1453_v48 }
 0x4e2   :  { %5063 = vpush %v1467_v55 }
 0x512   :  { %s5062_s19 = spop %5061 }
 0x513   :  { %s1457_s20 = smul.f32 0.001953125, %s5062_s19  ;;  %s5064_s24 = spop %5063 }
 0x514   :  { %s1471_s25 = smul.f32 0.001953125, %s5064_s24 }
 0x515   :  { %v6466_v6 = vstv %s1457_s20  ;;  %s1472_s23 = smul.f32 %s1457_s20, %s1457_s20 }
 0x516   :  { %v1481_v62 = vmul.f32 %v4620_v7, %v6466_v6  ;;  %v1480_v3 = vmul.f32 %v6428_v9, %v6466_v6  ;;  %v6501_v9 = vpack.c.bf16 %v6495_v11, %v6495_v11 }
 0x517   :  { %s1473_s26 = ssub.f32 %s1471_s25, %s1472_s23 }
 0x518   :  { %1485 = vperm.xlu0 %5099, %v1480_v3   ;;  %1490 = vperm.xlu1 %5100, %v1481_v62   ;;  %7971 = vst [vmem:[#allocation11_spill] sm:$0xff] %v6501_v9 }
 0x519   :  { %s1474_s27 = smax.f32 %s5682_s15, %s1473_s26 }
 0x51a   :  { %s1475_s28 = sadd.f32 1e-05, %s1474_s27 }
 0x51c   :  { %5101 = vset.pattern.permute.xlu0 %v7968_v21  ;;  %v1476_v60 = vstv %s1475_s28 }
 0x51d   :  { %1512 = vperm.xlu0 %5101, %v4620_v7   ;;  %5347 = vrsqrt.f32 %v1476_v60 }
 0x52a   :  { %v5348_v0 = vpop.eup %5347 }
 0x52b   :  { %5065 = vpush %v5348_v0 }
 0x55c   :  { %s5066_s12 = spop %5065 }
 0x55d   :  { %v6517_v42 = vstv %s5066_s12 }
 0x57a   :  { %v1130_v28 = vpop.f32.mrf.mxu0 }
 0x57b   :  { %v1137_v41 = vmax.f32 %v1130_v28, 0.0 }
 0x57c   :  { %v1132_v63 = vpop.f32.mrf.mxu0 }
 0x57d   :  { %v1139_v39 = vpack.c.bf16 %v1137_v41, %v1137_v41  ;;  %v1138_v27 = vmax.f32 %v1132_v63, 0.0 }
 0x57e   :  { %v1134_v38 = vpop.f32.mrf.mxu0 }
 0x57f   :  { %v1140_v44 = vpack.c.bf16 %v1138_v27, %v1138_v27  ;;  %v1201_v26 = vsel %vm153_vm0, %v1139_v39, 0 }
 0x580   :  { %v1135_v24 = vpop.f32.mrf.mxu0 }
 0x581   :  { %4655 = vmatprep.subr.msk.bf16.mxu0 %vm153_vm0, %v1140_v44 }
 0x582   :  { %1221 = vmatpush1.bf16.msra.mxu0 %v1201_v26 }
 0x583   :  { %5049 = vmatprep.subr.msk.bf16.mxu0 %vm153_vm0, %v1386_v23 }
 0x585   :  { %4656 = vmatmul.mubr.msk.bf16.vlgmr.msra.gmra.mxu0 %vm146_vm1, %v6483_v58 }
 0x586   :  { %4910 = vmatpush3.bf16.msra.mxu0 %v1394_v14  ;;  %4911 = vmatprep.mubr.msk.bf16.mxu0 %vm146_vm1, %v6486_v13 }
 0x58d   :  { %4912 = vmatmul.mubr.msk.bf16.vlgmr.msra.gmra.mxu0 %vm146_vm1, %v6501_v9 }
 0x593   :  { %v1486_v15 = vpop.permute.xlu0 %1485  ;;  %v1491_v43 = vpop.permute.xlu1 %1490 }
 0x598   :  { %v6521_v20 = vpop.permute.xlu0 %1512 }
 0x599   :  { %7974 = vst [vmem:[#allocation25_spill] sm:$0xff] %v6521_v20 }
 0x645   :  { %v6505_v34 = vpop.f32.mrf.mxu0 }
 0x647   :  { %v6507_v45 = vpop.f32.mrf.mxu0 }
 0x649   :  { %v6509_v40 = vpop.f32.mrf.mxu0 }
 0x64b   :  { %v6511_v2 = vpop.f32.mrf.mxu0 }
 0x64c   :  { %7972 = vst [vmem:[#allocation9_spill] sm:$0xff] %v6511_v2 }
 0x64d   :  { %v6513_v25 = vpop.f32.mrf.mxu0 }
 0x64f   :  { %v1430_v16 = vpop.f32.mrf.mxu0 }
 0x650   :  { %v1498_v56 = vsub.f32 %v1430_v16, %v1486_v15 }
 0x651   :  { %v4914_v8 = vpop.f32.mrf.mxu0 }
 0x652   :  { %v1502_v37 = vmul.f32 %v6517_v42, %v1498_v56 }
 0x653   :  { %v1433_v50 = vpop.f32.mrf.mxu0 }
 0x654   :  { %v1520_v5 = vadd.f32 %v6515_v57, %v1502_v37  ;;  %v1499_v59 = vsub.f32 %v1433_v50, %v1491_v43 }
 0x656   :  { %v1523_v31 = vpack.c.bf16 %v1520_v5, %v1520_v5  ;;  %v1503_v46 = vmul.f32 %v6517_v42, %v1499_v59 }
 0x658   :  { %v1521_v29 = vadd.f32 %v6521_v20, %v1503_v46  ;;  %1525 = vxpose.xlu1.c.b16.start.end [1/1] (short) (narrow) %v1523_v31, 64 }
 0x65a   :  { %v1524_v10 = vpack.c.bf16 %v1521_v29, %v1521_v29 }
 0x65c   :  { %5050 = vmatprep.subr.msk.bf16.mxu0 %vm153_vm0, %v1524_v10  ;;  %v1554_v17 = vsel %vm153_vm0, %v1524_v10, 0 }
 0x65d   :  { %4916 = vmatpush3.bf16.msra.mxu0 %v1554_v17 }
 0x65e   :  { %4925 = vmatprep.subr.bf16.mxu0 %v7840_v52 }
 0x6ba   :  { %v1533_v54 = vpop.trf.xlu1 }
 0x6bb   :  { %4917 = vmatprep.mubr.msk.bf16.mxu0 %vm146_vm1, %v1533_v54 }
 0x6be   :  { %v1534_v32 = vpop.trf.xlu1 }
 0x6bf   :  { %4918 = vmatmul.mubr.msk.bf16.vlgmr.msra.gmra.mxu0 %vm146_vm1, %v1534_v32 }
 0x6c2   :  { %v1535_v48 = vpop.trf.xlu1 }
 0x6c3   :  { %4921 = vmatprep.mubr.msk.bf16.mxu0 %vm146_vm1, %v1535_v48 }
 0x6c6   :  { %v1536_v51 = vpop.trf.xlu1 }
 0x6c7   :  { %4922 = vmatmul.mubr.msk.bf16.gmra.mxu0 %vm146_vm1, %v1536_v51 }
 0x6c8   :  { %4933 = vmatprep.mubr.msk.bf16.mxu0 %vm5685_vm3, %v7840_v52 }
 0x77f   :  { %v4919_v4 = vpop.f32.mrf.mxu0 }
 0x780   :  { %v1627_v41 = vsel %vm1444_vm2, %v4919_v4, -inf }
 0x781   :  { %v1590_v22 = vpop.f32.mrf.mxu0 }
 0x782   :  { %v1621_v39 = vsel %vm1444_vm2, %v1590_v22, -inf }
 0x783   :  { %v4920_v18 = vpop.f32.mrf.mxu0 }
 0x784   :  { %v1630_v63 = vsel %vm1444_vm2, %v4920_v18, -inf }
 0x785   :  { %v1593_v61 = vpop.f32.mrf.mxu0 }
 0x786   :  { %v1624_v27 = vsel %vm1444_vm2, %v1593_v61, -inf }
 0x787   :  { %v4923_v7 = vpop.f32.mrf.mxu0 }
 0x788   :  { %v1639_v62 = vsel %vm1444_vm2, %v4923_v7, -inf }
 0x789   :  { %1640 = vmax.xlane.f32.xlu0 %v1639_v62  ;;  %v1606_v3 = vpop.f32.mrf.mxu0 }
 0x78a   :  { %v1633_v55 = vsel %vm1444_vm2, %v1606_v3, -inf }
 0x78b   :  { %v4924_v12 = vpop.f32.mrf.mxu0 }
 0x78c   :  { %v1642_v60 = vsel %vm1444_vm2, %v4924_v12, -inf }
 0x78d   :  { %1634 = vmax.xlane.f32.xlu0 %v1633_v55  ;;  %1643 = vmax.xlane.f32.xlu1 %v1642_v60  ;;  %v1609_v0 = vpop.f32.mrf.mxu0 }
 0x78e   :  { %v1636_v28 = vsel %vm1444_vm2, %v1609_v0, -inf }
 0x791   :  { %1637 = vmax.xlane.f32.xlu0 %v1636_v28 }
 0x795   :  { %1628 = vmax.xlane.f32.xlu0 %v1627_v41 }
 0x799   :  { %1631 = vmax.xlane.f32.xlu0 %v1630_v63 }
 0x79d   :  { %1622 = vmax.xlane.f32.xlu0 %v1621_v39  ;;  %v1482_v39 = vmul.f32 %v6495_v11, %v6466_v6 }
 0x7a1   :  { %1625 = vmax.xlane.f32.xlu0 %v1624_v27  ;;  %v4624_v27 = vld [vmem:[%s7783_s1 + $0x60] sm:$0xff] }
 0x812   :  { %v1641_v38 = vpop.xlane.xlu0 %1640 }
 0x813   :  { %v1651_v30 = vsub.f32 %v4923_v7, %v1641_v38  ;;  %v4625_v38 = vld [vmem:[%s7783_s1 + $0x68] sm:$0xff] }
 0x815   :  { %v1665_v19 = vmul.f32 1.442695, %v1651_v30  ;;  %v6564_v30 = vpack.c.bf16 %v4625_v38, %v4624_v27  ;;  %v5126_v27 = vld [vmem:[%s7785_s4 + $0x68] sm:$0xff]  }
 0x816   :  { %v1635_v44 = vpop.xlane.xlu0 %1634  ;;  %v1644_v24 = vpop.xlane.xlu1 %1643  ;;  %v5127_v38 = vld [vmem:[%s7785_s4 + $0x28] sm:$0xff]  }
 0x817   :  { %5349 = vpow2.f32 %v1665_v19  ;;  %v1649_v23 = vsub.f32 %v1606_v3, %v1635_v44  ;;  %v1652_v26 = vsub.f32 %v4924_v12, %v1644_v24  ;;  %7975 = vst [vmem:[#allocation3_spill] sm:$0xff] %v6564_v30  ;;  %4940 = vmatmul.mubr.msk.bf16.vlgmr.msra.gmra.mxu1 %vm146_vm1, %v6564_v30 }
 0x818   :  { %4945 = vmatprep.mubr.msk.bf16.mxu1 %vm5685_vm3, %v7840_v52 }
 0x819   :  { %v1661_v14 = vmul.f32 1.442695, %v1649_v23  ;;  %v1667_v15 = vmul.f32 1.442695, %v1652_v26 }
 0x81a   :  { %v1638_v16 = vpop.xlane.xlu0 %1637 }
 0x81b   :  { %5351 = vpow2.f32 %v1661_v14  ;;  %v1650_v56 = vsub.f32 %v1609_v0, %v1638_v16 }
 0x81c   :  { %5353 = vpow2.f32 %v1667_v15 }
 0x81d   :  { %v1663_v8 = vmul.f32 1.442695, %v1650_v56 }
 0x81e   :  { %v1629_v37 = vpop.xlane.xlu0 %1628 }
 0x81f   :  { %5355 = vpow2.f32 %v1663_v8  ;;  %v1647_v43 = vsub.f32 %v4919_v4, %v1629_v37 }
 0x821   :  { %v1657_v50 = vmul.f32 1.442695, %v1647_v43 }
 0x822   :  { %v1632_v5 = vpop.xlane.xlu0 %1631 }
 0x823   :  { %5357 = vpow2.f32 %v1657_v50  ;;  %v1648_v59 = vsub.f32 %v4920_v18, %v1632_v5 }
 0x824   :  { %v5350_v31 = vpop.eup %5349 }
 0x825   :  { %v1659_v46 = vmul.f32 1.442695, %v1648_v59  ;;  %v1687_v29 = vsel %vm1444_vm2, %v5350_v31, 0.0 }
 0x826   :  { %1688 = vadd.xlane.f32.xlu1 %v1687_v29  ;;  %v1623_v10 = vpop.xlane.xlu0 %1622 }
 0x827   :  { %5359 = vpow2.f32 %v1659_v46  ;;  %v1645_v17 = vsub.f32 %v1590_v22, %v1623_v10 }
 0x828   :  { %v6541_v54 = vpop.eup %5351 }
 0x829   :  { %v5354_v32 = vpop.eup %5353  ;;  %v1653_v48 = vmul.f32 1.442695, %v1645_v17  ;;  %v1681_v51 = vsel %vm1444_vm2, %v6541_v54, 0.0 }
 0x82a   :  { %1682 = vadd.xlane.f32.xlu1 %v1681_v51  ;;  %v1690_v4 = vsel %vm1444_vm2, %v5354_v32, 0.0  ;;  %v1626_v7 = vpop.xlane.xlu0 %1625 }
 0x82b   :  { %5361 = vpow2.f32 %v1653_v48  ;;  %1691 = vadd.xlane.f32.xlu0 %v1690_v4  ;;  %v1646_v18 = vsub.f32 %v1593_v61, %v1626_v7 }
 0x82c   :  { %v5356_v62 = vpop.eup %5355 }
 0x82d   :  { %v1655_v3 = vmul.f32 1.442695, %v1646_v18  ;;  %v1684_v12 = vsel %vm1444_vm2, %v5356_v62, 0.0 }
 0x82f   :  { %5363 = vpow2.f32 %v1655_v3  ;;  %1685 = vadd.xlane.f32.xlu0 %v1684_v12 }
 0x830   :  { %v5358_v22 = vpop.eup %5357 }
 0x831   :  { %v1675_v55 = vsel %vm1444_vm2, %v5358_v22, 0.0 }
 0x832   :  { %1676 = vadd.xlane.f32.xlu1 %v1675_v55 }
 0x834   :  { %v5360_v60 = vpop.eup %5359 }
 0x835   :  { %v1678_v0 = vsel %vm1444_vm2, %v5360_v60, 0.0 }
 0x836   :  { %1679 = vadd.xlane.f32.xlu0 %v1678_v0 }
 0x838   :  { %v5362_v28 = vpop.eup %5361 }
 0x839   :  { %v1669_v41 = vsel %vm1444_vm2, %v5362_v28, 0.0 }
 0x83a   :  { %1670 = vadd.xlane.f32.xlu1 %v1669_v41 }
 0x83c   :  { %v5364_v63 = vpop.eup %5363 }
 0x83d   :  { %v1672_v61 = vsel %vm1444_vm2, %v5364_v63, 0.0 }
 0x83e   :  { %1673 = vadd.xlane.f32.xlu0 %v1672_v61  ;;  %v5124_v61 = vld [vmem:[%s7785_s4 + $0x70] sm:$0xff]  }
 0x84b   :  { %1495 = vperm.xlu1 %5100, %v1482_v39   ;;  %v7977_v39 = vld [vmem:[#allocation23_spill] sm:$0xff] }
 0x854   :  { %1517 = vperm.xlu0 %5101, %v6495_v11  }
 0x8af   :  { %v1689_v6 = vpop.xlane.xlu1 %1688 }
 0x8b0   :  { %5365 = vrcp.f32 %v1689_v6  ;;  %v5128_v6 = vld [vmem:[%s7785_s4 + $0x60] sm:$0xff]  }
 0x8b3   :  { %v1683_v19 = vpop.xlane.xlu1 %1682 }
 0x8b4   :  { %v1692_v11 = vpop.xlane.xlu0 %1691 }
 0x8b5   :  { %5367 = vrcp.f32 %v1692_v11  ;;  %v5129_v11 = vld [vmem:[%s7785_s4 + $0x20] sm:$0xff]  }
 0x8b6   :  { %5369 = vrcp.f32 %v1683_v19  ;;  %v5130_v19 = vld [vmem:[%s7785_s4 + $0x58] sm:$0xff]  }
 0x8b8   :  { %v1686_v44 = vpop.xlane.xlu0 %1685 }
 0x8b9   :  { %5371 = vrcp.f32 %v1686_v44  ;;  %v5131_v44 = vld [vmem:[%s7785_s4 + $0x18] sm:$0xff]  }
 0x8bb   :  { %v1677_v24 = vpop.xlane.xlu1 %1676 }
 0x8bd   :  { %v5366_v26 = vpop.eup %5365 }
 0x8be   :  { %v1707_v15 = vmul.f32 %v5366_v26, %v5350_v31  ;;  %v5134_v26 = vld [vmem:[%s7785_s4 + $0x48] sm:$0xff]  }
 0x8bf   :  { %v1680_v23 = vpop.xlane.xlu0 %1679 }
 0x8c0   :  { %5373 = vrcp.f32 %v1680_v23  ;;  %v5133_v23 = vld [vmem:[%s7785_s4 + $0x10] sm:$0xff]  }
 0x8c1   :  { %5375 = vrcp.f32 %v1677_v24  ;;  %v5132_v24 = vld [vmem:[%s7785_s4 + $0x50] sm:$0xff]  }
 0x8c2   :  { %v5368_v14 = vpop.eup %5367 }
 0x8c3   :  { %v1708_v16 = vmul.f32 %v5368_v14, %v5354_v32  ;;  %v5370_v56 = vpop.eup %5369  ;;  %v1671_v43 = vpop.xlane.xlu1 %1670  ;;  %v5135_v14 = vld [vmem:[%s7785_s4 + $0x8] sm:$0xff]  }
 0x8c4   :  { %v1705_v46 = vmul.f32 %v5370_v56, %v6541_v54  ;;  %v7978_v56 = vld [vmem:[#allocation24_spill] sm:$0xff] }
 0x8c5   :  { %v1713_v8 = vpack.c.bf16 %v1708_v16, %v1707_v15  ;;  %v5136_v15 = vld [vmem:[%s7785_s4 + $0x40] sm:$0xff]  }
 0x8c6   :  { %v5372_v37 = vpop.eup %5371  ;;  %v5137_v16 = vld [vmem:[%s7785_s4] sm:$0xff]  }
 0x8c7   :  { %v1727_v50 = vsel %vm1444_vm2, %v1713_v8, 0  ;;  %v1674_v5 = vpop.xlane.xlu0 %1673  ;;  %v1706_v59 = vmul.f32 %v5372_v37, %v5356_v62  ;;  %v1496_v3 = vpop.permute.xlu1 %1495 }
 0x8c8   :  { %4926 = vmatpush3.bf16.xpose.msra.mxu0 %v1727_v50  ;;  %5377 = vrcp.f32 %v1674_v5  ;;  %v1500_v12 = vsub.f32 %v6513_v25, %v1496_v3  ;;  %v4622_v50 = vld [vmem:[%s7783_s1 + $0x50] sm:$0xff]  ;;  %v4623_v5 = vld [vmem:[%s7783_s1 + $0x58] sm:$0xff] }
 0x8c9   :  { %5379 = vrcp.f32 %v1671_v43  ;;  %4927 = vmatprep.subr.bf16.mxu0 %v7840_v52  ;;  %v1712_v29 = vpack.c.bf16 %v1706_v59, %v1705_v46  ;;  %v5140_v46 = vld [vmem:[%s7786_s3 + $0x34] ss:$8 sps:$4 sm:$0xff]  }
 0x8cb   :  { %v1724_v31 = vsel %vm1444_vm2, %v1712_v29, 0 }
 0x8cd   :  { %v5374_v10 = vpop.eup %5373 }
 0x8ce   :  { %v5376_v17 = vpop.eup %5375  ;;  %v1704_v32 = vmul.f32 %v5374_v10, %v5360_v60  ;;  %v5122_v60 = vld [vmem:[%s7785_s4 + $0x78] sm:$0xff]  }
 0x8cf   :  { %v1703_v48 = vmul.f32 %v5376_v17, %v5358_v22  ;;  %v6581_v0 = vpop.permute.xlu0 %1517  ;;  %v1504_v22 = vmul.f32 %v6517_v42, %v1500_v12  ;;  %v5125_v42 = vld [vmem:[%s7785_s4 + $0x30] sm:$0xff]   ;;  %v6647_v17 = vpack.c.bf16 %v4623_v5, %v4622_v50 }
 0x8d0   :  { %4928 = vmatpush3.bf16.xpose.msra.mxu0 %v1724_v31  ;;  %7976 = vst [vmem:[#allocation12_spill] sm:$0xff] %v6581_v0 }
 0x8d1   :  { %4929 = vmatprep.subr.bf16.mxu0 %v7840_v52  ;;  %v1711_v51 = vpack.c.bf16 %v1704_v32, %v1703_v48  ;;  %7979 = vst [vmem:[#allocation16_spill] sm:$0xff] %v6647_v17  ;;  %v5138_v32 = vld [vmem:[%s7786_s3 + $0x30] ss:$8 sps:$4 sm:$0xff]   ;;  %v5143_v48 = vld [vmem:[%s7786_s3 + $0x24] ss:$8 sps:$4 sm:$0xff]  }
 0x8d3   :  { %v1721_v18 = vsel %vm1444_vm2, %v1711_v51, 0  ;;  %v5141_v51 = vld [vmem:[%s7786_s3 + $0x20] ss:$8 sps:$4 sm:$0xff]  }
 0x8d5   :  { %v5378_v4 = vpop.eup %5377 }
 0x8d6   :  { %v5380_v7 = vpop.eup %5379  ;;  %v1702_v62 = vmul.f32 %v5378_v4, %v5364_v63  ;;  %v1522_v63 = vadd.f32 %v6581_v0, %v1504_v22  ;;  %v5146_v4 = vld [vmem:[%s7786_s3 + $0x14] ss:$8 sps:$4 sm:$0xff]  }
 0x8d7   :  { %v1701_v54 = vmul.f32 %v5380_v7, %v5362_v28  ;;  %v5123_v28 = vld [vmem:[%s7785_s4 + $0x38] sm:$0xff]  }
 0x8d8   :  { %4930 = vmatpush3.bf16.xpose.msra.mxu0 %v1721_v18  ;;  %v1709_v25 = vpack.c.bf16 %v1522_v63, %v1522_v63  ;;  %v5144_v7 = vld [vmem:[%s7786_s3 + $0x10] ss:$8 sps:$4 sm:$0xff]   ;;  %v5149_v18 = vld [vmem:[%s7786_s3 + $0x4] ss:$8 sps:$4 sm:$0xff]  }
 0x8d9   :  { %4931 = vmatprep.subr.bf16.mxu0 %v7840_v52  ;;  %v1710_v55 = vpack.c.bf16 %v1702_v62, %v1701_v54  ;;  %v5147_v62 = vld [vmem:[%s7786_s3] ss:$8 sps:$4 sm:$0xff]  }
 0x8db   :  { %v1718_v41 = vsel %vm1444_vm2, %v1710_v55, 0 }
 0x8e0   :  { %4932 = vmatpush3.bf16.xpose.msra.mxu0 %v1718_v41 }
 0x8e1   :  { %4804 = vmatprep.subr.bf16.mxu0 %v5122_v60 }
 0x8e7   :  { %4934 = vmatmul.mubr.msk.bf16.vlgmr.msra.gmra.mxu0 %vm1444_vm2, %v1709_v25 }
 0x8e8   :  { %4805 = vmatpush3.bf16.msra.mxu0 %v5123_v28  ;;  %2086 = vmatprep.mubr.bf16.mxu0 %v7977_v39 }
 0x8e9   :  { %4806 = vmatprep.subr.bf16.mxu0 %v5124_v61 }
 0x8ec   :  { %4807 = vmatpush3.bf16.msra.mxu0 %v5125_v42 }
 0x8ed   :  { %4808 = vmatprep.subr.bf16.mxu0 %v5126_v27  ;;  %v1813_v27 = vpop.f32.mrf.mxu1 }
 0x8f0   :  { %4809 = vmatpush3.bf16.msra.mxu0 %v5127_v38  ;;  %v4626_v38 = vld [vmem:[%s7783_s1 + $0x70] sm:$0xff] }
 0x8f1   :  { %4810 = vmatprep.subr.bf16.mxu0 %v5128_v6  ;;  %v4941_v6 = vpop.f32.mrf.mxu1 }
 0x8f4   :  { %4811 = vmatpush3.bf16.msra.mxu0 %v5129_v11  ;;  %v1816_v11 = vpop.f32.mrf.mxu1 }
 0x8f5   :  { %4812 = vmatprep.subr.bf16.mxu0 %v5130_v19 }
 0x8f6   :  { %v4942_v19 = vpop.f32.mrf.mxu1 }
 0x8f8   :  { %4813 = vmatpush3.bf16.msra.mxu0 %v5131_v44 }
 0x8f9   :  { %4814 = vmatprep.subr.bf16.mxu0 %v5132_v24 }
 0x8fc   :  { %4815 = vmatpush3.bf16.msra.mxu0 %v5133_v23 }
 0x8fd   :  { %4816 = vmatprep.subr.bf16.mxu0 %v5134_v26 }
 0x900   :  { %4817 = vmatpush3.bf16.msra.mxu0 %v5135_v14 }
 0x901   :  { %4818 = vmatprep.subr.bf16.mxu0 %v5136_v15 }
 0x904   :  { %4819 = vmatpush3.bf16.msra.mxu0 %v5137_v16 }
 0x905   :  { %4967 = vmatprep.subr.bf16.mxu0 %v7840_v52 }
 0x907   :  { %2087 = vmatmul.mubr.bf16.vlgmr.msra.gmra.mxu0 %v7978_v56 }
 0x908   :  { %4969 = vmatprep.mubr.msk.bf16.mxu0 %vm5685_vm3, %v7840_v52 }
 0x9a7   :  { %v1763_v8 = vpop.f32.mrf.mxu0 }
 0x9a8   :  { %v1769_v37 = vmax.f32 %v1763_v8, 0.0 }
 0x9a9   :  { %v4935_v43 = vpop.f32.mrf.mxu0 }
 0x9aa   :  { %v1770_v59 = vpack.c.bf16 %v1769_v37, %v1769_v37 }
 0x9ab   :  { %v1766_v29 = vpop.f32.mrf.mxu0 }
 0x9ac   :  { %v1824_v10 = vsel %vm153_vm0, %v1770_v59, 0 }
 0x9ad   :  { %v4936_v31 = vpop.f32.mrf.mxu0  ;;  %4944 = vmatpush3.bf16.msra.mxu1 %v1824_v10  ;;  %v4627_v10 = vld [vmem:[%s7783_s1 + $0x78] sm:$0xff] }
 0x9ae   :  { %1919 = vmatprep.subr.bf16.mxu1 %v5140_v46 }
 0x9b0   :  { %4946 = vmatmul.mubr.msk.bf16.vlgmr.msra.gmra.mxu1 %vm146_vm1, %v6647_v17 }
 0x9b1   :  { %1920 = vmatpush1.bf16.msra.mxu1 %v5138_v32  ;;  %1943 = vmatprep.mubr.bf16.mxu1 %v7967_v47 }
 0x9b2   :  { %1921 = vmatprep.subr.bf16.mxu1 %v5143_v48 }
 0x9b5   :  { %1922 = vmatpush1.bf16.msra.mxu1 %v5141_v51 }
 0x9b6   :  { %1923 = vmatprep.subr.bf16.mxu1 %v5146_v4  ;;  %v6683_v4 = vpack.c.bf16 %v4627_v10, %v4626_v38 }
 0x9b8   :  { %7980 = vst [vmem:[#allocation13_spill] sm:$0xff] %v6683_v4 }
 0x9b9   :  { %1924 = vmatpush1.bf16.msra.mxu1 %v5144_v7 }
 0x9ba   :  { %1925 = vmatprep.subr.bf16.mxu1 %v5149_v18 }
 0x9bd   :  { %1926 = vmatpush1.bf16.msra.mxu1 %v5147_v62  ;;  %v6692_v62 = vld [vmem:[%s7783_s1 + $0x80] sm:$0xff] }
 0x9c7   :  { %v4820_v3 = vpop.f32.mrf.mxu0 }
 0x9c9   :  { %v4821_v54 = vpop.f32.mrf.mxu0 }
 0x9ca   :  { %v4822_v12 = vadd.f32 %v4821_v54, %v4820_v3  ;;  %v6697_v3 = vpack.c.bf16 %v6692_v62, %v6692_v62 }
 0x9cb   :  { %v4823_v55 = vpop.f32.mrf.mxu0 }
 0x9cc   :  { %v2095_v60 = vpack.c.bf16 %v4822_v12, %v4822_v12  ;;  %v2154_v22 = vsel %vm2153_vm4, %v4822_v12, 0.0  ;;  %v2167_v41 = vmul.f32 %v4822_v12, %v4822_v12  ;;  %7981 = vst [vmem:[#allocation14_spill] sm:$0xff] %v6697_v3 }
 0x9cd   :  { %2155 = vadd.xlane.f32.xlu1 %v2154_v22  ;;  %v4824_v63 = vpop.f32.mrf.mxu0 }
 0x9ce   :  { %v2168_v28 = vsel %vm2153_vm4, %v2167_v41, 0.0  ;;  %v4825_v25 = vadd.f32 %v4824_v63, %v4823_v55  ;;  %5051 = vmatprep.subr.msk.bf16.mxu1 %vm153_vm0, %v2095_v60  ;;  %v2103_v18 = vsel %vm153_vm0, %v2095_v60, 0  ;;  %v1241_v41 = vadd.f32 %v6505_v34, %v6395_v1 }
 0x9cf   :  { %2169 = vadd.xlane.f32.xlu0 %v2168_v28  ;;  %v1243_v28 = vadd.f32 %v6507_v45, %v6399_v36 }
 0x9d0   :  { %v2369_v61 = vmax.f32 %v4825_v25, 0.0 }
 0x9d2   :  { %v2370_v42 = vpack.c.bf16 %v2369_v61, %v2369_v61 }
 0x9d4   :  { %v2375_v39 = vsel %vm153_vm0, %v2370_v42, 0  ;;  %v1245_v42 = vadd.f32 %v6509_v40, %v6404_v33 }
 0x9d5   :  { %4968 = vmatpush3.bf16.msra.mxu0 %v2375_v39 }
 0x9e5   :  { %2216 = vperm.xlu0 %5101, %v4626_v38  }
 0xa56   :  { %v2156_v44 = vpop.xlane.xlu1 %2155 }
 0xa57   :  { %v2157_v24 = vrot.slane %v2156_v44, 4 }
 0xa58   :  { %v2170_v23 = vpop.xlane.xlu0 %2169 }
 0xa59   :  { %v2158_v26 = vadd.f32 %v2157_v24, %v2156_v44  ;;  %v2171_v14 = vrot.slane %v2170_v23, 4 }
 0xa5b   :  { %v2172_v15 = vadd.f32 %v2171_v14, %v2170_v23  ;;  %v2159_v16 = vrot.slane %v2158_v26, 2 }
 0xa5d   :  { %v2160_v56 = vadd.f32 %v2159_v16, %v2158_v26  ;;  %v2173_v8 = vrot.slane %v2172_v15, 2 }
 0xa5f   :  { %v2161_v37 = vrot.slane %v2160_v56, 1  ;;  %v2174_v43 = vadd.f32 %v2173_v8, %v2172_v15 }
 0xa60   :  { %v6724_v33 = vpop.permute.xlu0 %2216 }
 0xa61   :  { %v2162_v50 = vadd.f32 %v2161_v37, %v2160_v56  ;;  %v2175_v5 = vrot.slane %v2174_v43, 1  ;;  %7983 = vst [vmem:[#allocation20_spill] sm:$0xff] %v6724_v33 }
 0xa63   :  { %5067 = vpush %v2162_v50  ;;  %v2176_v59 = vadd.f32 %v2175_v5, %v2174_v43 }
 0xa65   :  { %5069 = vpush %v2176_v59 }
 0xa70   :  { %v1860_v46 = vpop.f32.mrf.mxu1 }
 0xa71   :  { %v1861_v32 = vadd.f32 %v1860_v46, %v1813_v27 }
 0xa72   :  { %v4947_v29 = vpop.f32.mrf.mxu1 }
 0xa74   :  { %v1863_v31 = vpop.f32.mrf.mxu1 }
 0xa75   :  { %v1864_v48 = vadd.f32 %v1863_v31, %v1816_v11 }
 0xa76   :  { %v4948_v51 = vpop.f32.mrf.mxu1 }
 0xa77   :  { %v1867_v7 = vpack.c.bf16 %v1864_v48, %v1861_v32 }
 0xa79   :  { %4690 = vmatmul.mubr.msk.bf16.vlgmr.msra.gmra.mxu1 %vm1444_vm2, %v1867_v7 }
 0xa7a   :  { %4950 = vmatpush3.bf16.msra.mxu1 %v2103_v18  ;;  %4951 = vmatprep.mubr.msk.bf16.mxu1 %vm146_vm1, %v6683_v4 }
 0xa7b   :  { %4955 = vmatprep.subr.bf16.mxu1 %v7840_v52 }
 0xa81   :  { %4952 = vmatmul.mubr.msk.bf16.vlgmr.msra.gmra.mxu1 %vm146_vm1, %v6697_v3 }
 0xa82   :  { %4957 = vmatprep.mubr.msk.bf16.mxu1 %vm5685_vm3, %v7840_v52 }
 0xa94   :  { %s5068_s9 = spop %5067 }
 0xa95   :  { %s2166_s10 = smul.f32 0.0078125, %s5068_s9 }
 0xa96   :  { %s5070_s11 = spop %5069 }
 0xa97   :  { %s2181_s12 = smul.f32 %s2166_s10, %s2166_s10  ;;  %v2188_v54 = vstv %s2166_s10 }
 0xa98   :  { %v2189_v12 = vmul.f32 %v4626_v38, %v2188_v54  ;;  %s2180_s13 = smul.f32 0.0078125, %s5070_s11  ;;  %v2190_v55 = vmul.f32 %v4627_v10, %v2188_v54 }
 0xa9a   :  { %2194 = vperm.xlu1 %5100, %v2189_v12   ;;  %s2182_s14 = ssub.f32 %s2180_s13, %s2181_s12 }
 0xa9c   :  { %s2183_s16 = smax.f32 %s5682_s15, %s2182_s14 }
 0xa9d   :  { %s2184_s17 = sadd.f32 1e-05, %s2183_s16 }
 0xa9e   :  { %2199 = vperm.xlu1 %5100, %v2190_v55  }
 0xa9f   :  { %v2185_v60 = vstv %s2184_s17 }
 0xaa0   :  { %5381 = vrsqrt.f32 %v2185_v60 }
 0xaa2   :  { %5102 = vset.pattern.permute.xlu1 %v7968_v21 }
 0xaa3   :  { %2221 = vperm.xlu1 %5102, %v4627_v10   ;;  %v2191_v10 = vmul.f32 %v6692_v62, %v2188_v54  ;;  %v6747_v54 = vld [vmem:[%s7782_s0 + $0x20] sm:$0xff] }
 0xaad   :  { %v5382_v22 = vpop.eup %5381 }
 0xaae   :  { %5071 = vpush %v5382_v22 }
 0xadf   :  { %s5072_s18 = spop %5071 }
 0xae0   :  { %v6721_v36 = vstv %s5072_s18 }
 0xb15   :  { %v2195_v38 = vpop.permute.xlu1 %2194 }
 0xb19   :  { %v2200_v45 = vpop.permute.xlu1 %2199 }
 0xb1e   :  { %v6727_v26 = vpop.permute.xlu1 %2221 }
 0xb1f   :  { %7984 = vst [vmem:[#allocation17_spill] sm:$0xff] %v6727_v26 }
 0xb39   :  { %v1945_v63 = vpop.f32.mrf.mxu1 }
 0xb3a   :  { %v6709_v25 = vadd.f32 %v1945_v63, %v1241_v41  ;;  %v6752_v41 = vld [vmem:[%s7782_s0 + $0x28] sm:$0xff]  ;;  %v2623_v63 = vmul.f32 %v6747_v54, %v6747_v54 }
 0xb3b   :  { %v1947_v61 = vpop.f32.mrf.mxu1 }
 0xb3c   :  { %v6713_v39 = vadd.f32 %v1947_v61, %v1243_v28  ;;  %v2624_v28 = vmul.f32 %v6752_v41, %v6752_v41 }
 0xb3d   :  { %v1949_v27 = vpop.f32.mrf.mxu1 }
 0xb3e   :  { %v6715_v21 = vadd.f32 %v1949_v27, %v1245_v42  ;;  %v2625_v61 = vadd.f32 %v2624_v28, %v2623_v63 }
 0xb3f   :  { %v6717_v6 = vpop.f32.mrf.mxu1 }
 0xb40   :  { %7982 = vst [vmem:[#allocation21_spill] sm:$0xff] %v6717_v6 }
 0xb41   :  { %v6719_v11 = vpop.f32.mrf.mxu1 }
 0xb43   :  { %v2139_v1 = vpop.f32.mrf.mxu1 }
 0xb44   :  { %v2207_v34 = vsub.f32 %v2139_v1, %v2195_v38 }
 0xb45   :  { %v4954_v19 = vpop.f32.mrf.mxu1 }
 0xb46   :  { %v2211_v44 = vmul.f32 %v6721_v36, %v2207_v34 }
 0xb47   :  { %v2142_v40 = vpop.f32.mrf.mxu1 }
 0xb48   :  { %v2229_v24 = vadd.f32 %v6724_v33, %v2211_v44  ;;  %v2208_v23 = vsub.f32 %v2142_v40, %v2200_v45 }
 0xb4a   :  { %v2232_v14 = vpack.c.bf16 %v2229_v24, %v2229_v24  ;;  %v2212_v15 = vmul.f32 %v6721_v36, %v2208_v23 }
 0xb4c   :  { %v2230_v16 = vadd.f32 %v6727_v26, %v2212_v15  ;;  %2234 = vxpose.xlu0.c.b16.start.end [1/1] (short) (narrow) %v2232_v14, 16 }
 0xb4e   :  { %v2233_v56 = vpack.c.bf16 %v2230_v16, %v2230_v16  ;;  %v4631_v16 = vld [vmem:[%s7783_s1 + $0x98] sm:$0xff] }
 0xb50   :  { %v2254_v8 = vsel %vm153_vm0, %v2233_v56, 0 }
 0xb51   :  { %4956 = vmatpush3.bf16.msra.mxu1 %v2254_v8 }
 0xb52   :  { %4961 = vmatprep.subr.bf16.mxu1 %v7840_v52 }
 0xb55   :  { %5103 = vset.pattern.permute.xlu0 %v7964_v53 }
 0xbae   :  { %v2242_v37 = vpop.trf.xlu0 }
 0xbaf   :  { %4958 = vmatmul.mubr.msk.bf16.vlgmr.msra.gmra.mxu1 %vm146_vm1, %v2242_v37 }
 0xbb0   :  { %4963 = vmatprep.mubr.msk.bf16.mxu1 %vm5685_vm3, %v7840_v52 }
 0xc6f   :  { %v2290_v43 = vpop.f32.mrf.mxu1 }
 0xc70   :  { %v2297_v50 = vsel %vm2153_vm4, %v2290_v43, -inf }
 0xc71   :  { %2298 = vmax.xlane.f32.xlu1 %v2297_v50  ;;  %v4959_v5 = vpop.f32.mrf.mxu1 }
 0xc73   :  { %v2293_v59 = vpop.f32.mrf.mxu1 }
 0xc74   :  { %v2300_v46 = vsel %vm2153_vm4, %v2293_v59, -inf }
 0xc75   :  { %2301 = vmax.xlane.f32.xlu0 %v2300_v46  ;;  %v4960_v29 = vpop.f32.mrf.mxu1 }
 0xc8b   :  { %2204 = vperm.xlu0 %5103, %v2191_v10  }
 0xcaa   :  { %2626 = vadd.xlane.f32.xlu0 %v2625_v61 }
 0xcfa   :  { %v2299_v31 = vpop.xlane.xlu1 %2298 }
 0xcfb   :  { %v2303_v32 = vsub.f32 %v2290_v43, %v2299_v31 }
 0xcfd   :  { %v2305_v48 = vmul.f32 1.442695, %v2303_v32 }
 0xcfe   :  { %v2302_v51 = vpop.xlane.xlu0 %2301 }
 0xcff   :  { %5383 = vpow2.f32 %v2305_v48  ;;  %v2304_v7 = vsub.f32 %v2293_v59, %v2302_v51 }
 0xd01   :  { %v2307_v18 = vmul.f32 1.442695, %v2304_v7 }
 0xd03   :  { %5385 = vpow2.f32 %v2307_v18  ;;  %v5629_v18 = vld [vmem:[%s7783_s1] sm:$0xff] }
 0xd06   :  { %v2205_v38 = vpop.permute.xlu0 %2204 }
 0xd07   :  { %v2209_v34 = vsub.f32 %v6719_v11, %v2205_v38  ;;  %v2552_v38 = vpack.c.bf16 %v6752_v41, %v6752_v41 }
 0xd09   :  { %v2213_v24 = vmul.f32 %v6721_v36, %v2209_v34  ;;  %v4632_v36 = vld [vmem:[%s7783_s1 + $0xa0] sm:$0xff] }
 0xd0a   :  { %v6776_v8 = vpack.c.bf16 %v4632_v36, %v4631_v16  ;;  %v5152_v36 = vld [vmem:[%s7787_s5 + $0x4] ss:$8 sps:$4 sm:$0xff]  }
 0xd0b   :  { %2493 = vmatprep.subr.bf16.mxu0 %v5152_v36 }
 0xd0c   :  { %v5384_v12 = vpop.eup %5383  ;;  %7986 = vst [vmem:[#allocation4_spill] sm:$0xff] %v6776_v8  ;;  %4970 = vmatmul.mubr.msk.bf16.vlgmr.msra.gmra.mxu0 %vm146_vm1, %v6776_v8 }
 0xd0d   :  { %v2309_v55 = vsel %vm2153_vm4, %v5384_v12, 0.0  ;;  %2511 = vmatprep.mubr.bf16.mxu0 %v7967_v47 }
 0xd0e   :  { %2310 = vadd.xlane.f32.xlu1 %v2309_v55  ;;  %v5630_v55 = vld [vmem:[%s7783_s1 + $0x8] sm:$0xff] }
 0xd10   :  { %v5386_v60 = vpop.eup %5385 }
 0xd11   :  { %v2312_v22 = vsel %vm2153_vm4, %v5386_v60, 0.0 }
 0xd12   :  { %2313 = vadd.xlane.f32.xlu1 %v2312_v22 }
 0xd23   :  { %2226 = vperm.xlu1 %5102, %v6692_v62  }
 0xd27   :  { %5104 = vset.pattern.permute.xlu1 %v7964_v53  ;;  %v2610_v53 = vadd.f32 %v6752_v41, %v6747_v54 }
 0xd33   :  { %v2627_v37 = vpop.xlane.xlu0 %2626 }
 0xd34   :  { %v2628_v43 = vrot.slane %v2627_v37, 4 }
 0xd36   :  { %v2629_v5 = vadd.f32 %v2628_v43, %v2627_v37 }
 0xd38   :  { %v2630_v29 = vrot.slane %v2629_v5, 2 }
 0xd3a   :  { %v2631_v31 = vadd.f32 %v2630_v29, %v2629_v5 }
 0xd3c   :  { %v2632_v48 = vrot.slane %v2631_v31, 1 }
 0xd3e   :  { %v2633_v51 = vadd.f32 %v2632_v48, %v2631_v31 }
 0xd47   :  { %2611 = vadd.xlane.f32.xlu1 %v2610_v53 }
 0xd97   :  { %v2311_v62 = vpop.xlane.xlu1 %2310 }
 0xd98   :  { %5387 = vrcp.f32 %v2311_v62  ;;  %v4629_v62 = vld [vmem:[%s7783_s1 + $0x88] sm:$0xff] }
 0xd9b   :  { %v2314_v42 = vpop.xlane.xlu1 %2313 }
 0xd9c   :  { %5389 = vrcp.f32 %v2314_v42  ;;  %v4630_v42 = vld [vmem:[%s7783_s1 + $0x90] sm:$0xff] }
 0xd9f   :  { %v6761_v40 = vpop.permute.xlu1 %2226 }
 0xda0   :  { %7985 = vst [vmem:[#allocation22_spill] sm:$0xff] %v6761_v40  ;;  %v2231_v14 = vadd.f32 %v6761_v40, %v2213_v24 }
 0xda2   :  { %v2319_v15 = vpack.c.bf16 %v2231_v14, %v2231_v14  ;;  %v7990_v14 = vld [vmem:[#allocation26_spill] sm:$0xff] }
 0xda5   :  { %v5388_v27 = vpop.eup %5387 }
 0xda6   :  { %v2317_v45 = vmul.f32 %v5388_v27, %v5384_v12 }
 0xda9   :  { %v5390_v1 = vpop.eup %5389 }
 0xdaa   :  { %v2318_v19 = vmul.f32 %v5390_v1, %v5386_v60  ;;  %v2551_v1 = vpack.c.bf16 %v6747_v54, %v6747_v54 }
 0xdac   :  { %v2320_v44 = vpack.c.bf16 %v2318_v19, %v2317_v45  ;;  %v6803_v19 = vpack.c.bf16 %v4630_v42, %v4629_v62  ;;  %v2554_v24 = vsel %vm153_vm0, %v2551_v1, 0 }
 0xdae   :  { %v2325_v23 = vsel %vm2153_vm4, %v2320_v44, 0  ;;  %7988 = vst [vmem:[#allocation24_spill] sm:$0xff] %v6803_v19 }
 0xdaf   :  { %4962 = vmatpush3.bf16.xpose.msra.mxu1 %v2325_v23  ;;  %v7989_v23 = vld [vmem:[#allocation2_spill] sm:$0xff] }
 0xdb0   :  { %4973 = vmatprep.subr.bf16.mxu1 %v7840_v52 }
 0xdb6   :  { %4964 = vmatmul.mubr.msk.bf16.vlgmr.msra.gmra.mxu1 %vm2153_vm4, %v2319_v15 }
 0xdb7   :  { %4975 = vmatprep.mubr.msk.bf16.mxu1 %vm5685_vm3, %v7840_v52 }
 0xdcc   :  { %v2411_v15 = vpop.f32.mrf.mxu0 }
 0xdd0   :  { %v2612_v11 = vpop.xlane.xlu1 %2611 }
 0xdd1   :  { %v2613_v56 = vrot.slane %v2612_v11, 4 }
 0xdd3   :  { %v2614_v50 = vadd.f32 %v2613_v56, %v2612_v11  ;;  %v4971_v11 = vpop.f32.mrf.mxu0  ;;  %v5150_v56 = vld [vmem:[%s7787_s5] ss:$8 sps:$4 sm:$0xff]  }
 0xdd4   :  { %2494 = vmatpush1.bf16.msra.mxu0 %v5150_v56 }
 0xdd5   :  { %v2615_v59 = vrot.slane %v2614_v50, 2  ;;  %v2414_v16 = vpop.f32.mrf.mxu0 }
 0xdd7   :  { %v2616_v46 = vadd.f32 %v2615_v59, %v2614_v50  ;;  %v4972_v37 = vpop.f32.mrf.mxu0 }
 0xdd9   :  { %v2617_v10 = vrot.slane %v2616_v46, 1 }
 0xddb   :  { %v2618_v32 = vadd.f32 %v2617_v10, %v2616_v46 }
 0xddd   :  { %5073 = vpush %v2618_v32 }
 0xdde   :  { %5075 = vpush %v2633_v51 }
 0xe0e   :  { %s5074_s27 = spop %5073 }
 0xe0f   :  { %s2622_s28 = smul.f32 0.00048828125, %s5074_s27  ;;  %s5076_s29 = spop %5075 }
 0xe10   :  { %s2637_s10 = smul.f32 0.00048828125, %s5076_s29 }
 0xe11   :  { %s2638_s30 = smul.f32 %s2622_s28, %s2622_s28  ;;  %v6781_v7 = vstv %s2622_s28 }
 0xe12   :  { %7987 = vst [vmem:[#allocation23_spill] sm:$0xff] %v6781_v7  ;;  %v2646_v12 = vmul.f32 %v5629_v18, %v6781_v7  ;;  %v2647_v60 = vmul.f32 %v5630_v55, %v6781_v7 }
 0xe13   :  { %s2639_s13 = ssub.f32 %s2637_s10, %s2638_s30 }
 0xe14   :  { %2651 = vperm.xlu1 %5104, %v2646_v12  }
 0xe15   :  { %s2640_s14 = smax.f32 %s5682_s15, %s2639_s13 }
 0xe16   :  { %s2641_s16 = sadd.f32 1e-05, %s2640_s14 }
 0xe18   :  { %2656 = vperm.xlu1 %5104, %v2647_v60   ;;  %v2642_v22 = vstv %s2641_s16 }
 0xe19   :  { %5391 = vrsqrt.f32 %v2642_v22 }
 0xe26   :  { %v5392_v63 = vpop.eup %5391 }
 0xe27   :  { %5077 = vpush %v5392_v63  ;;  %v7992_v63 = vld [vmem:[#allocation5_spill] sm:$0xff] }
 0xe58   :  { %s5078_s25 = spop %5077 }
 0xe59   :  { %v6822_v51 = vstv %s5078_s25 }
 0xe5a   :  { %7991 = vst [vmem:[#allocation2_spill] sm:$0xff] %v6822_v51 }
 0xe76   :  { %v2361_v28 = vpop.f32.mrf.mxu1 }
 0xe77   :  { %v2367_v61 = vmax.f32 %v2361_v28, 0.0 }
 0xe78   :  { %v4965_v53 = vpop.f32.mrf.mxu1 }
 0xe79   :  { %v2368_v27 = vpack.c.bf16 %v2367_v61, %v2367_v61 }
 0xe7a   :  { %v2364_v34 = vpop.f32.mrf.mxu1 }
 0xe7b   :  { %v2422_v45 = vsel %vm153_vm0, %v2368_v27, 0 }
 0xe7c   :  { %v4966_v44 = vpop.f32.mrf.mxu1  ;;  %4974 = vmatpush3.bf16.msra.mxu1 %v2422_v45  ;;  %v7993_v45 = vld [vmem:[#allocation6_spill] sm:$0xff] }
 0xe7d   :  { %4720 = vmatprep.subr.msk.bf16.mxu1 %vm153_vm0, %v2552_v38 }
 0xe7f   :  { %4976 = vmatmul.mubr.msk.bf16.vlgmr.msra.gmra.mxu1 %vm146_vm1, %v6803_v19 }
 0xe80   :  { %2574 = vmatpush1.bf16.msra.mxu1 %v2554_v24  ;;  %2591 = vmatprep.mubr.bf16.mxu1 %v7967_v47 }
 0xe87   :  { %4721 = vmatmul.mubr.msk.bf16.vlgmr.msra.gmra.mxu1 %vm146_vm1, %v7989_v23 }
 0xe88   :  { %2601 = vmatprep.mubr.bf16.mxu1 %v7967_v47 }
 0xe8f   :  { %4722 = vmatmul.mubr.msk.bf16.gmra.mxu1 %vm146_vm1, %v7990_v14  ;;  %v2652_v29 = vpop.permute.xlu1 %2651 }
 0xe93   :  { %v2657_v60 = vpop.permute.xlu1 %2656 }
 0xf3f   :  { %v2458_v43 = vpop.f32.mrf.mxu1 }
 0xf40   :  { %v2459_v59 = vadd.f32 %v2458_v43, %v2411_v15 }
 0xf41   :  { %v4977_v50 = vpop.f32.mrf.mxu1 }
 0xf43   :  { %v2461_v5 = vpop.f32.mrf.mxu1 }
 0xf44   :  { %v2462_v46 = vadd.f32 %v2461_v5, %v2414_v16 }
 0xf45   :  { %v4978_v10 = vpop.f32.mrf.mxu1 }
 0xf46   :  { %v2465_v31 = vpack.c.bf16 %v2462_v46, %v2459_v59 }
 0xf47   :  { %v2593_v32 = vpop.f32.mrf.mxu1 }
 0xf48   :  { %v2664_v48 = vsub.f32 %v2593_v32, %v2652_v29  ;;  %4715 = vmatmul.mubr.msk.bf16.vlgmr.msra.gmra.mxu0 %vm2153_vm4, %v2465_v31 }
 0xf49   :  { %v2595_v18 = vpop.f32.mrf.mxu1  ;;  %2805 = vmatprep.mubr.bf16.mxu0 %v7967_v47 }
 0xf4a   :  { %v2671_v12 = vmul.f32 %v6822_v51, %v2664_v48  ;;  %v2665_v55 = vsub.f32 %v2595_v18, %v2652_v29 }
 0xf4b   :  { %v2597_v22 = vpop.f32.mrf.mxu1 }
 0xf4c   :  { %v2677_v28 = vadd.f32 %v2671_v12, %v7992_v63  ;;  %v2672_v61 = vmul.f32 %v6822_v51, %v2665_v55  ;;  %v2666_v53 = vsub.f32 %v2597_v22, %v2657_v60 }
 0xf4d   :  { %v2599_v62 = vpop.f32.mrf.mxu1 }
 0xf4e   :  { %v2683_v42 = vpack.c.bf16 %v2677_v28, %v2677_v28  ;;  %v2678_v27 = vadd.f32 %v2672_v61, %v7992_v63  ;;  %v2673_v38 = vmul.f32 %v6822_v51, %v2666_v53  ;;  %v2667_v1 = vsub.f32 %v2599_v62, %v2657_v60 }
 0xf50   :  { %v2684_v34 = vpack.c.bf16 %v2678_v27, %v2678_v27  ;;  %v2679_v44 = vadd.f32 %v2673_v38, %v7993_v45  ;;  %v2674_v24 = vmul.f32 %v6822_v51, %v2667_v1  ;;  %2687 = vxpose.xlu0.c.b16.start.end [1/1] (short) %v2683_v42, 128  ;;  %v6895_v1 = vld [vmem:[%s7782_s0 + $0x38] sm:$0xff] }
 0xf51   :  { %v7067_v0 = vpack.c.bf16 %v6895_v1, %v6752_v41 }
 0xf52   :  { %v2685_v23 = vpack.c.bf16 %v2679_v44, %v2679_v44  ;;  %v2680_v14 = vadd.f32 %v2674_v24, %v7993_v45  ;;  %2703 = vxpose.xlu1.c.b16.start.end [1/1] (short) %v2684_v34, 128  ;;  %v6900_v34 = vld [vmem:[%s7782_s0 + $0x30] sm:$0xff]  ;;  %v3526_v44 = vmax.f32 %v6895_v1, 0.0 }
 0xf53   :  { %v3525_v24 = vmax.f32 %v6900_v34, 0.0  ;;  %8005 = vst [vmem:[#allocation33_spill] sm:$0xff] %v7067_v0 }
 0xf54   :  { %v2686_v15 = vpack.c.bf16 %v2680_v14, %v2680_v14  ;;  %v2768_v11 = vsel %vm153_vm0, %v2685_v23, 0  ;;  %v3528_v14 = vpack.c.bf16 %v3526_v44, %v3526_v44  ;;  %v5639_v44 = vld [vmem:[%s7784_s2 + $0x58] sm:$0xff]  }
 0xf56   :  { %4723 = vmatprep.subr.msk.bf16.mxu0 %vm153_vm0, %v2686_v15  ;;  %v3527_v15 = vpack.c.bf16 %v3525_v24, %v3525_v24 }
 0xf57   :  { %2788 = vmatpush1.bf16.msra.mxu0 %v2768_v11 }
 0xf58   :  { %4740 = vmatprep.subr.msk.bf16.mxu0 %vm153_vm0, %v3528_v14  ;;  %v5640_v14 = vld [vmem:[%s7784_s2 + $0x18] sm:$0xff]  }
 0xfb2   :  { %v2695_v16 = vpop.trf.xlu0 }
 0xfb3   :  { %4724 = vmatmul.mubr.msk.bf16.vlgmr.msra.gmra.mxu0 %vm146_vm1, %v2695_v16  ;;  %v3530_v16 = vsel %vm153_vm0, %v3527_v15, 0 }
 0xfb4   :  { %2815 = vmatprep.mubr.bf16.mxu0 %v7967_v47  ;;  %v2711_v46 = vpop.trf.xlu1  ;;  %3550 = vmatpush1.bf16.msra.mxu0 %v3530_v16  ;;  %v5641_v16 = vld [vmem:[%s7784_s2 + $0x50] sm:$0xff]  }
 0xfb6   :  { %v2696_v36 = vpop.trf.xlu0 }
 0xfb8   :  { %v2712_v29 = vpop.trf.xlu1 }
 0xfba   :  { %v2697_v56 = vpop.trf.xlu0 }
 0xfbb   :  { %4725 = vmatmul.mubr.msk.bf16.gmra.mxu0 %vm146_vm1, %v2696_v36 }
 0xfbc   :  { %2825 = vmatprep.mubr.bf16.mxu0 %v7967_v47  ;;  %v2713_v10 = vpop.trf.xlu1 }
 0xfbe   :  { %v2698_v37 = vpop.trf.xlu0 }
 0xfc0   :  { %v2714_v32 = vpop.trf.xlu1 }
 0xfc2   :  { %v2699_v43 = vpop.trf.xlu0 }
 0xfc3   :  { %4726 = vmatmul.mubr.msk.bf16.gmra.mxu0 %vm146_vm1, %v2697_v56  ;;  %v5631_v56 = vld [vmem:[%s7784_s2 + $0x78] sm:$0xff]  }
 0xfc4   :  { %2835 = vmatprep.mubr.bf16.mxu0 %v7967_v47  ;;  %v2715_v22 = vpop.trf.xlu1  ;;  %4837 = vmatprep.subr.bf16.mxu0 %v5631_v56 }
 0xfc6   :  { %v2700_v50 = vpop.trf.xlu0 }
 0xfc8   :  { %v2716_v63 = vpop.trf.xlu1 }
 0xfca   :  { %v2701_v5 = vpop.trf.xlu0 }
 0xfcb   :  { %4727 = vmatmul.mubr.msk.bf16.gmra.mxu0 %vm146_vm1, %v2698_v37 }
 0xfcc   :  { %2845 = vmatprep.mubr.bf16.mxu0 %v7967_v47 }
 0xfce   :  { %v2702_v59 = vpop.trf.xlu0 }
 0xfd3   :  { %4728 = vmatmul.mubr.msk.bf16.gmra.mxu0 %vm146_vm1, %v2699_v43  ;;  %v7999_v43 = vld [vmem:[#allocation19_spill] sm:$0xff] }
 0xfd4   :  { %2855 = vmatprep.mubr.bf16.mxu0 %v7967_v47 }
 0xfdb   :  { %4729 = vmatmul.mubr.msk.bf16.gmra.mxu0 %vm146_vm1, %v2700_v50  ;;  %v5632_v50 = vld [vmem:[%s7784_s2 + $0x38] sm:$0xff]  }
 0xfdc   :  { %2865 = vmatprep.mubr.bf16.mxu0 %v7967_v47 }
 0xfe3   :  { %4730 = vmatmul.mubr.msk.bf16.gmra.mxu0 %vm146_vm1, %v2701_v5 }
 0xfe4   :  { %2875 = vmatprep.mubr.bf16.mxu0 %v7967_v47 }
 0xfeb   :  { %4731 = vmatmul.mubr.msk.bf16.gmra.mxu0 %vm146_vm1, %v2702_v59  ;;  %v5633_v59 = vld [vmem:[%s7784_s2 + $0x70] sm:$0xff]  }
 0xfec   :  { %2885 = vmatprep.mubr.bf16.mxu0 %v7967_v47 }
 0xff3   :  { %4732 = vmatmul.mubr.msk.bf16.gmra.mxu0 %vm146_vm1, %v2711_v46 }
 0xff4   :  { %2895 = vmatprep.mubr.bf16.mxu0 %v7967_v47 }
 0xffb   :  { %4733 = vmatmul.mubr.msk.bf16.gmra.mxu0 %vm146_vm1, %v2712_v29  ;;  %v5634_v29 = vld [vmem:[%s7784_s2 + $0x30] sm:$0xff]  }
 0xffc   :  { %2905 = vmatprep.mubr.bf16.mxu0 %v7967_v47 }
0x1003   :  { %4734 = vmatmul.mubr.msk.bf16.gmra.mxu0 %vm146_vm1, %v2713_v10 }
0x1004   :  { %2915 = vmatprep.mubr.bf16.mxu0 %v7967_v47 }
0x1008   :  { %v2513_v31 = vpop.f32.mrf.mxu0 }
0x1009   :  { %v6858_v48 = vadd.f32 %v2513_v31, %v6709_v25  ;;  %v2717_v25 = vpop.trf.xlu1  ;;  %v5635_v31 = vld [vmem:[%s7784_s2 + $0x68] sm:$0xff]  }
0x100a   :  { %v2515_v18 = vpop.f32.mrf.mxu0 }
0x100b   :  { %7994 = vst [vmem:[#allocation26_spill] sm:$0xff] %v6858_v48  ;;  %v6861_v12 = vadd.f32 %v2515_v18, %v6713_v39  ;;  %4735 = vmatmul.mubr.msk.bf16.gmra.mxu0 %vm146_vm1, %v2714_v32  ;;  %v5636_v18 = vld [vmem:[%s7784_s2 + $0x28] sm:$0xff]  }
0x100c   :  { %v2517_v55 = vpop.f32.mrf.mxu0  ;;  %2925 = vmatprep.mubr.bf16.mxu0 %v7967_v47 }
0x100d   :  { %7995 = vst [vmem:[#allocation5_spill] sm:$0xff] %v6861_v12  ;;  %v6866_v60 = vadd.f32 %v2517_v55, %v6715_v21  ;;  %v2718_v39 = vpop.trf.xlu1 }
0x100e   :  { %v6876_v21 = vpop.f32.mrf.mxu0 }
0x100f   :  { %7996 = vst [vmem:[#allocation6_spill] sm:$0xff] %v6866_v60  ;;  %7997 = vst [vmem:[#allocation27_spill] sm:$0xff] %v6876_v21 }
0x1013   :  { %4736 = vmatmul.mubr.msk.bf16.gmra.mxu0 %vm146_vm1, %v2715_v22  ;;  %v5637_v22 = vld [vmem:[%s7784_s2 + $0x60] sm:$0xff]  }
0x1014   :  { %2935 = vmatprep.mubr.bf16.mxu0 %v7967_v47 }
0x101b   :  { %4737 = vmatmul.mubr.msk.bf16.gmra.mxu0 %vm146_vm1, %v2716_v63 }
0x101c   :  { %2945 = vmatprep.mubr.bf16.mxu0 %v7967_v47 }
0x1023   :  { %4738 = vmatmul.mubr.msk.bf16.gmra.mxu0 %vm146_vm1, %v2717_v25  ;;  %v5638_v25 = vld [vmem:[%s7784_s2 + $0x20] sm:$0xff]  }
0x1024   :  { %2955 = vmatprep.mubr.bf16.mxu0 %v7967_v47 }
0x102b   :  { %4739 = vmatmul.mubr.msk.bf16.gmra.mxu0 %vm146_vm1, %v2718_v39 }
0x102c   :  { %3567 = vmatprep.mubr.bf16.mxu0 %v7967_v47 }
0x1033   :  { %4741 = vmatmul.mubr.msk.bf16.vlgmr.msra.gmra.mxu0 %vm146_vm1, %v7999_v43  ;;  %v5642_v43 = vld [vmem:[%s7784_s2 + $0x10] sm:$0xff]  }
0x1034   :  { %4838 = vmatpush3.bf16.msra.mxu0 %v5632_v50  ;;  %3659 = vmatprep.mubr.bf16.mxu0 %v7067_v0 }
0x1035   :  { %4839 = vmatprep.subr.bf16.mxu0 %v5633_v59  ;;  %v5643_v59 = vld [vmem:[%s7784_s2 + $0x48] sm:$0xff]  }
0x1038   :  { %4840 = vmatpush3.bf16.msra.mxu0 %v5634_v29 }
0x1039   :  { %4841 = vmatprep.subr.bf16.mxu0 %v5635_v31  ;;  %v5644_v31 = vld [vmem:[%s7784_s2 + $0x8] sm:$0xff]  }
0x103c   :  { %4842 = vmatpush3.bf16.msra.mxu0 %v5636_v18 }
0x103d   :  { %4843 = vmatprep.subr.bf16.mxu0 %v5637_v22  ;;  %v5645_v22 = vld [vmem:[%s7784_s2 + $0x40] sm:$0xff]  }
0x1040   :  { %4844 = vmatpush3.bf16.msra.mxu0 %v5638_v25 }
0x1041   :  { %4845 = vmatprep.subr.bf16.mxu0 %v5639_v44  ;;  %v5646_v44 = vld [vmem:[%s7784_s2] sm:$0xff]  }
0x1044   :  { %4846 = vmatpush3.bf16.msra.mxu0 %v5640_v14 }
0x1045   :  { %4847 = vmatprep.subr.bf16.mxu0 %v5641_v16 }
0x1048   :  { %4848 = vmatpush3.bf16.msra.mxu0 %v5642_v43 }
0x1049   :  { %4849 = vmatprep.subr.bf16.mxu0 %v5643_v59 }
0x104c   :  { %4850 = vmatpush3.bf16.msra.mxu0 %v5644_v31 }
0x104d   :  { %4851 = vmatprep.subr.bf16.mxu0 %v5645_v22 }
0x1050   :  { %4852 = vmatpush3.bf16.msra.mxu0 %v5646_v44 }
0x1051   :  { %5007 = vmatprep.subr.bf16.mxu0 %v7840_v52 }
0x1073   :  { %v6878_v28 = vpop.f32.mrf.mxu0 }
0x1075   :  { %v6880_v61 = vpop.f32.mrf.mxu0 }
0x1077   :  { %v6882_v53 = vpop.f32.mrf.mxu0 }
0x1079   :  { %v6884_v62 = vpop.f32.mrf.mxu0 }
0x107a   :  { %7998 = vst [vmem:[#allocation28_spill] sm:$0xff] %v6884_v62  ;;  %v2969_v17 = vmax.f32 %v6882_v53, %v6884_v62 }
0x107b   :  { %v6886_v42 = vpop.f32.mrf.mxu0 }
0x107d   :  { %v6888_v27 = vpop.f32.mrf.mxu0 }
0x107f   :  { %v6890_v38 = vpop.f32.mrf.mxu0 }
0x1081   :  { %v6902_v45 = vpop.f32.mrf.mxu0 }
0x1082   :  { %v2975_v4 = vmax.f32 %v6890_v38, %v6902_v45 }
0x1083   :  { %v6906_v23 = vpop.f32.mrf.mxu0 }
0x1085   :  { %v6908_v11 = vpop.f32.mrf.mxu0 }
0x1087   :  { %v6912_v36 = vpop.f32.mrf.mxu0 }
0x1089   :  { %v6917_v37 = vpop.f32.mrf.mxu0 }
0x108a   :  { %v2981_v33 = vmax.f32 %v6912_v36, %v6917_v37 }
0x108b   :  { %v6924_v5 = vpop.f32.mrf.mxu0 }
0x108d   :  { %v6929_v46 = vpop.f32.mrf.mxu0 }
0x108f   :  { %v6934_v10 = vpop.f32.mrf.mxu0 }
0x1091   :  { %v6939_v32 = vpop.f32.mrf.mxu0 }
0x1092   :  { %v2987_v35 = vmax.f32 %v6934_v10, %v6939_v32 }
0x1093   :  { %v6944_v55 = vpop.f32.mrf.mxu0 }
0x1095   :  { %v6949_v63 = vpop.f32.mrf.mxu0 }
0x1097   :  { %v6954_v39 = vpop.f32.mrf.mxu0 }
0x1099   :  { %v6959_v24 = vpop.f32.mrf.mxu0 }
0x109a   :  { %v2993_v6 = vmax.f32 %v6954_v39, %v6959_v24 }
0x109b   :  { %v6964_v15 = vpop.f32.mrf.mxu0 }
0x109d   :  { %v6969_v56 = vpop.f32.mrf.mxu0 }
0x109f   :  { %v6974_v50 = vpop.f32.mrf.mxu0 }
0x10a1   :  { %v6979_v29 = vpop.f32.mrf.mxu0 }
0x10a2   :  { %v2999_v21 = vmax.f32 %v6974_v50, %v6979_v29 }
0x10a3   :  { %v6984_v18 = vpop.f32.mrf.mxu0 }
0x10a5   :  { %v6989_v25 = vpop.f32.mrf.mxu0 }
0x10a6   :  { %v3002_v44 = vmax.f32 %v6984_v18, %v6989_v25 }
0x10a7   :  { %v6994_v14 = vpop.f32.mrf.mxu0 }
0x10a9   :  { %v6997_v16 = vpop.f32.mrf.mxu0 }
0x10ab   :  { %v6999_v43 = vpop.f32.mrf.mxu0 }
0x10ad   :  { %v7001_v59 = vpop.f32.mrf.mxu0 }
0x10ae   :  { %v3008_v31 = vmax.f32 %v6999_v43, %v7001_v59 }
0x10af   :  { %v7005_v22 = vpop.f32.mrf.mxu0 }
0x10b0   :  { %3009 = vmax.xlane.f32.xlu1 %v3008_v31  ;;  %v3005_v31 = vmax.f32 %v6994_v14, %v6997_v16 }
0x10b1   :  { %v7007_v19 = vpop.f32.mrf.mxu0 }
0x10b2   :  { %v3011_v52 = vmax.f32 %v7005_v22, %v7007_v19 }
0x10b3   :  { %v7013_v40 = vpop.f32.mrf.mxu0 }
0x10b4   :  { %8000 = vst [vmem:[#allocation19_spill] sm:$0xff] %v7013_v40  ;;  %3003 = vmax.xlane.f32.xlu1 %v3002_v44  ;;  %3012 = vmax.xlane.f32.xlu0 %v3011_v52  ;;  %v2996_v52 = vmax.f32 %v6964_v15, %v6969_v56 }
0x10b5   :  { %v7015_v60 = vpop.f32.mrf.mxu0 }
0x10b6   :  { %8001 = vst [vmem:[#allocation29_spill] sm:$0xff] %v7015_v60 }
0x10b7   :  { %v7021_v12 = vpop.f32.mrf.mxu0 }
0x10b8   :  { %8002 = vst [vmem:[#allocation30_spill] sm:$0xff] %v7021_v12  ;;  %3006 = vmax.xlane.f32.xlu1 %v3005_v31  ;;  %3000 = vmax.xlane.f32.xlu0 %v2999_v21  ;;  %v2990_v21 = vmax.f32 %v6944_v55, %v6949_v63 }
0x10b9   :  { %v7023_v48 = vpop.f32.mrf.mxu0 }
0x10ba   :  { %8003 = vst [vmem:[#allocation31_spill] sm:$0xff] %v7023_v48 }
0x10bb   :  { %v7029_v44 = vpop.f32.mrf.mxu0 }
0x10bc   :  { %2997 = vmax.xlane.f32.xlu1 %v2996_v52  ;;  %2994 = vmax.xlane.f32.xlu0 %v2993_v6  ;;  %v2984_v6 = vmax.f32 %v6924_v5, %v6929_v46 }
0x10bd   :  { %v7031_v2 = vpop.f32.mrf.mxu0 }
0x10bf   :  { %v7037_v31 = vpop.f32.mrf.mxu0 }
0x10c0   :  { %2991 = vmax.xlane.f32.xlu1 %v2990_v21  ;;  %2988 = vmax.xlane.f32.xlu0 %v2987_v35  ;;  %v2978_v35 = vmax.f32 %v6906_v23, %v6908_v11 }
0x10c1   :  { %v7039_v26 = vpop.f32.mrf.mxu0 }
0x10c3   :  { %v7045_v52 = vpop.f32.mrf.mxu0 }
0x10c4   :  { %2985 = vmax.xlane.f32.xlu1 %v2984_v6  ;;  %2982 = vmax.xlane.f32.xlu0 %v2981_v33  ;;  %v2972_v33 = vmax.f32 %v6886_v42, %v6888_v27  ;;  %v7063_v6 = vpack.c.bf16 %v6900_v34, %v6747_v54  ;;  %v8006_v54 = vmov 0.0  }
0x10c5   :  { %v7047_v3 = vpop.f32.mrf.mxu0 }
0x10c6   :  { %8004 = vst [vmem:[#allocation32_spill] sm:$0xff] %v7063_v6  ;;  %3660 = vmatmul.mubr.bf16.vlgmr.msra.gmra.mxu0 %v7063_v6 }
0x10c7   :  { %v7053_v21 = vpop.f32.mrf.mxu0  ;;  %5009 = vmatprep.mubr.msk.bf16.mxu0 %vm5685_vm3, %v8006_v54 }
0x10c8   :  { %2979 = vmax.xlane.f32.xlu1 %v2978_v35  ;;  %2976 = vmax.xlane.f32.xlu0 %v2975_v4  ;;  %v2966_v35 = vmax.f32 %v6878_v28, %v6880_v61 }
0x10c9   :  { %v7055_v8 = vpop.f32.mrf.mxu0 }
0x10cb   :  { %v7069_v20 = vpop.f32.mrf.mxu0 }
0x10cc   :  { %2973 = vmax.xlane.f32.xlu1 %v2972_v33  ;;  %2970 = vmax.xlane.f32.xlu0 %v2969_v17 }
0x10cd   :  { %v7071_v4 = vpop.f32.mrf.mxu0 }
0x10cf   :  { %v7077_v57 = vpop.f32.mrf.mxu0 }
0x10d0   :  { %2967 = vmax.xlane.f32.xlu1 %v2966_v35 }
0x10d1   :  { %v7081_v41 = vpop.f32.mrf.mxu0 }
0x10d3   :  { %v7083_v1 = vpop.f32.mrf.mxu0 }
0x10d5   :  { %v7085_v17 = vpop.f32.mrf.mxu0 }
0x10d6   :  { %8007 = vst [vmem:[#allocation34_spill] sm:$0xff] %v7085_v17 }
0x10d7   :  { %v7087_v34 = vpop.f32.mrf.mxu0 }
0x10d8   :  { %8008 = vst [vmem:[#allocation35_spill] sm:$0xff] %v7087_v34 }
0x10d9   :  { %v7089_v33 = vpop.f32.mrf.mxu0 }
0x10da   :  { %8009 = vst [vmem:[#allocation36_spill] sm:$0xff] %v7089_v33 }
0x10db   :  { %v7091_v0 = vpop.f32.mrf.mxu0 }
0x10dc   :  { %8010 = vst [vmem:[#allocation37_spill] sm:$0xff] %v7091_v0 }
0x10dd   :  { %v7093_v9 = vpop.f32.mrf.mxu0 }
0x10de   :  { %8011 = vst [vmem:[#allocation38_spill] sm:$0xff] %v7093_v9  ;;  %v3044_v60 = vmax.f32 %v7091_v0, %v7093_v9 }
0x10df   :  { %v7095_v6 = vpop.f32.mrf.mxu0 }
0x10e1   :  { %v7097_v13 = vpop.f32.mrf.mxu0 }
0x10e2   :  { %8012 = vst [vmem:[#allocation39_spill] sm:$0xff] %v7097_v13 }
0x10e3   :  { %v7099_v58 = vpop.f32.mrf.mxu0 }
0x10e5   :  { %v7101_v35 = vpop.f32.mrf.mxu0 }
0x10e6   :  { %8013 = vst [vmem:[#allocation40_spill] sm:$0xff] %v7101_v35  ;;  %v3050_v12 = vmax.f32 %v7099_v58, %v7101_v35  ;;  %v3047_v35 = vmax.f32 %v7095_v6, %v7097_v13 }
0x10e7   :  { %v7103_v47 = vpop.f32.mrf.mxu0 }
0x10e8   :  { %8014 = vst [vmem:[#allocation41_spill] sm:$0xff] %v7103_v47 }
0x10e9   :  { %v7105_v49 = vpop.f32.mrf.mxu0 }
0x10ea   :  { %8015 = vst [vmem:[#allocation42_spill] sm:$0xff] %v7105_v49  ;;  %v3053_v62 = vmax.f32 %v7103_v47, %v7105_v49 }
0x10eb   :  { %v7107_v51 = vpop.f32.mrf.mxu0 }
0x10ed   :  { %v7109_v30 = vpop.f32.mrf.mxu0 }
0x10ee   :  { %8016 = vst [vmem:[#allocation43_spill] sm:$0xff] %v7109_v30  ;;  %v3056_v54 = vmax.f32 %v7107_v51, %v7109_v30  ;;  %v3038_v30 = vmax.f32 %v7083_v1, %v7085_v17 }
0x10ef   :  { %v7113_v7 = vpop.f32.mrf.mxu0 }
0x10f0   :  { %3057 = vmax.xlane.f32.xlu1 %v3056_v54  ;;  %v3041_v54 = vmax.f32 %v7087_v34, %v7089_v33 }
0x10f1   :  { %v7117_v48 = vpop.f32.mrf.mxu0 }
0x10f2   :  { %v3059_v40 = vmax.f32 %v7113_v7, %v7117_v48 }
0x10f4   :  { %3051 = vmax.xlane.f32.xlu1 %v3050_v12  ;;  %3060 = vmax.xlane.f32.xlu0 %v3059_v40 }
0x10f8   :  { %3045 = vmax.xlane.f32.xlu1 %v3044_v60  ;;  %3054 = vmax.xlane.f32.xlu0 %v3053_v62 }
0x10fc   :  { %3039 = vmax.xlane.f32.xlu1 %v3038_v30  ;;  %3048 = vmax.xlane.f32.xlu0 %v3047_v35 }
0x1100   :  { %3042 = vmax.xlane.f32.xlu0 %v3041_v54 }
0x1139   :  { %v3010_v9 = vpop.xlane.xlu1 %3009 }
0x113a   :  { %v3090_v0 = vsub.f32 %v6999_v43, %v3010_v9  ;;  %v3091_v12 = vsub.f32 %v7001_v59, %v3010_v9 }
0x113c   :  { %v3182_v40 = vmul.f32 1.442695, %v3090_v0  ;;  %v3184_v49 = vmul.f32 1.442695, %v3091_v12 }
0x113d   :  { %v3004_v47 = vpop.xlane.xlu1 %3003  ;;  %v3013_v17 = vpop.xlane.xlu0 %3012 }
0x113e   :  { %5393 = vpow2.f32 %v3182_v40  ;;  %v3086_v13 = vsub.f32 %v6984_v18, %v3004_v47  ;;  %v3087_v60 = vsub.f32 %v6989_v25, %v3004_v47  ;;  %v3092_v62 = vsub.f32 %v7005_v22, %v3013_v17 }
0x113f   :  { %5395 = vpow2.f32 %v3184_v49  ;;  %v3093_v30 = vsub.f32 %v7007_v19, %v3013_v17 }
0x1140   :  { %v3174_v35 = vmul.f32 1.442695, %v3086_v13  ;;  %v3176_v54 = vmul.f32 1.442695, %v3087_v60  ;;  %v3186_v33 = vmul.f32 1.442695, %v3092_v62 }
0x1141   :  { %v3188_v43 = vmul.f32 1.442695, %v3093_v30  ;;  %v3007_v34 = vpop.xlane.xlu1 %3006  ;;  %v3001_v18 = vpop.xlane.xlu0 %3000 }
0x1142   :  { %5397 = vpow2.f32 %v3174_v35  ;;  %v3088_v9 = vsub.f32 %v6994_v14, %v3007_v34  ;;  %v3089_v0 = vsub.f32 %v6997_v16, %v3007_v34  ;;  %v3084_v12 = vsub.f32 %v6974_v50, %v3001_v18 }
0x1143   :  { %5399 = vpow2.f32 %v3176_v54  ;;  %v3085_v16 = vsub.f32 %v6979_v29, %v3001_v18 }
0x1144   :  { %5401 = vpow2.f32 %v3186_v33  ;;  %v3178_v25 = vmul.f32 1.442695, %v3088_v9  ;;  %v3180_v13 = vmul.f32 1.442695, %v3089_v0  ;;  %v3170_v62 = vmul.f32 1.442695, %v3084_v12 }
0x1145   :  { %5403 = vpow2.f32 %v3188_v43  ;;  %v2998_v47 = vpop.xlane.xlu1 %2997  ;;  %v2995_v34 = vpop.xlane.xlu0 %2994  ;;  %v3172_v30 = vmul.f32 1.442695, %v3085_v16 }
0x1146   :  { %v3082_v49 = vsub.f32 %v6964_v15, %v2998_v47  ;;  %v3083_v19 = vsub.f32 %v6969_v56, %v2998_v47  ;;  %5405 = vpow2.f32 %v3178_v25  ;;  %v3080_v18 = vsub.f32 %v6954_v39, %v2995_v34 }
0x1147   :  { %5407 = vpow2.f32 %v3180_v13  ;;  %v3081_v47 = vsub.f32 %v6959_v24, %v2995_v34  ;;  %v3035_v39 = vmax.f32 %v7077_v57, %v7081_v41 }
0x1148   :  { %v3166_v59 = vmul.f32 1.442695, %v3082_v49  ;;  %v3168_v22 = vmul.f32 1.442695, %v3083_v19 }
0x1149   :  { %v2992_v17 = vpop.xlane.xlu1 %2991  ;;  %v2989_v9 = vpop.xlane.xlu0 %2988  ;;  %v3164_v24 = vmul.f32 1.442695, %v3081_v47 }
0x114a   :  { %5409 = vpow2.f32 %v3166_v59  ;;  %v3078_v15 = vsub.f32 %v6944_v55, %v2992_v17  ;;  %v3079_v56 = vsub.f32 %v6949_v63, %v2992_v17  ;;  %v3032_v55 = vmax.f32 %v7069_v20, %v7071_v4 }
0x114b   :  { %v7142_v14 = vpop.eup %5393  ;;  %5411 = vpow2.f32 %v3168_v22  ;;  %v3162_v59 = vmul.f32 1.442695, %v3080_v18 }
0x114c   :  { %v7145_v33 = vpop.eup %5395  ;;  %v3158_v29 = vmul.f32 1.442695, %v3078_v15  ;;  %v3160_v43 = vmul.f32 1.442695, %v3079_v56  ;;  %5413 = vpow2.f32 %v3170_v62  ;;  %v3026_v15 = vmax.f32 %v7045_v52, %v7047_v3 }
0x114d   :  { %v2986_v40 = vpop.xlane.xlu1 %2985  ;;  %v3296_v60 = vadd.f32 %v7145_v33, %v7142_v14  ;;  %5415 = vpow2.f32 %v3172_v30  ;;  %v2983_v17 = vpop.xlane.xlu0 %2982  ;;  %v3076_v62 = vsub.f32 %v6934_v10, %v2989_v9  ;;  %v3077_v30 = vsub.f32 %v6939_v32, %v2989_v9 }
0x114e   :  { %5417 = vpow2.f32 %v3158_v29  ;;  %v3074_v49 = vsub.f32 %v6924_v5, %v2986_v40  ;;  %v3075_v19 = vsub.f32 %v6929_v46, %v2986_v40  ;;  %v3072_v32 = vsub.f32 %v6912_v36, %v2983_v17 }
0x114f   :  { %v7151_v50 = vpop.eup %5397  ;;  %3297 = vadd.xlane.f32.xlu1 %v3296_v60  ;;  %5419 = vpow2.f32 %v3160_v43  ;;  %v3154_v47 = vmul.f32 1.442695, %v3076_v62  ;;  %v3020_v36 = vmax.f32 %v7029_v44, %v7031_v2 }
0x1150   :  { %v7153_v35 = vpop.eup %5399  ;;  %v3150_v5 = vmul.f32 1.442695, %v3074_v49  ;;  %v3152_v56 = vmul.f32 1.442695, %v3075_v19  ;;  %5421 = vpow2.f32 %v3162_v59  ;;  %v3156_v49 = vmul.f32 1.442695, %v3077_v30 }
0x1151   :  { %v7155_v54 = vpop.eup %5401  ;;  %v2980_v63 = vpop.xlane.xlu1 %2979  ;;  %v3290_v13 = vadd.f32 %v7153_v35, %v7151_v50  ;;  %5423 = vpow2.f32 %v3164_v24 }
0x1152   :  { %v7159_v0 = vpop.eup %5403  ;;  %v3070_v34 = vsub.f32 %v6906_v23, %v2980_v63  ;;  %v3071_v40 = vsub.f32 %v6908_v11, %v2980_v63  ;;  %5425 = vpow2.f32 %v3150_v5  ;;  %v2977_v11 = vpop.xlane.xlu0 %2976 }
0x1153   :  { %3033 = vmax.xlane.f32.xlu1 %v3032_v55  ;;  %v3299_v25 = vadd.f32 %v7159_v0, %v7155_v54  ;;  %v7169_v22 = vpop.eup %5405  ;;  %5427 = vpow2.f32 %v3152_v56 }
0x1154   :  { %v7173_v16 = vpop.eup %5407  ;;  %v3142_v29 = vmul.f32 1.442695, %v3070_v34  ;;  %v3144_v43 = vmul.f32 1.442695, %v3071_v40 }
0x1155   :  { %3300 = vadd.xlane.f32.xlu0 %v3299_v25  ;;  %v2974_v12 = vpop.xlane.xlu1 %2973  ;;  %v3293_v23 = vadd.f32 %v7173_v16, %v7169_v22  ;;  %v3029_v25 = vmax.f32 %v7053_v21, %v7055_v8 }
0x1156   :  { %v3066_v55 = vsub.f32 %v6886_v42, %v2974_v12  ;;  %v3067_v63 = vsub.f32 %v6888_v27, %v2974_v12  ;;  %v3073_v42 = vsub.f32 %v6917_v37, %v2983_v17  ;;  %5429 = vpow2.f32 %v3142_v29  ;;  %v2971_v34 = vpop.xlane.xlu0 %2970  ;;  %v8017_v29 = vld [vmem:[#allocation28_spill] sm:$0xff] }
0x1157   :  { %3291 = vadd.xlane.f32.xlu1 %v3290_v13  ;;  %v7176_v46 = vpop.eup %5409  ;;  %5431 = vpow2.f32 %v3144_v43  ;;  %v3146_v37 = vmul.f32 1.442695, %v3072_v32  ;;  %v3068_v17 = vsub.f32 %v6890_v38, %v2977_v11  ;;  %v3064_v38 = vsub.f32 %v6882_v53, %v2971_v34 }
0x1158   :  { %v7181_v60 = vpop.eup %5411  ;;  %v3134_v27 = vmul.f32 1.442695, %v3066_v55  ;;  %5433 = vpow2.f32 %v3154_v47  ;;  %v3148_v5 = vmul.f32 1.442695, %v3073_v42  ;;  %v3065_v55 = vsub.f32 %v8017_v29, %v2971_v34 }
0x1159   :  { %3036 = vmax.xlane.f32.xlu0 %v3035_v39  ;;  %v2968_v18 = vpop.xlane.xlu1 %2967  ;;  %v3284_v10 = vadd.f32 %v7181_v60, %v7176_v46  ;;  %v7192_v9 = vpop.eup %5413  ;;  %v3136_v39 = vmul.f32 1.442695, %v3067_v63  ;;  %5435 = vpow2.f32 %v3156_v49  ;;  %v3138_v62 = vmul.f32 1.442695, %v3068_v17  ;;  %v8018_v63 = vld [vmem:[#allocation29_spill] sm:$0xff] }
0x115a   :  { %v7197_v19 = vpop.eup %5415  ;;  %v3062_v13 = vsub.f32 %v6878_v28, %v2968_v18  ;;  %v3063_v24 = vsub.f32 %v6880_v61, %v2968_v18  ;;  %v3069_v28 = vsub.f32 %v6902_v45, %v2977_v11  ;;  %5437 = vpow2.f32 %v3134_v27  ;;  %v8019_v18 = vld [vmem:[#allocation19_spill] sm:$0xff] }
0x115b   :  { %3027 = vmax.xlane.f32.xlu1 %v3026_v15  ;;  %v7200_v59 = vpop.eup %5417  ;;  %v3287_v15 = vadd.f32 %v7197_v19, %v7192_v9  ;;  %5439 = vpow2.f32 %v3136_v39  ;;  %v3023_v45 = vmax.f32 %v7037_v31, %v7039_v26  ;;  %v3130_v47 = vmul.f32 1.442695, %v3064_v38  ;;  %v8022_v39 = vld [vmem:[#allocation30_spill] sm:$0xff] }
0x115c   :  { %v7205_v12 = vpop.eup %5419  ;;  %v3126_v56 = vmul.f32 1.442695, %v3062_v13  ;;  %v3128_v61 = vmul.f32 1.442695, %v3063_v24  ;;  %5441 = vpow2.f32 %v3146_v37  ;;  %v3132_v32 = vmul.f32 1.442695, %v3065_v55 }
0x115d   :  { %3294 = vadd.xlane.f32.xlu0 %v3293_v23  ;;  %v3278_v40 = vadd.f32 %v7205_v12, %v7200_v59  ;;  %v7214_v30 = vpop.eup %5421  ;;  %5443 = vpow2.f32 %v3148_v5  ;;  %v3140_v23 = vmul.f32 1.442695, %v3069_v28 }
0x115e   :  { %v7219_v43 = vpop.eup %5423  ;;  %5445 = vpow2.f32 %v3126_v56 }
0x115f   :  { %3285 = vadd.xlane.f32.xlu1 %v3284_v10  ;;  %v7221_v11 = vpop.eup %5425  ;;  %v3014_v10 = vmax.f32 %v8019_v18, %v8018_v63  ;;  %5447 = vpow2.f32 %v3128_v61 }
0x1160   :  { %v7225_v53 = vpop.eup %5427  ;;  %5449 = vpow2.f32 %v3138_v62 }
0x1161   :  { %3030 = vmax.xlane.f32.xlu0 %v3029_v25  ;;  %5451 = vpow2.f32 %v3140_v23  ;;  %v3281_v25 = vadd.f32 %v7219_v43, %v7214_v30  ;;  %v3272_v42 = vadd.f32 %v7225_v53, %v7221_v11 }
0x1162   :  { %5453 = vpow2.f32 %v3130_v47  ;;  %v8028_v47 = vld [vmem:[#allocation43_spill] sm:$0xff] }
0x1163   :  { %3021 = vmax.xlane.f32.xlu1 %v3020_v36  ;;  %v7229_v49 = vpop.eup %5429  ;;  %v8021_v36 = vld [vmem:[#allocation31_spill] sm:$0xff]  ;;  %5455 = vpow2.f32 %v3132_v32 }
0x1164   :  { %8020 = vst [vmem:[#allocation28_spill] sm:$0xff] %v7229_v49  ;;  %v7233_v27 = vpop.eup %5431  ;;  %v3017_v24 = vmax.f32 %v8022_v39, %v8021_v36 }
0x1165   :  { %3288 = vadd.xlane.f32.xlu0 %v3287_v15  ;;  %v7235_v13 = vpop.eup %5433  ;;  %v3266_v5 = vadd.f32 %v7233_v27, %v7229_v49  ;;  %v8032_v49 = vld [vmem:[#allocation38_spill] sm:$0xff] }
0x1166   :  { %v7239_v37 = vpop.eup %5435 }
0x1167   :  { %3279 = vadd.xlane.f32.xlu1 %v3278_v40  ;;  %v7241_v17 = vpop.eup %5437  ;;  %v3275_v15 = vadd.f32 %v7239_v37, %v7235_v13 }
0x1168   :  { %8023 = vst [vmem:[#allocation29_spill] sm:$0xff] %v7241_v17  ;;  %v7245_v28 = vpop.eup %5439 }
0x1169   :  { %3024 = vmax.xlane.f32.xlu0 %v3023_v45  ;;  %8024 = vst [vmem:[#allocation19_spill] sm:$0xff] %v7245_v28  ;;  %v7247_v34 = vpop.eup %5441  ;;  %v3260_v40 = vadd.f32 %v7245_v28, %v7241_v17 }
0x116a   :  { %v7251_v56 = vpop.eup %5443 }
0x116b   :  { %3015 = vmax.xlane.f32.xlu1 %v3014_v10  ;;  %v7253_v61 = vpop.eup %5445  ;;  %v3269_v45 = vadd.f32 %v7251_v56, %v7247_v34 }
0x116c   :  { %8025 = vst [vmem:[#allocation31_spill] sm:$0xff] %v7253_v61  ;;  %v7257_v62 = vpop.eup %5447 }
0x116d   :  { %3282 = vadd.xlane.f32.xlu0 %v3281_v25  ;;  %8026 = vst [vmem:[#allocation30_spill] sm:$0xff] %v7257_v62  ;;  %v7259_v38 = vpop.eup %5449  ;;  %v3254_v55 = vadd.f32 %v7257_v62, %v7253_v61  ;;  %v8030_v62 = vld [vmem:[#allocation40_spill] sm:$0xff] }
0x116e   :  { %8027 = vst [vmem:[#allocation44_spill] sm:$0xff] %v7259_v38  ;;  %v7263_v23 = vpop.eup %5451 }
0x116f   :  { %3273 = vadd.xlane.f32.xlu1 %v3272_v42  ;;  %v7269_v25 = vpop.eup %5453  ;;  %v3263_v42 = vadd.f32 %v7263_v23, %v7259_v38 }
0x1170   :  { %8029 = vst [vmem:[#allocation43_spill] sm:$0xff] %v7269_v25 }
0x1171   :  { %3018 = vmax.xlane.f32.xlu0 %v3017_v24  ;;  %v7273_v24 = vpop.eup %5455 }
0x1173   :  { %3267 = vadd.xlane.f32.xlu1 %v3266_v5 }
0x1175   :  { %3276 = vadd.xlane.f32.xlu0 %v3275_v15 }
0x1177   :  { %3261 = vadd.xlane.f32.xlu1 %v3260_v40 }
0x1179   :  { %3270 = vadd.xlane.f32.xlu0 %v3269_v45  ;;  %v3058_v29 = vpop.xlane.xlu1 %3057 }
0x117a   :  { %v3122_v10 = vsub.f32 %v7107_v51, %v3058_v29  ;;  %v3123_v32 = vsub.f32 %v8028_v47, %v3058_v29  ;;  %v3257_v47 = vadd.f32 %v7273_v24, %v7269_v25 }
0x117b   :  { %3255 = vadd.xlane.f32.xlu1 %v3254_v55 }
0x117c   :  { %v3246_v5 = vmul.f32 1.442695, %v3122_v10  ;;  %v3248_v15 = vmul.f32 1.442695, %v3123_v32 }
0x117d   :  { %3264 = vadd.xlane.f32.xlu0 %v3263_v42  ;;  %v3052_v40 = vpop.xlane.xlu1 %3051  ;;  %v3061_v45 = vpop.xlane.xlu0 %3060 }
0x117e   :  { %5457 = vpow2.f32 %v3246_v5  ;;  %v3118_v61 = vsub.f32 %v7099_v58, %v3052_v40  ;;  %v3119_v51 = vsub.f32 %v8030_v62, %v3052_v40  ;;  %v3124_v29 = vsub.f32 %v7113_v7, %v3061_v45  ;;  %v8031_v5 = vld [vmem:[#allocation37_spill] sm:$0xff] }
0x117f   :  { %5459 = vpow2.f32 %v3248_v15  ;;  %v3125_v55 = vsub.f32 %v7117_v48, %v3061_v45  ;;  %v8033_v40 = vld [vmem:[#allocation41_spill] sm:$0xff]  ;;  %v8034_v15 = vld [vmem:[#allocation42_spill] sm:$0xff] }
0x1180   :  { %v3238_v17 = vmul.f32 1.442695, %v3118_v61  ;;  %v3240_v38 = vmul.f32 1.442695, %v3119_v51  ;;  %v3250_v10 = vmul.f32 1.442695, %v3124_v29 }
0x1181   :  { %v3252_v32 = vmul.f32 1.442695, %v3125_v55  ;;  %3258 = vadd.xlane.f32.xlu0 %v3257_v47  ;;  %v3046_v42 = vpop.xlane.xlu1 %3045  ;;  %v3055_v28 = vpop.xlane.xlu0 %3054  ;;  %v8035_v47 = vld [vmem:[#allocation34_spill] sm:$0xff] }
0x1182   :  { %5461 = vpow2.f32 %v3238_v17  ;;  %v3114_v58 = vsub.f32 %v8031_v5, %v3046_v42  ;;  %v3115_v62 = vsub.f32 %v8032_v49, %v3046_v42  ;;  %v3120_v7 = vsub.f32 %v8033_v40, %v3055_v28  ;;  %v8036_v42 = vld [vmem:[#allocation39_spill] sm:$0xff] }
0x1183   :  { %5463 = vpow2.f32 %v3240_v38  ;;  %v3121_v48 = vsub.f32 %v8034_v15, %v3055_v28  ;;  %v8037_v40 = vld [vmem:[#allocation35_spill] sm:$0xff]  ;;  %v8038_v15 = vld [vmem:[#allocation36_spill] sm:$0xff] }
0x1184   :  { %5465 = vpow2.f32 %v3250_v10  ;;  %v3230_v45 = vmul.f32 1.442695, %v3114_v58  ;;  %v3232_v25 = vmul.f32 1.442695, %v3115_v62  ;;  %v3242_v61 = vmul.f32 1.442695, %v3120_v7 }
0x1185   :  { %5467 = vpow2.f32 %v3252_v32  ;;  %v3244_v51 = vmul.f32 1.442695, %v3121_v48  ;;  %v3040_v29 = vpop.xlane.xlu1 %3039  ;;  %v3049_v55 = vpop.xlane.xlu0 %3048 }
0x1186   :  { %5469 = vpow2.f32 %v3230_v45  ;;  %v3110_v17 = vsub.f32 %v7083_v1, %v3040_v29  ;;  %v3111_v5 = vsub.f32 %v8035_v47, %v3040_v29  ;;  %v3116_v49 = vsub.f32 %v7095_v6, %v3049_v55 }
0x1187   :  { %5471 = vpow2.f32 %v3232_v25  ;;  %v3117_v38 = vsub.f32 %v8036_v42, %v3049_v55 }
0x1188   :  { %5473 = vpow2.f32 %v3242_v61  ;;  %v3222_v28 = vmul.f32 1.442695, %v3110_v17  ;;  %v3224_v10 = vmul.f32 1.442695, %v3111_v5  ;;  %v3234_v58 = vmul.f32 1.442695, %v3116_v49 }
0x1189   :  { %5475 = vpow2.f32 %v3244_v51  ;;  %v3236_v62 = vmul.f32 1.442695, %v3117_v38  ;;  %v3043_v32 = vpop.xlane.xlu0 %3042 }
0x118a   :  { %5477 = vpow2.f32 %v3222_v28  ;;  %v3112_v7 = vsub.f32 %v8037_v40, %v3043_v32  ;;  %v3113_v48 = vsub.f32 %v8038_v15, %v3043_v32 }
0x118b   :  { %v7291_v1 = vpop.eup %5457  ;;  %5479 = vpow2.f32 %v3224_v10 }
0x118c   :  { %v7293_v45 = vpop.eup %5459  ;;  %5481 = vpow2.f32 %v3234_v58  ;;  %v3226_v6 = vmul.f32 1.442695, %v3112_v7  ;;  %v3228_v25 = vmul.f32 1.442695, %v3113_v48 }
0x118d   :  { %5483 = vpow2.f32 %v3236_v62  ;;  %v3344_v61 = vadd.f32 %v7293_v45, %v7291_v1 }
0x118e   :  { %5485 = vpow2.f32 %v3226_v6 }
0x118f   :  { %v7297_v51 = vpop.eup %5461  ;;  %5487 = vpow2.f32 %v3228_v25  ;;  %3345 = vadd.xlane.f32.xlu1 %v3344_v61 }
0x1190   :  { %v7299_v29 = vpop.eup %5463 }
0x1191   :  { %v7301_v55 = vpop.eup %5465  ;;  %v3338_v17 = vadd.f32 %v7299_v29, %v7297_v51 }
0x1192   :  { %v7305_v47 = vpop.eup %5467 }
0x1193   :  { %v7307_v5 = vpop.eup %5469  ;;  %3339 = vadd.xlane.f32.xlu1 %v3338_v17  ;;  %v3347_v49 = vadd.f32 %v7305_v47, %v7301_v55 }
0x1194   :  { %8039 = vst [vmem:[#allocation40_spill] sm:$0xff] %v7307_v5  ;;  %v7311_v42 = vpop.eup %5471 }
0x1195   :  { %8040 = vst [vmem:[#allocation37_spill] sm:$0xff] %v7311_v42  ;;  %v7313_v38 = vpop.eup %5473  ;;  %3348 = vadd.xlane.f32.xlu0 %v3347_v49  ;;  %v3332_v28 = vadd.f32 %v7311_v42, %v7307_v5 }
0x1196   :  { %v7317_v10 = vpop.eup %5475 }
0x1197   :  { %v7319_v58 = vpop.eup %5477  ;;  %3333 = vadd.xlane.f32.xlu1 %v3332_v28  ;;  %v3341_v62 = vadd.f32 %v7317_v10, %v7313_v38 }
0x1198   :  { %8041 = vst [vmem:[#allocation38_spill] sm:$0xff] %v7319_v58  ;;  %v7323_v32 = vpop.eup %5479 }
0x1199   :  { %8042 = vst [vmem:[#allocation41_spill] sm:$0xff] %v7323_v32  ;;  %v7325_v40 = vpop.eup %5481  ;;  %3342 = vadd.xlane.f32.xlu0 %v3341_v62  ;;  %v3326_v7 = vadd.f32 %v7323_v32, %v7319_v58 }
0x119a   :  { %8043 = vst [vmem:[#allocation42_spill] sm:$0xff] %v7325_v40  ;;  %v7329_v15 = vpop.eup %5483 }
0x119b   :  { %v7331_v48 = vpop.eup %5485  ;;  %3327 = vadd.xlane.f32.xlu1 %v3326_v7  ;;  %v3335_v6 = vadd.f32 %v7329_v15, %v7325_v40 }
0x119c   :  { %8044 = vst [vmem:[#allocation34_spill] sm:$0xff] %v7331_v48  ;;  %v7335_v25 = vpop.eup %5487 }
0x119d   :  { %8045 = vst [vmem:[#allocation39_spill] sm:$0xff] %v7335_v25  ;;  %3336 = vadd.xlane.f32.xlu0 %v3335_v6  ;;  %v3329_v61 = vadd.f32 %v7335_v25, %v7331_v48 }
0x11a1   :  { %3330 = vadd.xlane.f32.xlu0 %v3329_v61 }
0x11d8   :  { %v3298_v17 = vpop.xlane.xlu1 %3297 }
0x11d9   :  { %5489 = vrcp.f32 %v3298_v17 }
0x11dc   :  { %v3034_v49 = vpop.xlane.xlu1 %3033 }
0x11dd   :  { %v3106_v28 = vsub.f32 %v7069_v20, %v3034_v49  ;;  %v3107_v62 = vsub.f32 %v7071_v4, %v3034_v49 }
0x11de   :  { %v3301_v58 = vpop.xlane.xlu0 %3300 }
0x11df   :  { %v3214_v32 = vmul.f32 1.442695, %v3106_v28  ;;  %v3216_v7 = vmul.f32 1.442695, %v3107_v62  ;;  %5491 = vrcp.f32 %v3301_v58 }
0x11e0   :  { %v3292_v5 = vpop.xlane.xlu1 %3291 }
0x11e1   :  { %5493 = vpow2.f32 %v3214_v32 }
0x11e2   :  { %5495 = vpow2.f32 %v3216_v7  ;;  %v3037_v40 = vpop.xlane.xlu0 %3036 }
0x11e3   :  { %v3108_v6 = vsub.f32 %v7077_v57, %v3037_v40  ;;  %v3109_v48 = vsub.f32 %v7081_v41, %v3037_v40  ;;  %5497 = vrcp.f32 %v3292_v5 }
0x11e4   :  { %v3028_v61 = vpop.xlane.xlu1 %3027 }
0x11e5   :  { %v3218_v25 = vmul.f32 1.442695, %v3108_v6  ;;  %v3220_v17 = vmul.f32 1.442695, %v3109_v48  ;;  %v3102_v42 = vsub.f32 %v7045_v52, %v3028_v61  ;;  %v3103_v20 = vsub.f32 %v7047_v3, %v3028_v61 }
0x11e6   :  { %v3295_v4 = vpop.xlane.xlu0 %3294  ;;  %v5490_v28 = vpop.eup %5489 }
0x11e7   :  { %5499 = vpow2.f32 %v3218_v25  ;;  %v3206_v49 = vmul.f32 1.442695, %v3102_v42  ;;  %v3208_v58 = vmul.f32 1.442695, %v3103_v20  ;;  %v3411_v3 = vmul.f32 %v5490_v28, %v7145_v33 }
0x11e8   :  { %5501 = vpow2.f32 %v3220_v17  ;;  %v3286_v32 = vpop.xlane.xlu1 %3285 }
0x11e9   :  { %5503 = vpow2.f32 %v3206_v49 }
0x11ea   :  { %5505 = vpow2.f32 %v3208_v58  ;;  %v3031_v57 = vpop.xlane.xlu0 %3030 }
0x11eb   :  { %5507 = vrcp.f32 %v3295_v4  ;;  %v3104_v41 = vsub.f32 %v7053_v21, %v3031_v57  ;;  %v3105_v40 = vsub.f32 %v7055_v8, %v3031_v57  ;;  %v3410_v21 = vmul.f32 %v5490_v28, %v7142_v14 }
0x11ec   :  { %v5492_v48 = vpop.eup %5491  ;;  %v3022_v52 = vpop.xlane.xlu1 %3021  ;;  %5509 = vrcp.f32 %v3286_v32 }
0x11ed   :  { %v3210_v5 = vmul.f32 1.442695, %v3104_v41  ;;  %v3212_v62 = vmul.f32 1.442695, %v3105_v40  ;;  %v3098_v42 = vsub.f32 %v7029_v44, %v3022_v52  ;;  %v3099_v25 = vsub.f32 %v7031_v2, %v3022_v52 }
0x11ee   :  { %v7350_v7 = vpop.eup %5493  ;;  %v3289_v6 = vpop.xlane.xlu0 %3288  ;;  %v3413_v61 = vmul.f32 %v5492_v48, %v7159_v0  ;;  %v3412_v8 = vmul.f32 %v5492_v48, %v7155_v54 }
0x11ef   :  { %v7355_v17 = vpop.eup %5495  ;;  %5511 = vpow2.f32 %v3210_v5  ;;  %v3198_v33 = vmul.f32 1.442695, %v3098_v42  ;;  %v3200_v20 = vmul.f32 1.442695, %v3099_v25 }
0x11f0   :  { %5513 = vpow2.f32 %v3212_v62  ;;  %v3463_v4 = vpack.c.bf16 %v3413_v61, %v3411_v3  ;;  %v3280_v44 = vpop.xlane.xlu1 %3279  ;;  %v3462_v49 = vpack.c.bf16 %v3412_v8, %v3410_v21  ;;  %v3320_v2 = vadd.f32 %v7355_v17, %v7350_v7  ;;  %v5498_v14 = vpop.eup %5497 }
0x11f1   :  { %5515 = vpow2.f32 %v3198_v33  ;;  %v7367_v3 = vpop.f32.mrf.mxu0  ;;  %v3406_v8 = vmul.f32 %v5498_v14, %v7151_v50 }
0x11f2   :  { %5517 = vpow2.f32 %v3200_v20  ;;  %3480 = vmatprep.subr.bf16.mxu1 %v3463_v4  ;;  %v3025_v0 = vpop.xlane.xlu0 %3024  ;;  %3321 = vadd.xlane.f32.xlu1 %v3320_v2 }
0x11f3   :  { %5519 = vrcp.f32 %v3289_v6  ;;  %3481 = vmatpush1.bf16.xpose.msra.mxu1 %v3462_v49  ;;  %v3100_v54 = vsub.f32 %v7037_v31, %v3025_v0  ;;  %v3101_v58 = vsub.f32 %v7039_v26, %v3025_v0  ;;  %v7381_v20 = vpop.f32.mrf.mxu0 }
0x11f4   :  { %v7361_v32 = vpop.eup %5499  ;;  %v3016_v28 = vpop.xlane.xlu1 %3015  ;;  %5521 = vrcp.f32 %v3280_v44 }
0x11f5   :  { %v7363_v57 = vpop.eup %5501  ;;  %v3202_v41 = vmul.f32 1.442695, %v3100_v54  ;;  %v3204_v40 = vmul.f32 1.442695, %v3101_v58  ;;  %v3094_v48 = vsub.f32 %v8019_v18, %v3016_v28  ;;  %v3095_v52 = vsub.f32 %v8018_v63, %v3016_v28 }
0x11f6   :  { %v7369_v5 = vpop.eup %5503  ;;  %v3283_v62 = vpop.xlane.xlu0 %3282  ;;  %v3323_v26 = vadd.f32 %v7363_v57, %v7361_v32  ;;  %v3407_v18 = vmul.f32 %v5498_v14, %v7153_v35 }
0x11f7   :  { %v7373_v31 = vpop.eup %5505  ;;  %5523 = vpow2.f32 %v3202_v41  ;;  %v3190_v42 = vmul.f32 1.442695, %v3094_v48  ;;  %v3192_v25 = vmul.f32 1.442695, %v3095_v52 }
0x11f8   :  { %v5508_v6 = vpop.eup %5507  ;;  %5525 = vpow2.f32 %v3204_v40  ;;  %3324 = vadd.xlane.f32.xlu0 %v3323_v26  ;;  %v3274_v63 = vpop.xlane.xlu1 %3273  ;;  %v3314_v61 = vadd.f32 %v7373_v31, %v7369_v5 }
0x11f9   :  { %5527 = vpow2.f32 %v3190_v42  ;;  %v3409_v21 = vmul.f32 %v5508_v6, %v7173_v16  ;;  %v3408_v33 = vmul.f32 %v5508_v6, %v7169_v22  ;;  %v5510_v44 = vpop.eup %5509  ;;  %v7389_v22 = vpop.f32.mrf.mxu0 }
0x11fa   :  { %5529 = vpow2.f32 %v3192_v25  ;;  %v3019_v4 = vpop.xlane.xlu0 %3018  ;;  %3315 = vadd.xlane.f32.xlu1 %v3314_v61  ;;  %v3403_v48 = vmul.f32 %v5510_v44, %v7181_v60  ;;  %v3402_v26 = vmul.f32 %v5510_v44, %v7176_v46 }
0x11fb   :  { %5531 = vrcp.f32 %v3283_v62  ;;  %v3461_v49 = vpack.c.bf16 %v3409_v21, %v3407_v18  ;;  %v3460_v35 = vpack.c.bf16 %v3408_v33, %v3406_v8  ;;  %v3096_v2 = vsub.f32 %v8022_v39, %v3019_v4  ;;  %v7403_v25 = vpop.f32.mrf.mxu0 }
0x11fc   :  { %v7384_v0 = vpop.eup %5511  ;;  %v3097_v54 = vsub.f32 %v8021_v36, %v3019_v4  ;;  %v3268_v16 = vpop.xlane.xlu1 %3267  ;;  %5533 = vrcp.f32 %v3274_v63 }
0x11fd   :  { %v7387_v58 = vpop.eup %5513  ;;  %3482 = vmatprep.subr.bf16.mxu1 %v3461_v49  ;;  %v3194_v50 = vmul.f32 1.442695, %v3096_v2  ;;  %5535 = vrcp.f32 %v3268_v16  ;;  %v4853_v8 = vpop.f32.mrf.mxu0 }
0x11fe   :  { %v7391_v14 = vpop.eup %5515  ;;  %3483 = vmatpush1.bf16.xpose.msra.mxu1 %v3460_v35  ;;  %v3196_v28 = vmul.f32 1.442695, %v3097_v54  ;;  %v3277_v41 = vpop.xlane.xlu0 %3276  ;;  %v3317_v39 = vadd.f32 %v7387_v58, %v7384_v0 }
0x11ff   :  { %v7395_v40 = vpop.eup %5517  ;;  %5537 = vpow2.f32 %v3194_v50  ;;  %v4854_v50 = vpop.f32.mrf.mxu0 }
0x1200   :  { %v5520_v36 = vpop.eup %5519  ;;  %5539 = vpow2.f32 %v3196_v28  ;;  %3318 = vadd.xlane.f32.xlu0 %v3317_v39  ;;  %v3308_v52 = vadd.f32 %v7395_v40, %v7391_v14  ;;  %v3262_v44 = vpop.xlane.xlu1 %3261 }
0x1201   :  { %5541 = vrcp.f32 %v3277_v41  ;;  %v3405_v62 = vmul.f32 %v5520_v36, %v7197_v19  ;;  %v3404_v42 = vmul.f32 %v5520_v36, %v7192_v9  ;;  %v5522_v18 = vpop.eup %5521 }
0x1202   :  { %v3271_v6 = vpop.xlane.xlu0 %3270  ;;  %3309 = vadd.xlane.f32.xlu1 %v3308_v52  ;;  %v3399_v49 = vmul.f32 %v5522_v18, %v7205_v12  ;;  %v3398_v54 = vmul.f32 %v5522_v18, %v7200_v59  ;;  %v7423_v12 = vadd.f32 %v4854_v50, %v4853_v8  ;;  %v8048_v50 = vld [vmem:[#allocation19_spill] sm:$0xff] }
0x1203   :  { %v3459_v63 = vpack.c.bf16 %v3405_v62, %v3403_v48  ;;  %v3458_v61 = vpack.c.bf16 %v3404_v42, %v3402_v26  ;;  %5543 = vrcp.f32 %v3271_v6 }
0x1204   :  { %v7405_v21 = vpop.eup %5523  ;;  %v3256_v18 = vpop.xlane.xlu1 %3255 }
0x1205   :  { %v7407_v60 = vpop.eup %5525  ;;  %3484 = vmatprep.subr.bf16.mxu1 %v3459_v63 }
0x1206   :  { %v7409_v33 = vpop.eup %5527  ;;  %3485 = vmatpush1.bf16.xpose.msra.mxu1 %v3458_v61  ;;  %v3265_v46 = vpop.xlane.xlu0 %3264  ;;  %v3311_v9 = vadd.f32 %v7407_v60, %v7405_v21  ;;  %v3720_v61 = vsel %vm1444_vm2, %v7423_v12, 0.0 }
0x1207   :  { %v7413_v19 = vpop.eup %5529  ;;  %5545 = vrcp.f32 %v3265_v46 }
0x1208   :  { %v5532_v4 = vpop.eup %5531  ;;  %3312 = vadd.xlane.f32.xlu0 %v3311_v9  ;;  %v3302_v35 = vadd.f32 %v7413_v19, %v7409_v33  ;;  %5547 = vrcp.f32 %v3262_v44 }
0x1209   :  { %v3401_v2 = vmul.f32 %v5532_v4, %v7219_v43  ;;  %v3400_v16 = vmul.f32 %v5532_v4, %v7214_v30  ;;  %v5534_v28 = vpop.eup %5533 }
0x120a   :  { %3303 = vadd.xlane.f32.xlu1 %v3302_v35  ;;  %v5536_v41 = vpop.eup %5535  ;;  %v3259_v43 = vpop.xlane.xlu0 %3258  ;;  %v3395_v30 = vmul.f32 %v5534_v28, %v7225_v53  ;;  %v3394_v63 = vmul.f32 %v5534_v28, %v7221_v11  ;;  %v8046_v35 = vld [vmem:[#allocation23_spill] sm:$0xff] }
0x120b   :  { %v3457_v39 = vpack.c.bf16 %v3401_v2, %v3399_v49  ;;  %v3456_v36 = vpack.c.bf16 %v3400_v16, %v3398_v54  ;;  %5549 = vrcp.f32 %v3259_v43  ;;  %v3391_v46 = vmul.f32 %v5536_v41, %v7233_v27  ;;  %v7438_v49 = vpop.f32.mrf.mxu1  ;;  %v5647_v27 = vld [vmem:[%s7783_s1 + $0x10] sm:$0xff] }
0x120c   :  { %v7421_v48 = vpop.eup %5537  ;;  %5551 = vrcp.f32 %v3256_v18  ;;  %v8047_v54 = vld [vmem:[#allocation28_spill] sm:$0xff]  ;;  %v8050_v18 = vld [vmem:[#allocation29_spill] sm:$0xff] }
0x120d   :  { %v7425_v52 = vpop.eup %5539  ;;  %3486 = vmatprep.subr.bf16.mxu1 %v3457_v39  ;;  %v3390_v16 = vmul.f32 %v5536_v41, %v8047_v54 }
0x120e   :  { %v5542_v62 = vpop.eup %5541  ;;  %3487 = vmatpush1.bf16.xpose.msra.mxu1 %v3456_v36  ;;  %v3305_v59 = vadd.f32 %v7425_v52, %v7421_v48  ;;  %v7447_v36 = vpop.f32.mrf.mxu1 }
0x120f   :  { %v3397_v26 = vmul.f32 %v5542_v62, %v7239_v37  ;;  %v3396_v42 = vmul.f32 %v5542_v62, %v7235_v13 }
0x1210   :  { %v5544_v6 = vpop.eup %5543  ;;  %3306 = vadd.xlane.f32.xlu0 %v3305_v59 }
0x1211   :  { %v3455_v8 = vpack.c.bf16 %v3397_v26, %v3395_v30  ;;  %v3393_v9 = vmul.f32 %v5544_v6, %v7251_v56  ;;  %v3454_v4 = vpack.c.bf16 %v3396_v42, %v3394_v63  ;;  %v3392_v11 = vmul.f32 %v5544_v6, %v7247_v34  ;;  %v2607_v30 = vpop.f32.mrf.mxu1  ;;  %v8049_v42 = vld [vmem:[#allocation44_spill] sm:$0xff] }
0x1212   :  { %v2648_v56 = vmul.f32 %v5647_v27, %v8046_v35  ;;  %v8053_v35 = vld [vmem:[#allocation31_spill] sm:$0xff] }
0x1213   :  { %3488 = vmatprep.subr.bf16.mxu1 %v3455_v8  ;;  %v3453_v53 = vpack.c.bf16 %v3393_v9, %v3391_v46  ;;  %v3452_v39 = vpack.c.bf16 %v3392_v11, %v3390_v16  ;;  %v2608_v6 = vpop.f32.mrf.mxu1  ;;  %v8051_v8 = vld [vmem:[#allocation30_spill] sm:$0xff]  ;;  %v8052_v11 = vld [vmem:[#allocation43_spill] sm:$0xff] }
0x1214   :  { %3721 = vadd.xlane.f32.xlu0 %v3720_v61  ;;  %v5546_v13 = vpop.eup %5545 }
0x1215   :  { %v5548_v37 = vpop.eup %5547  ;;  %v3389_v2 = vmul.f32 %v5546_v13, %v7263_v23  ;;  %v3388_v23 = vmul.f32 %v5546_v13, %v8049_v42 }
0x1216   :  { %3489 = vmatpush1.bf16.xpose.msra.mxu1 %v3454_v4  ;;  %v3387_v28 = vmul.f32 %v5548_v37, %v8048_v50  ;;  %v3386_v63 = vmul.f32 %v5548_v37, %v8050_v18 }
0x1217   :  { %3490 = vmatprep.subr.bf16.mxu1 %v3453_v53 }
0x1218   :  { %v3346_v44 = vpop.xlane.xlu1 %3345  ;;  %v3451_v34 = vpack.c.bf16 %v3389_v2, %v3387_v28  ;;  %v5550_v43 = vpop.eup %5549  ;;  %v3450_v9 = vpack.c.bf16 %v3388_v23, %v3386_v63 }
0x1219   :  { %5553 = vrcp.f32 %v3346_v44  ;;  %v5552_v26 = vpop.eup %5551  ;;  %v3385_v41 = vmul.f32 %v5550_v43, %v7273_v24  ;;  %v3384_v27 = vmul.f32 %v5550_v43, %v8052_v11 }
0x121a   :  { %v3383_v46 = vmul.f32 %v5552_v26, %v8051_v8 }
0x121b   :  { %2661 = vperm.xlu1 %5104, %v2648_v56   ;;  %v3382_v56 = vmul.f32 %v5552_v26, %v8053_v35 }
0x121c   :  { %v3340_v62 = vpop.xlane.xlu1 %3339  ;;  %v3449_v4 = vpack.c.bf16 %v3385_v41, %v3383_v46  ;;  %v8055_v46 = vld [vmem:[#allocation42_spill] sm:$0xff] }
0x121d   :  { %v3448_v2 = vpack.c.bf16 %v3384_v27, %v3382_v56  ;;  %v8058_v27 = vld [vmem:[#allocation41_spill] sm:$0xff]  ;;  %v8060_v56 = vld [vmem:[#allocation38_spill] sm:$0xff] }
0x121e   :  { %3491 = vmatpush1.bf16.xpose.msra.mxu1 %v3452_v39  ;;  %v3349_v59 = vpop.xlane.xlu0 %3348 }
0x121f   :  { %3492 = vmatprep.subr.bf16.mxu1 %v3451_v34  ;;  %5555 = vrcp.f32 %v3349_v59 }
0x1220   :  { %5557 = vrcp.f32 %v3340_v62  ;;  %v3334_v44 = vpop.xlane.xlu1 %3333 }
0x1222   :  { %v3343_v61 = vpop.xlane.xlu0 %3342 }
0x1223   :  { %5559 = vrcp.f32 %v3343_v61 }
0x1224   :  { %v3328_v62 = vpop.xlane.xlu1 %3327 }
0x1226   :  { %3493 = vmatpush1.bf16.xpose.msra.mxu1 %v3450_v9  ;;  %v3337_v53 = vpop.xlane.xlu0 %3336  ;;  %v5554_v13 = vpop.eup %5553 }
0x1227   :  { %3494 = vmatprep.subr.bf16.mxu1 %v3449_v4  ;;  %5561 = vrcp.f32 %v3337_v53  ;;  %v3443_v37 = vmul.f32 %v5554_v13, %v7293_v45  ;;  %v3442_v43 = vmul.f32 %v5554_v13, %v7291_v1  ;;  %v8056_v4 = vld [vmem:[#allocation39_spill] sm:$0xff] }
0x1228   :  { %5563 = vrcp.f32 %v3334_v44  ;;  %v8057_v44 = vld [vmem:[#allocation40_spill] sm:$0xff] }
0x122a   :  { %v3331_v50 = vpop.xlane.xlu0 %3330 }
0x122b   :  { %5565 = vrcp.f32 %v3331_v50 }
0x122c   :  { %v5556_v24 = vpop.eup %5555  ;;  %5567 = vrcp.f32 %v3328_v62  ;;  %v8062_v62 = vld [vmem:[#allocation3_spill] sm:$0xff] }
0x122d   :  { %v3445_v54 = vmul.f32 %v5556_v24, %v7305_v47  ;;  %v5558_v16 = vpop.eup %5557  ;;  %v3444_v28 = vmul.f32 %v5556_v24, %v7301_v55  ;;  %v3733_v47 = vmul.f32 %v7423_v12, %v7423_v12 }
0x122e   :  { %3495 = vmatpush1.bf16.xpose.msra.mxu1 %v3448_v2  ;;  %v3439_v59 = vmul.f32 %v5558_v16, %v7299_v29  ;;  %v3438_v29 = vmul.f32 %v5558_v16, %v7297_v51  ;;  %v8059_v51 = vld [vmem:[#allocation34_spill] sm:$0xff] }
0x122f   :  { %v3479_v39 = vpack.c.bf16 %v3445_v54, %v3443_v37  ;;  %v3478_v26 = vpack.c.bf16 %v3444_v28, %v3442_v43  ;;  %v3734_v55 = vsel %vm1444_vm2, %v3733_v47, 0.0  ;;  %v4856_v37 = vpop.f32.mrf.mxu0 }
0x1230   :  { %v5560_v34 = vpop.eup %5559  ;;  %3735 = vadd.xlane.f32.xlu0 %v3734_v55 }
0x1231   :  { %3496 = vmatprep.subr.bf16.mxu1 %v3479_v39  ;;  %v3441_v30 = vmul.f32 %v5560_v34, %v7317_v10  ;;  %v3440_v1 = vmul.f32 %v5560_v34, %v7313_v38  ;;  %v8054_v10 = vld [vmem:[#allocation37_spill] sm:$0xff]  ;;  %v4857_v54 = vpop.f32.mrf.mxu0  ;;  %v8061_v34 = vmov 0.0  }
0x1232   :  { %v4858_v16 = vadd.f32 %v4857_v54, %v4856_v37 }
0x1233   :  { %v3477_v45 = vpack.c.bf16 %v3441_v30, %v3439_v59  ;;  %v3476_v18 = vpack.c.bf16 %v3440_v1, %v3438_v29 }
0x1234   :  { %v5562_v42 = vpop.eup %5561  ;;  %v4031_v50 = vmax.f32 %v4858_v16, 0.0 }
0x1235   :  { %v5564_v23 = vpop.eup %5563  ;;  %v3437_v6 = vmul.f32 %v5562_v42, %v7329_v15  ;;  %v3436_v9 = vmul.f32 %v5562_v42, %v8055_v46 }
0x1236   :  { %3497 = vmatpush2.bf16.xpose.msra.mxu1 %v3478_v26  ;;  %v3435_v41 = vmul.f32 %v5564_v23, %v8054_v10  ;;  %v3434_v11 = vmul.f32 %v5564_v23, %v8057_v44  ;;  %v4032_v28 = vpack.c.bf16 %v4031_v50, %v4031_v50 }
0x1237   :  { %3498 = vmatprep.subr.bf16.mxu1 %v3477_v45 }
0x1238   :  { %v3475_v63 = vpack.c.bf16 %v3437_v6, %v3435_v41  ;;  %v5566_v61 = vpop.eup %5565  ;;  %v3474_v13 = vpack.c.bf16 %v3436_v9, %v3434_v11  ;;  %v4034_v39 = vsel %vm153_vm0, %v4032_v28, 0 }
0x1239   :  { %v5568_v8 = vpop.eup %5567  ;;  %v3433_v53 = vmul.f32 %v5566_v61, %v8056_v4  ;;  %v3432_v35 = vmul.f32 %v5566_v61, %v8059_v51  ;;  %5008 = vmatpush3.bf16.msra.mxu0 %v4034_v39  ;;  %v8063_v4 = vld [vmem:[#allocation2_spill] sm:$0xff] }
0x123a   :  { %v3431_v38 = vmul.f32 %v5568_v8, %v8058_v27  ;;  %v3430_v24 = vmul.f32 %v5568_v8, %v8060_v56  ;;  %5013 = vmatprep.subr.bf16.mxu0 %v8061_v34 }
0x123c   :  { %v3473_v15 = vpack.c.bf16 %v3433_v53, %v3431_v38  ;;  %v3472_v2 = vpack.c.bf16 %v3432_v35, %v3430_v24  ;;  %5010 = vmatmul.mubr.msk.bf16.vlgmr.msra.gmra.mxu0 %vm146_vm1, %v8062_v62  ;;  %v8064_v38 = vld [vmem:[#allocation7_spill] sm:$0xff] }
0x123d   :  { %5015 = vmatprep.mubr.msk.bf16.mxu0 %vm5685_vm3, %v8061_v34 }
0x123e   :  { %3499 = vmatpush2.bf16.xpose.msra.mxu1 %v3476_v18 }
0x123f   :  { %3500 = vmatprep.subr.bf16.mxu1 %v3475_v63 }
0x1246   :  { %3501 = vmatpush2.bf16.xpose.msra.mxu1 %v3474_v13 }
0x1247   :  { %3502 = vmatprep.subr.bf16.mxu1 %v3473_v15 }
0x124e   :  { %3503 = vmatpush2.bf16.xpose.msra.mxu1 %v3472_v2 }
0x127b   :  { %v3322_v43 = vpop.xlane.xlu1 %3321 }
0x127c   :  { %5569 = vrcp.f32 %v3322_v43 }
0x1281   :  { %v3325_v59 = vpop.xlane.xlu0 %3324 }
0x1282   :  { %5571 = vrcp.f32 %v3325_v59 }
0x1283   :  { %v3316_v30 = vpop.xlane.xlu1 %3315 }
0x1284   :  { %5573 = vrcp.f32 %v3316_v30 }
0x1289   :  { %v3319_v26 = vpop.xlane.xlu0 %3318  ;;  %v5570_v47 = vpop.eup %5569 }
0x128a   :  { %5575 = vrcp.f32 %v3319_v26  ;;  %v3427_v55 = vmul.f32 %v5570_v47, %v7355_v17  ;;  %v3426_v1 = vmul.f32 %v5570_v47, %v7350_v7 }
0x128b   :  { %v3310_v45 = vpop.xlane.xlu1 %3309 }
0x128c   :  { %5577 = vrcp.f32 %v3310_v45  ;;  %v8065_v45 = vmov 0  }
0x128f   :  { %v5572_v42 = vpop.eup %5571 }
0x1290   :  { %v3429_v23 = vmul.f32 %v5572_v42, %v7363_v57  ;;  %v3428_v6 = vmul.f32 %v5572_v42, %v7361_v32 }
0x1291   :  { %v3313_v29 = vpop.xlane.xlu0 %3312  ;;  %v5574_v63 = vpop.eup %5573 }
0x1292   :  { %5579 = vrcp.f32 %v3313_v29  ;;  %v3471_v10 = vpack.c.bf16 %v3429_v23, %v3427_v55  ;;  %v3470_v41 = vpack.c.bf16 %v3428_v6, %v3426_v1  ;;  %v3423_v17 = vmul.f32 %v5574_v63, %v7373_v31 }
0x1293   :  { %v3304_v18 = vpop.xlane.xlu1 %3303  ;;  %v3422_v9 = vmul.f32 %v5574_v63, %v7369_v5 }
0x1294   :  { %3504 = vmatprep.subr.bf16.mxu1 %v3471_v10  ;;  %5581 = vrcp.f32 %v3304_v18 }
0x1295   :  { %3505 = vmatpush2.bf16.xpose.msra.mxu1 %v3470_v41 }
0x1297   :  { %v5576_v61 = vpop.eup %5575  ;;  %v2662_v8 = vpop.permute.xlu1 %2661 }
0x1298   :  { %v2669_v46 = vsub.f32 %v7447_v36, %v2662_v8  ;;  %v3425_v57 = vmul.f32 %v5576_v61, %v7387_v58  ;;  %v3424_v7 = vmul.f32 %v5576_v61, %v7384_v0  ;;  %v2668_v50 = vsub.f32 %v7438_v49, %v2662_v8 }
0x1299   :  { %v3307_v32 = vpop.xlane.xlu0 %3306  ;;  %v5578_v27 = vpop.eup %5577 }
0x129a   :  { %5583 = vrcp.f32 %v3307_v32  ;;  %v2676_v53 = vmul.f32 %v8063_v4, %v2669_v46  ;;  %v3469_v44 = vpack.c.bf16 %v3425_v57, %v3423_v17  ;;  %v3468_v11 = vpack.c.bf16 %v3424_v7, %v3422_v9 }
0x129b   :  { %v3419_v58 = vmul.f32 %v5578_v27, %v7395_v40  ;;  %v3418_v35 = vmul.f32 %v5578_v27, %v7391_v14  ;;  %v2675_v43 = vmul.f32 %v8063_v4, %v2668_v50  ;;  %v3668_v9 = vpack.c.bf16 %v7423_v12, %v7423_v12  ;;  %v8068_v27 = vld [vmem:[#allocation11_spill] sm:$0xff] }
0x129c   :  { %3506 = vmatprep.subr.bf16.mxu1 %v3469_v44  ;;  %v2682_v13 = vadd.f32 %v2676_v53, %v8064_v38  ;;  %v8066_v53 = vld [vmem:[#allocation10_spill] sm:$0xff] }
0x129d   :  { %3507 = vmatpush2.bf16.xpose.msra.mxu1 %v3468_v11  ;;  %v3722_v36 = vpop.xlane.xlu0 %3721  ;;  %v2681_v49 = vadd.f32 %v2675_v43, %v8064_v38  ;;  %v3670_v44 = vsel %vm153_vm0, %v3668_v9, 0  ;;  %v8067_v11 = vld [vmem:[#allocation8_spill] sm:$0xff] }
0x129e   :  { %v3723_v15 = vrot.slane %v3722_v36, 4  ;;  %v3447_v31 = vpack.c.bf16 %v2682_v13, %v2682_v13 }
0x129f   :  { %v5580_v51 = vpop.eup %5579  ;;  %v3446_v26 = vpack.c.bf16 %v2681_v49, %v2681_v49 }
0x12a0   :  { %v3724_v0 = vadd.f32 %v3723_v15, %v3722_v36  ;;  %3512 = vmatprep.mubr.bf16.mxu1 %v3447_v31  ;;  %v3421_v5 = vmul.f32 %v5580_v51, %v7407_v60  ;;  %v3420_v56 = vmul.f32 %v5580_v51, %v7405_v21 }
0x12a1   :  { %v5582_v54 = vpop.eup %5581 }
0x12a2   :  { %v3725_v24 = vrot.slane %v3724_v0, 2  ;;  %v3467_v2 = vpack.c.bf16 %v3421_v5, %v3419_v58  ;;  %v3466_v37 = vpack.c.bf16 %v3420_v56, %v3418_v35  ;;  %v3415_v40 = vmul.f32 %v5582_v54, %v7413_v19 }
0x12a3   :  { %v3414_v14 = vmul.f32 %v5582_v54, %v7409_v33  ;;  %v5648_v33 = vld [vmem:[%s7783_s1 + $0x38] sm:$0xff] }
0x12a4   :  { %3508 = vmatprep.subr.bf16.mxu1 %v3467_v2  ;;  %v3726_v16 = vadd.f32 %v3725_v24, %v3724_v0  ;;  %v8069_v2 = vld [vmem:[#allocation15_spill] sm:$0xff] }
0x12a5   :  { %3509 = vmatpush2.bf16.xpose.msra.mxu1 %v3466_v37 }
0x12a6   :  { %v3727_v28 = vrot.slane %v3726_v16, 1 }
0x12a7   :  { %v5584_v39 = vpop.eup %5583 }
0x12a8   :  { %v3728_v62 = vadd.f32 %v3727_v28, %v3726_v16  ;;  %v3417_v60 = vmul.f32 %v5584_v39, %v7425_v52  ;;  %v3416_v21 = vmul.f32 %v5584_v39, %v7421_v48  ;;  %v5649_v52 = vld [vmem:[%s7783_s1 + $0x40] sm:$0xff]  ;;  %v8070_v28 = vld [vmem:[#allocation25_spill] sm:$0xff] }
0x12aa   :  { %5079 = vpush %v3728_v62  ;;  %v3465_v59 = vpack.c.bf16 %v3417_v60, %v3415_v40  ;;  %v3464_v30 = vpack.c.bf16 %v3416_v21, %v3414_v14 }
0x12ac   :  { %3510 = vmatprep.subr.bf16.mxu1 %v3465_v59 }
0x12ad   :  { %3511 = vmatpush2.bf16.xpose.msra.mxu1 %v3464_v30 }
0x12b4   :  { %3513 = vmatmul.mubr.bf16.vlgmr.msra.gmra.mxu1 %v3446_v26 }
0x12b5   :  { %3616 = vmatprep.mubr.bf16.mxu1 %v8065_v45 }
0x12b9   :  { %v3736_v42 = vpop.xlane.xlu0 %3735 }
0x12ba   :  { %v3737_v55 = vrot.slane %v3736_v42, 4 }
0x12bc   :  { %v3738_v23 = vadd.f32 %v3737_v55, %v3736_v42 }
0x12be   :  { %v3739_v1 = vrot.slane %v3738_v23, 2 }
0x12c0   :  { %v3740_v6 = vadd.f32 %v3739_v1, %v3738_v23 }
0x12c2   :  { %v3741_v29 = vrot.slane %v3740_v6, 1 }
0x12c4   :  { %v3742_v10 = vadd.f32 %v3741_v29, %v3740_v6 }
0x12c6   :  { %5081 = vpush %v3742_v10 }
0x12db   :  { %s5080_s17 = spop %5079 }
0x12dc   :  { %s3732_s18 = smul.f32 0.001953125, %s5080_s17 }
0x12de   :  { %v7503_v19 = vstv %s3732_s18  ;;  %s3747_s23 = smul.f32 %s3732_s18, %s3732_s18 }
0x12df   :  { %v3755_v48 = vmul.f32 %v5648_v33, %v7503_v19  ;;  %v3756_v47 = vmul.f32 %v5649_v52, %v7503_v19 }
0x12e1   :  { %3765 = vperm.xlu1 %5104, %v3756_v47   ;;  %3760 = vperm.xlu0 %5103, %v3755_v48  }
0x12f7   :  { %s5082_s24 = spop %5081 }
0x12f8   :  { %s3746_s25 = smul.f32 0.001953125, %s5082_s24 }
0x12fa   :  { %s3748_s26 = ssub.f32 %s3746_s25, %s3747_s23 }
0x12fc   :  { %s3749_s27 = smax.f32 %s5682_s15, %s3748_s26 }
0x12fd   :  { %s3750_s28 = sadd.f32 1e-05, %s3749_s27 }
0x12ff   :  { %v3751_v41 = vstv %s3750_s28 }
0x1300   :  { %5585 = vrsqrt.f32 %v3751_v41 }
0x130d   :  { %v5586_v18 = vpop.eup %5585 }
0x130e   :  { %5083 = vpush %v5586_v18 }
0x133f   :  { %s5084_s29 = spop %5083 }
0x1340   :  { %v7536_v0 = vstv %s5084_s29 }
0x135c   :  { %v3761_v31 = vpop.permute.xlu0 %3760  ;;  %v3766_v56 = vpop.permute.xlu1 %3765 }
0x1374   :  { %v3514_v63 = vpop.f32.mrf.mxu1 }
0x1375   :  { %v3521_v61 = vmax.f32 %v3514_v63, 0.0 }
0x1376   :  { %v3516_v8 = vpop.f32.mrf.mxu1 }
0x1377   :  { %v3523_v46 = vpack.c.bf16 %v3521_v61, %v3521_v61  ;;  %v3522_v17 = vmax.f32 %v3516_v8, 0.0 }
0x1378   :  { %v3518_v57 = vpop.f32.mrf.mxu1 }
0x1379   :  { %v3524_v7 = vpack.c.bf16 %v3522_v17, %v3522_v17  ;;  %v3579_v4 = vsel %vm153_vm0, %v3523_v46, 0 }
0x137a   :  { %v3519_v32 = vpop.f32.mrf.mxu1 }
0x137b   :  { %4742 = vmatprep.subr.msk.bf16.mxu1 %vm153_vm0, %v3524_v7 }
0x137c   :  { %3599 = vmatpush1.bf16.msra.mxu1 %v3579_v4 }
0x137d   :  { %5052 = vmatprep.subr.msk.bf16.mxu1 %vm153_vm0, %v3668_v9 }
0x137f   :  { %4743 = vmatmul.mubr.msk.bf16.vlgmr.msra.gmra.mxu1 %vm146_vm1, %v8066_v53 }
0x1380   :  { %4980 = vmatpush3.bf16.msra.mxu1 %v3670_v44  ;;  %4981 = vmatprep.mubr.msk.bf16.mxu1 %vm146_vm1, %v8067_v11 }
0x1387   :  { %4982 = vmatmul.mubr.msk.bf16.vlgmr.msra.gmra.mxu1 %vm146_vm1, %v8068_v27 }
0x143f   :  { %v7526_v12 = vpop.f32.mrf.mxu1 }
0x1441   :  { %v7528_v38 = vpop.f32.mrf.mxu1 }
0x1443   :  { %v7530_v13 = vpop.f32.mrf.mxu1 }
0x1445   :  { %v7532_v36 = vpop.f32.mrf.mxu1 }
0x1447   :  { %v7534_v15 = vpop.f32.mrf.mxu1 }
0x1449   :  { %v3706_v51 = vpop.f32.mrf.mxu1 }
0x144a   :  { %v3773_v58 = vsub.f32 %v3706_v51, %v3761_v31 }
0x144b   :  { %v4984_v5 = vpop.f32.mrf.mxu1 }
0x144c   :  { %v3777_v35 = vmul.f32 %v7536_v0, %v3773_v58 }
0x144d   :  { %v3709_v24 = vpop.f32.mrf.mxu1 }
0x144e   :  { %v3780_v37 = vadd.f32 %v3777_v35, %v8069_v2  ;;  %v3774_v54 = vsub.f32 %v3709_v24, %v3766_v56 }
0x1450   :  { %v3783_v16 = vpack.c.bf16 %v3780_v37, %v3780_v37  ;;  %v3778_v50 = vmul.f32 %v7536_v0, %v3774_v54 }
0x1452   :  { %v3781_v39 = vadd.f32 %v3778_v50, %v8070_v28  ;;  %3785 = vxpose.xlu1.c.b16.start.end [1/1] (short) (narrow) %v3783_v16, 64 }
0x1454   :  { %v3784_v40 = vpack.c.bf16 %v3781_v39, %v3781_v39 }
0x1456   :  { %5053 = vmatprep.subr.msk.bf16.mxu1 %vm153_vm0, %v3784_v40  ;;  %v3814_v62 = vsel %vm153_vm0, %v3784_v40, 0 }
0x1457   :  { %4986 = vmatpush3.bf16.msra.mxu1 %v3814_v62 }
0x1458   :  { %4995 = vmatprep.subr.bf16.mxu1 %v8061_v34 }
0x14b4   :  { %v3793_v60 = vpop.trf.xlu1 }
0x14b5   :  { %4987 = vmatprep.mubr.msk.bf16.mxu1 %vm146_vm1, %v3793_v60 }
0x14b8   :  { %v3794_v14 = vpop.trf.xlu1 }
0x14b9   :  { %4988 = vmatmul.mubr.msk.bf16.vlgmr.msra.gmra.mxu1 %vm146_vm1, %v3794_v14 }
0x14bc   :  { %v3795_v21 = vpop.trf.xlu1 }
0x14bd   :  { %4991 = vmatprep.mubr.msk.bf16.mxu1 %vm146_vm1, %v3795_v21 }
0x14c0   :  { %v3796_v43 = vpop.trf.xlu1 }
0x14c1   :  { %4992 = vmatmul.mubr.msk.bf16.gmra.mxu1 %vm146_vm1, %v3796_v43 }
0x14c2   :  { %5003 = vmatprep.mubr.msk.bf16.mxu1 %vm5685_vm3, %v8061_v34 }
0x1579   :  { %v4989_v59 = vpop.f32.mrf.mxu1 }
0x157a   :  { %v3887_v29 = vsel %vm1444_vm2, %v4989_v59, -inf }
0x157b   :  { %v3850_v30 = vpop.f32.mrf.mxu1 }
0x157c   :  { %v3881_v41 = vsel %vm1444_vm2, %v3850_v30, -inf }
0x157d   :  { %v4990_v49 = vpop.f32.mrf.mxu1 }
0x157e   :  { %v3890_v10 = vsel %vm1444_vm2, %v4990_v49, -inf }
0x157f   :  { %v3853_v26 = vpop.f32.mrf.mxu1 }
0x1580   :  { %v3884_v1 = vsel %vm1444_vm2, %v3853_v26, -inf }
0x1581   :  { %v4993_v33 = vpop.f32.mrf.mxu1 }
0x1582   :  { %v3899_v48 = vsel %vm1444_vm2, %v4993_v33, -inf }
0x1583   :  { %3900 = vmax.xlane.f32.xlu0 %v3899_v48  ;;  %v3866_v52 = vpop.f32.mrf.mxu1  ;;  %v5650_v48 = vld [vmem:[%s7783_s1 + $0x48] sm:$0xff] }
0x1584   :  { %v3893_v42 = vsel %vm1444_vm2, %v3866_v52, -inf }
0x1585   :  { %v4994_v47 = vpop.f32.mrf.mxu1 }
0x1586   :  { %v3902_v55 = vsel %vm1444_vm2, %v4994_v47, -inf }
0x1587   :  { %3894 = vmax.xlane.f32.xlu0 %v3893_v42  ;;  %3903 = vmax.xlane.f32.xlu1 %v3902_v55  ;;  %v3869_v23 = vpop.f32.mrf.mxu1 }
0x1588   :  { %v3896_v6 = vsel %vm1444_vm2, %v3869_v23, -inf }
0x158b   :  { %3885 = vmax.xlane.f32.xlu1 %v3884_v1  ;;  %3897 = vmax.xlane.f32.xlu0 %v3896_v6 }
0x158f   :  { %3888 = vmax.xlane.f32.xlu0 %v3887_v29 }
0x1593   :  { %3891 = vmax.xlane.f32.xlu0 %v3890_v10 }
0x1597   :  { %3882 = vmax.xlane.f32.xlu0 %v3881_v41 }
0x160c   :  { %v3901_v18 = vpop.xlane.xlu0 %3900 }
0x160d   :  { %v3911_v63 = vsub.f32 %v4993_v33, %v3901_v18 }
0x160f   :  { %v3925_v61 = vmul.f32 1.442695, %v3911_v63 }
0x1610   :  { %v3895_v8 = vpop.xlane.xlu0 %3894  ;;  %v3904_v46 = vpop.xlane.xlu1 %3903 }
0x1611   :  { %5587 = vpow2.f32 %v3925_v61  ;;  %v3909_v17 = vsub.f32 %v3866_v52, %v3895_v8  ;;  %v3912_v57 = vsub.f32 %v4994_v47, %v3904_v46  ;;  %v3757_v52 = vmul.f32 %v5650_v48, %v7503_v19  ;;  %v5664_v48 = vld [vmem:[%s7785_s4 + $0x8] sm:$0xff]  }
0x1613   :  { %v3921_v7 = vmul.f32 1.442695, %v3909_v17  ;;  %v3927_v32 = vmul.f32 1.442695, %v3912_v57 }
0x1614   :  { %v3898_v9 = vpop.xlane.xlu0 %3897  ;;  %v3886_v44 = vpop.xlane.xlu1 %3885 }
0x1615   :  { %5589 = vpow2.f32 %v3921_v7  ;;  %v3910_v4 = vsub.f32 %v3869_v23, %v3898_v9  ;;  %v3906_v31 = vsub.f32 %v3853_v26, %v3886_v44 }
0x1616   :  { %5591 = vpow2.f32 %v3927_v32 }
0x1617   :  { %v3923_v53 = vmul.f32 1.442695, %v3910_v4  ;;  %v3915_v56 = vmul.f32 1.442695, %v3906_v31 }
0x1618   :  { %v3889_v11 = vpop.xlane.xlu0 %3888 }
0x1619   :  { %v3907_v27 = vsub.f32 %v4989_v59, %v3889_v11  ;;  %5593 = vpow2.f32 %v3923_v53 }
0x161b   :  { %v3917_v51 = vmul.f32 1.442695, %v3907_v27 }
0x161c   :  { %v3892_v58 = vpop.xlane.xlu0 %3891 }
0x161d   :  { %5595 = vpow2.f32 %v3917_v51  ;;  %v3908_v5 = vsub.f32 %v4990_v49, %v3892_v58 }
0x161e   :  { %v5588_v35 = vpop.eup %5587 }
0x161f   :  { %v3919_v24 = vmul.f32 1.442695, %v3908_v5  ;;  %v3947_v2 = vsel %vm1444_vm2, %v5588_v35, 0.0 }
0x1620   :  { %3948 = vadd.xlane.f32.xlu0 %v3947_v2  ;;  %v3883_v37 = vpop.xlane.xlu0 %3882 }
0x1621   :  { %5597 = vpow2.f32 %v3919_v24  ;;  %v3905_v54 = vsub.f32 %v3850_v30, %v3883_v37 }
0x1622   :  { %v5590_v16 = vpop.eup %5589  ;;  %5599 = vpow2.f32 %v3915_v56 }
0x1623   :  { %v5592_v50 = vpop.eup %5591  ;;  %v3913_v28 = vmul.f32 1.442695, %v3905_v54  ;;  %v3941_v39 = vsel %vm1444_vm2, %v5590_v16, 0.0 }
0x1624   :  { %v3950_v40 = vsel %vm1444_vm2, %v5592_v50, 0.0  ;;  %3942 = vadd.xlane.f32.xlu0 %v3941_v39 }
0x1625   :  { %5601 = vpow2.f32 %v3913_v28  ;;  %3951 = vadd.xlane.f32.xlu1 %v3950_v40  ;;  %v5651_v28 = vld [vmem:[%s7785_s4 + $0x78] sm:$0xff]  }
0x1626   :  { %v5594_v62 = vpop.eup %5593  ;;  %v8072_v40 = vld [vmem:[#allocation33_spill] sm:$0xff] }
0x1627   :  { %v3944_v60 = vsel %vm1444_vm2, %v5594_v62, 0.0 }
0x1629   :  { %3945 = vadd.xlane.f32.xlu1 %v3944_v60  ;;  %v5655_v60 = vld [vmem:[%s7785_s4 + $0x68] sm:$0xff]  }
0x162a   :  { %v5596_v14 = vpop.eup %5595 }
0x162b   :  { %v3935_v21 = vsel %vm1444_vm2, %v5596_v14, 0.0 }
0x162c   :  { %3936 = vadd.xlane.f32.xlu0 %v3935_v21  ;;  %v5657_v21 = vld [vmem:[%s7785_s4 + $0x60] sm:$0xff]  }
0x162e   :  { %v5598_v43 = vpop.eup %5597 }
0x162f   :  { %v3938_v59 = vsel %vm1444_vm2, %v5598_v43, 0.0  ;;  %v5600_v30 = vpop.eup %5599 }
0x1630   :  { %3939 = vadd.xlane.f32.xlu1 %v3938_v59  ;;  %v3932_v26 = vsel %vm1444_vm2, %v5600_v30, 0.0  ;;  %v5659_v59 = vld [vmem:[%s7785_s4 + $0x58] sm:$0xff]  }
0x1632   :  { %v5602_v49 = vpop.eup %5601 }
0x1633   :  { %v3929_v33 = vsel %vm1444_vm2, %v5602_v49, 0.0 }
0x1634   :  { %3933 = vadd.xlane.f32.xlu1 %v3932_v26  ;;  %3930 = vadd.xlane.f32.xlu0 %v3929_v33  ;;  %v5662_v26 = vld [vmem:[%s7785_s4 + $0x10] sm:$0xff]   ;;  %v5663_v33 = vld [vmem:[%s7785_s4 + $0x48] sm:$0xff]  }
0x164a   :  { %3770 = vperm.xlu0 %5103, %v3757_v52   ;;  %v5665_v52 = vld [vmem:[%s7785_s4 + $0x40] sm:$0xff]  }
0x16a9   :  { %v3949_v47 = vpop.xlane.xlu0 %3948 }
0x16aa   :  { %5603 = vrcp.f32 %v3949_v47  ;;  %v5666_v47 = vld [vmem:[%s7785_s4] sm:$0xff]  }
0x16ad   :  { %v3943_v55 = vpop.xlane.xlu0 %3942 }
0x16ae   :  { %v3952_v42 = vpop.xlane.xlu1 %3951 }
0x16af   :  { %5605 = vrcp.f32 %v3952_v42  ;;  %v8073_v42 = vld [vmem:[#allocation32_spill] sm:$0xff] }
0x16b0   :  { %5607 = vrcp.f32 %v3943_v55 }
0x16b2   :  { %v3946_v23 = vpop.xlane.xlu1 %3945 }
0x16b3   :  { %5609 = vrcp.f32 %v3946_v23 }
0x16b5   :  { %v3937_v1 = vpop.xlane.xlu0 %3936 }
0x16b7   :  { %v5604_v29 = vpop.eup %5603 }
0x16b8   :  { %v3967_v18 = vmul.f32 %v5604_v29, %v5588_v35 }
0x16b9   :  { %v3940_v6 = vpop.xlane.xlu1 %3939 }
0x16ba   :  { %5611 = vrcp.f32 %v3940_v6 }
0x16bb   :  { %5613 = vrcp.f32 %v3937_v1 }
0x16bc   :  { %v5606_v10 = vpop.eup %5605 }
0x16bd   :  { %v3934_v41 = vpop.xlane.xlu1 %3933  ;;  %v3968_v63 = vmul.f32 %v5606_v10, %v5592_v50  ;;  %v3931_v61 = vpop.xlane.xlu0 %3930 }
0x16be   :  { %v5608_v19 = vpop.eup %5607  ;;  %5615 = vrcp.f32 %v3934_v41 }
0x16bf   :  { %v3973_v8 = vpack.c.bf16 %v3968_v63, %v3967_v18  ;;  %5617 = vrcp.f32 %v3931_v61  ;;  %v3965_v7 = vmul.f32 %v5608_v19, %v5590_v16  ;;  %v8071_v16 = vld [vmem:[#allocation12_spill] sm:$0xff]  ;;  %v5669_v19 = vld [vmem:[%s7786_s3 + $0x24] ss:$8 sps:$4 sm:$0xff]  }
0x16c0   :  { %v5610_v46 = vpop.eup %5609  ;;  %v5667_v18 = vld [vmem:[%s7786_s3 + $0x34] ss:$8 sps:$4 sm:$0xff]   ;;  %v5668_v61 = vld [vmem:[%s7786_s3 + $0x30] ss:$8 sps:$4 sm:$0xff]  }
0x16c1   :  { %v3987_v17 = vsel %vm1444_vm2, %v3973_v8, 0  ;;  %v3966_v57 = vmul.f32 %v5610_v46, %v5594_v62  ;;  %v5654_v62 = vld [vmem:[%s7785_s4 + $0x30] sm:$0xff]   ;;  %v5670_v8 = vld [vmem:[%s7786_s3 + $0x20] ss:$8 sps:$4 sm:$0xff]  }
0x16c2   :  { %4996 = vmatpush3.bf16.xpose.msra.mxu1 %v3987_v17  ;;  %v8074_v63 = vld [vmem:[#allocation16_spill] sm:$0xff] }
0x16c3   :  { %4997 = vmatprep.subr.bf16.mxu1 %v8061_v34  ;;  %v3972_v32 = vpack.c.bf16 %v3966_v57, %v3965_v7  ;;  %v5671_v46 = vld [vmem:[%s7786_s3 + $0x14] ss:$8 sps:$4 sm:$0xff]   ;;  %v5672_v17 = vld [vmem:[%s7786_s3 + $0x10] ss:$8 sps:$4 sm:$0xff]   ;;  %v5673_v57 = vld [vmem:[%s7786_s3 + $0x4] ss:$8 sps:$4 sm:$0xff]  }
0x16c4   :  { %v5674_v7 = vld [vmem:[%s7786_s3] ss:$8 sps:$4 sm:$0xff]  }
0x16c5   :  { %v3984_v53 = vsel %vm1444_vm2, %v3972_v32, 0  ;;  %v3771_v58 = vpop.permute.xlu0 %3770 }
0x16c6   :  { %v3775_v24 = vsub.f32 %v7534_v15, %v3771_v58  ;;  %v5652_v15 = vld [vmem:[%s7785_s4 + $0x38] sm:$0xff]  }
0x16c7   :  { %v5612_v9 = vpop.eup %5611 }
0x16c8   :  { %v5614_v4 = vpop.eup %5613  ;;  %v3964_v44 = vmul.f32 %v5612_v9, %v5598_v43  ;;  %v3779_v37 = vmul.f32 %v7536_v0, %v3775_v24  ;;  %v5653_v0 = vld [vmem:[%s7785_s4 + $0x70] sm:$0xff]   ;;  %v5658_v43 = vld [vmem:[%s7785_s4 + $0x20] sm:$0xff]  }
0x16c9   :  { %v3963_v11 = vmul.f32 %v5614_v4, %v5596_v14  ;;  %v5656_v14 = vld [vmem:[%s7785_s4 + $0x28] sm:$0xff]  }
0x16ca   :  { %4998 = vmatpush3.bf16.xpose.msra.mxu1 %v3984_v53  ;;  %v3782_v50 = vadd.f32 %v3779_v37, %v8071_v16  ;;  %v5675_v24 = vld [vmem:[%s7787_s5 + $0x4] ss:$8 sps:$4 sm:$0xff]   ;;  %v5676_v37 = vld [vmem:[%s7787_s5] ss:$8 sps:$4 sm:$0xff]  }
0x16cb   :  { %4999 = vmatprep.subr.bf16.mxu1 %v8061_v34  ;;  %v5616_v27 = vpop.eup %5615  ;;  %v3971_v31 = vpack.c.bf16 %v3964_v44, %v3963_v11 }
0x16cc   :  { %v5618_v51 = vpop.eup %5617  ;;  %v3962_v56 = vmul.f32 %v5616_v27, %v5600_v30  ;;  %v3969_v39 = vpack.c.bf16 %v3782_v50, %v3782_v50  ;;  %v5660_v30 = vld [vmem:[%s7785_s4 + $0x18] sm:$0xff]  }
0x16cd   :  { %v3981_v5 = vsel %vm1444_vm2, %v3971_v31, 0  ;;  %v3961_v35 = vmul.f32 %v5618_v51, %v5602_v49  ;;  %v5661_v49 = vld [vmem:[%s7785_s4 + $0x50] sm:$0xff]  }
0x16cf   :  { %v3970_v2 = vpack.c.bf16 %v3962_v56, %v3961_v35 }
0x16d1   :  { %v3978_v54 = vsel %vm1444_vm2, %v3970_v2, 0  ;;  %v8075_v2 = vld [vmem:[#allocation4_spill] sm:$0xff] }
0x16d2   :  { %5000 = vmatpush3.bf16.xpose.msra.mxu1 %v3981_v5 }
0x16d3   :  { %5001 = vmatprep.subr.bf16.mxu1 %v8061_v34 }
0x16da   :  { %5002 = vmatpush3.bf16.xpose.msra.mxu1 %v3978_v54  ;;  %v4070_v54 = vpop.f32.mrf.mxu0 }
0x16db   :  { %4876 = vmatprep.subr.bf16.mxu1 %v5651_v28 }
0x16dc   :  { %v5011_v16 = vpop.f32.mrf.mxu0 }
0x16de   :  { %v4073_v50 = vpop.f32.mrf.mxu0 }
0x16e0   :  { %v5012_v28 = vpop.f32.mrf.mxu0 }
0x16e1   :  { %5004 = vmatmul.mubr.msk.bf16.vlgmr.msra.gmra.mxu1 %vm1444_vm2, %v3969_v39 }
0x16e2   :  { %4877 = vmatpush3.bf16.msra.mxu1 %v5652_v15  ;;  %4204 = vmatprep.mubr.bf16.mxu1 %v8072_v40 }
0x16e3   :  { %4878 = vmatprep.subr.bf16.mxu1 %v5653_v0 }
0x16e6   :  { %4879 = vmatpush3.bf16.msra.mxu1 %v5654_v62 }
0x16e7   :  { %4880 = vmatprep.subr.bf16.mxu1 %v5655_v60 }
0x16ea   :  { %4881 = vmatpush3.bf16.msra.mxu1 %v5656_v14 }
0x16eb   :  { %4882 = vmatprep.subr.bf16.mxu1 %v5657_v21 }
0x16ee   :  { %4883 = vmatpush3.bf16.msra.mxu1 %v5658_v43 }
0x16ef   :  { %4884 = vmatprep.subr.bf16.mxu1 %v5659_v59 }
0x16f2   :  { %4885 = vmatpush3.bf16.msra.mxu1 %v5660_v30 }
0x16f3   :  { %4886 = vmatprep.subr.bf16.mxu1 %v5661_v49 }
0x16f6   :  { %4887 = vmatpush3.bf16.msra.mxu1 %v5662_v26 }
0x16f7   :  { %4888 = vmatprep.subr.bf16.mxu1 %v5663_v33 }
0x16fa   :  { %4889 = vmatpush3.bf16.msra.mxu1 %v5664_v48 }
0x16fb   :  { %4890 = vmatprep.subr.bf16.mxu1 %v5665_v52 }
0x16fe   :  { %4891 = vmatpush3.bf16.msra.mxu1 %v5666_v47 }
0x16ff   :  { %5037 = vmatprep.subr.bf16.mxu1 %v8061_v34 }
0x1701   :  { %4205 = vmatmul.mubr.bf16.vlgmr.msra.gmra.mxu1 %v8073_v42 }
0x1702   :  { %5039 = vmatprep.mubr.msk.bf16.mxu1 %vm5685_vm3, %v8061_v34 }
0x17a1   :  { %v4023_v55 = vpop.f32.mrf.mxu1 }
0x17a2   :  { %v4029_v23 = vmax.f32 %v4023_v55, 0.0 }
0x17a3   :  { %v5005_v1 = vpop.f32.mrf.mxu1 }
0x17a4   :  { %v4030_v6 = vpack.c.bf16 %v4029_v23, %v4029_v23 }
0x17a5   :  { %v4026_v29 = vpop.f32.mrf.mxu1 }
0x17a6   :  { %v4078_v10 = vsel %vm153_vm0, %v4030_v6, 0  ;;  %v8076_v29 = vld [vmem:[#allocation13_spill] sm:$0xff] }
0x17a7   :  { %v5006_v41 = vpop.f32.mrf.mxu1  ;;  %5014 = vmatpush3.bf16.msra.mxu0 %v4078_v10  ;;  %v8077_v10 = vld [vmem:[#allocation14_spill] sm:$0xff] }
0x17a8   :  { %4133 = vmatprep.subr.bf16.mxu0 %v5667_v18  ;;  %v5677_v18 = vld [vmem:[%s7783_s1 + $0x70] sm:$0xff] }
0x17aa   :  { %5016 = vmatmul.mubr.msk.bf16.vlgmr.msra.gmra.mxu0 %vm146_vm1, %v8074_v63 }
0x17ab   :  { %4134 = vmatpush1.bf16.msra.mxu0 %v5668_v61  ;;  %4157 = vmatprep.mubr.bf16.mxu0 %v8065_v45  ;;  %v5678_v61 = vld [vmem:[%s7783_s1 + $0x78] sm:$0xff] }
0x17ac   :  { %4135 = vmatprep.subr.bf16.mxu0 %v5669_v19 }
0x17af   :  { %4136 = vmatpush1.bf16.msra.mxu0 %v5670_v8 }
0x17b0   :  { %4137 = vmatprep.subr.bf16.mxu0 %v5671_v46 }
0x17b3   :  { %4138 = vmatpush1.bf16.msra.mxu0 %v5672_v17  ;;  %v3619_v17 = vadd.f32 %v7526_v12, %v7367_v3 }
0x17b4   :  { %4139 = vmatprep.subr.bf16.mxu0 %v5673_v57 }
0x17b7   :  { %4140 = vmatpush1.bf16.msra.mxu0 %v5674_v7  ;;  %v3621_v7 = vadd.f32 %v7528_v38, %v7381_v20 }
0x17c1   :  { %v4892_v32 = vpop.f32.mrf.mxu1 }
0x17c3   :  { %v4893_v9 = vpop.f32.mrf.mxu1 }
0x17c4   :  { %v4894_v4 = vadd.f32 %v4893_v9, %v4892_v32 }
0x17c5   :  { %v4895_v53 = vpop.f32.mrf.mxu1 }
0x17c6   :  { %v4213_v44 = vpack.c.bf16 %v4894_v4, %v4894_v4  ;;  %v4265_v11 = vsel %vm2153_vm4, %v4894_v4, 0.0  ;;  %v4278_v27 = vmul.f32 %v4894_v4, %v4894_v4  ;;  %v3623_v4 = vadd.f32 %v7530_v13, %v7389_v22 }
0x17c7   :  { %4266 = vadd.xlane.f32.xlu1 %v4265_v11  ;;  %v4896_v31 = vpop.f32.mrf.mxu1 }
0x17c8   :  { %v4897_v51 = vadd.f32 %v4896_v31, %v4895_v53  ;;  %v4279_v58 = vsel %vm2153_vm4, %v4278_v27, 0.0  ;;  %5054 = vmatprep.subr.msk.bf16.mxu0 %vm153_vm0, %v4213_v44  ;;  %v4215_v6 = vsel %vm153_vm0, %v4213_v44, 0  ;;  %v3625_v44 = vadd.f32 %v7532_v36, %v7403_v25 }
0x17ca   :  { %v4465_v5 = vmax.f32 %v4897_v51, 0.0 }
0x17cb   :  { %4280 = vadd.xlane.f32.xlu1 %v4279_v58 }
0x17cc   :  { %v4466_v35 = vpack.c.bf16 %v4465_v5, %v4465_v5 }
0x17ce   :  { %v4468_v56 = vsel %vm153_vm0, %v4466_v35, 0  ;;  %v8078_v35 = vld [vmem:[#allocation20_spill] sm:$0xff] }
0x17cf   :  { %5038 = vmatpush3.bf16.msra.mxu1 %v4468_v56 }
0x17d0   :  { %4573 = vmatprep.subr.bf16.mxu1 %v5675_v24 }
0x17d2   :  { %5040 = vmatmul.mubr.msk.bf16.vlgmr.msra.gmra.mxu1 %vm146_vm1, %v8075_v2  ;;  %v8079_v2 = vld [vmem:[#allocation17_spill] sm:$0xff] }
0x17d3   :  { %4574 = vmatpush1.bf16.msra.mxu1 %v5676_v37  ;;  %4591 = vmatprep.mubr.bf16.mxu1 %v8065_v45 }
0x1850   :  { %v4267_v39 = vpop.xlane.xlu1 %4266 }
0x1851   :  { %v4268_v15 = vrot.slane %v4267_v39, 4 }
0x1853   :  { %v4269_v40 = vadd.f32 %v4268_v15, %v4267_v39 }
0x1854   :  { %v4281_v0 = vpop.xlane.xlu1 %4280 }
0x1855   :  { %v4270_v62 = vrot.slane %v4269_v40, 2  ;;  %v4282_v60 = vrot.slane %v4281_v0, 4 }
0x1857   :  { %v4271_v14 = vadd.f32 %v4270_v62, %v4269_v40  ;;  %v4283_v21 = vadd.f32 %v4282_v60, %v4281_v0  ;;  %v5679_v60 = vld [vmem:[%s7783_s1 + $0x80] sm:$0xff] }
0x1859   :  { %v4272_v43 = vrot.slane %v4271_v14, 1  ;;  %v4284_v59 = vrot.slane %v4283_v21, 2 }
0x185b   :  { %v4273_v30 = vadd.f32 %v4272_v43, %v4271_v14  ;;  %v4285_v49 = vadd.f32 %v4284_v59, %v4283_v21 }
0x185d   :  { %5085 = vpush %v4273_v30  ;;  %v4286_v26 = vrot.slane %v4285_v49, 1 }
0x185f   :  { %v4287_v33 = vadd.f32 %v4286_v26, %v4285_v49 }
0x1861   :  { %5087 = vpush %v4287_v33 }
0x186a   :  { %v4114_v48 = vpop.f32.mrf.mxu0 }
0x186b   :  { %v4115_v42 = vadd.f32 %v4114_v48, %v4070_v54 }
0x186c   :  { %v5017_v52 = vpop.f32.mrf.mxu0 }
0x186e   :  { %v4117_v47 = vpop.f32.mrf.mxu0 }
0x186f   :  { %v4118_v55 = vadd.f32 %v4117_v47, %v4073_v50 }
0x1870   :  { %v5018_v23 = vpop.f32.mrf.mxu0 }
0x1871   :  { %v4121_v1 = vpack.c.bf16 %v4118_v55, %v4115_v42  ;;  %v136_v42 = vld [vmem:[%s7788_s6] sm:$0xff]  ;;  %v137_v55 = vld [vmem:[%s7788_s6 + $0x8] sm:$0xff] }
0x1873   :  { %4753 = vmatmul.mubr.msk.bf16.vlgmr.msra.gmra.mxu0 %vm1444_vm2, %v4121_v1 }
0x1874   :  { %5020 = vmatpush3.bf16.msra.mxu0 %v4215_v6  ;;  %5021 = vmatprep.mubr.msk.bf16.mxu0 %vm146_vm1, %v8076_v29  ;;  %v8080_v6 = vld [vmem:[#allocation18_spill] sm:$0xff]  ;;  %v8081_v29 = vld [vmem:[#allocation9_spill] sm:$0xff] }
0x1875   :  { %5025 = vmatprep.subr.bf16.mxu0 %v8061_v34 }
0x187b   :  { %5022 = vmatmul.mubr.msk.bf16.vlgmr.msra.gmra.mxu0 %vm146_vm1, %v8077_v10  ;;  %v1247_v10 = vadd.f32 %v8081_v29, %v8080_v6 }
0x187c   :  { %5027 = vmatprep.mubr.msk.bf16.mxu0 %vm5685_vm3, %v8061_v34 }
0x188e   :  { %s5086_s5 = spop %5085 }
0x188f   :  { %s4277_s10 = smul.f32 0.0078125, %s5086_s5 }
0x1891   :  { %s4292_s11 = smul.f32 %s4277_s10, %s4277_s10  ;;  %v4299_v41 = vstv %s4277_s10 }
0x1892   :  { %v4300_v63 = vmul.f32 %v5677_v18, %v4299_v41  ;;  %v4301_v19 = vmul.f32 %v5678_v61, %v4299_v41  ;;  %s5088_s16 = spop %5087  ;;  %v4302_v14 = vmul.f32 %v5679_v60, %v4299_v41  ;;  %v8082_v18 = vld [vmem:[#allocation21_spill] sm:$0xff]  ;;  %v8083_v61 = vld [vmem:[#allocation26_spill] sm:$0xff] }
0x1893   :  { %s4291_s17 = smul.f32 0.0078125, %s5088_s16 }
0x1894   :  { %4310 = vperm.xlu0 %5103, %v4301_v19   ;;  %4305 = vperm.xlu1 %5104, %v4300_v63   ;;  %v1957_v63 = vadd.f32 %v8082_v18, %v1247_v10 }
0x1895   :  { %s4293_s4 = ssub.f32 %s4291_s17, %s4292_s11 }
0x1897   :  { %s4294_s18 = smax.f32 %s5682_s15, %s4293_s4 }
0x1898   :  { %s4295_s19 = sadd.f32 1e-05, %s4294_s18  ;;  %5105 = vset.pattern.permute.xlu1 %v8065_v45 }
0x189a   :  { %v4296_v8 = vstv %s4295_s19 }
0x189b   :  { %5619 = vrsqrt.f32 %v4296_v8  ;;  %v8084_v8 = vld [vmem:[#allocation5_spill] sm:$0xff] }
0x18a8   :  { %v5620_v46 = vpop.eup %5619 }
0x18a9   :  { %5089 = vpush %v5620_v46 }
0x18da   :  { %s5090_s15 = spop %5089 }
0x18db   :  { %v7711_v51 = vstv %s5090_s15 }
0x190f   :  { %v4306_v20 = vpop.permute.xlu1 %4305  ;;  %v4311_v58 = vpop.permute.xlu0 %4310 }
0x1933   :  { %v4159_v57 = vpop.f32.mrf.mxu0 }
0x1934   :  { %v7697_v32 = vadd.f32 %v4159_v57, %v3619_v17  ;;  %v8085_v17 = vld [vmem:[#allocation27_spill] sm:$0xff] }
0x1935   :  { %v4161_v9 = vpop.f32.mrf.mxu0  ;;  %v2525_v57 = vadd.f32 %v8085_v17, %v1957_v63 }
0x1936   :  { %v7701_v53 = vadd.f32 %v4161_v9, %v3621_v7  ;;  %v8086_v9 = vld [vmem:[#allocation6_spill] sm:$0xff] }
0x1937   :  { %v4163_v45 = vpop.f32.mrf.mxu0 }
0x1938   :  { %v7705_v11 = vadd.f32 %v4163_v45, %v3623_v4 }
0x1939   :  { %v4165_v27 = vpop.f32.mrf.mxu0 }
0x193a   :  { %v7707_v3 = vadd.f32 %v4165_v27, %v3625_v44 }
0x193b   :  { %v7709_v12 = vpop.f32.mrf.mxu0 }
0x193d   :  { %v4251_v38 = vpop.f32.mrf.mxu0 }
0x193e   :  { %v4318_v31 = vsub.f32 %v4251_v38, %v4306_v20 }
0x193f   :  { %v5024_v22 = vpop.f32.mrf.mxu0 }
0x1940   :  { %v4322_v13 = vmul.f32 %v7711_v51, %v4318_v31 }
0x1941   :  { %v4254_v5 = vpop.f32.mrf.mxu0 }
0x1942   :  { %v4325_v25 = vadd.f32 %v4322_v13, %v8078_v35  ;;  %v4319_v36 = vsub.f32 %v4254_v5, %v4311_v58  ;;  %v8087_v35 = vld [vmem:[#allocation22_spill] sm:$0xff] }
0x1944   :  { %v4328_v56 = vpack.c.bf16 %v4325_v25, %v4325_v25  ;;  %v4323_v24 = vmul.f32 %v7711_v51, %v4319_v36 }
0x1946   :  { %v4326_v37 = vadd.f32 %v4323_v24, %v8079_v2  ;;  %4330 = vxpose.xlu0.c.b16.start.end [1/1] (short) (narrow) %v4328_v56, 16 }
0x1948   :  { %v4329_v54 = vpack.c.bf16 %v4326_v37, %v4326_v37 }
0x194a   :  { %v4350_v16 = vsel %vm153_vm0, %v4329_v54, 0 }
0x194b   :  { %5026 = vmatpush3.bf16.msra.mxu0 %v4350_v16 }
0x194c   :  { %5031 = vmatprep.subr.bf16.mxu0 %v8061_v34 }
0x19a8   :  { %v4338_v50 = vpop.trf.xlu0 }
0x19a9   :  { %5028 = vmatmul.mubr.msk.bf16.vlgmr.msra.gmra.mxu0 %vm146_vm1, %v4338_v50 }
0x19aa   :  { %5033 = vmatprep.mubr.msk.bf16.mxu0 %vm5685_vm3, %v8061_v34 }
0x1a69   :  { %v4386_v28 = vpop.f32.mrf.mxu0 }
0x1a6a   :  { %v4393_v39 = vsel %vm2153_vm4, %v4386_v28, -inf }
0x1a6b   :  { %4394 = vmax.xlane.f32.xlu1 %v4393_v39  ;;  %v5029_v15 = vpop.f32.mrf.mxu0 }
0x1a6d   :  { %v4389_v40 = vpop.f32.mrf.mxu0 }
0x1a6e   :  { %v4396_v0 = vsel %vm2153_vm4, %v4389_v40, -inf }
0x1a6f   :  { %4397 = vmax.xlane.f32.xlu0 %v4396_v0  ;;  %v5030_v62 = vpop.f32.mrf.mxu0 }
0x1a85   :  { %4315 = vperm.xlu0 %5103, %v4302_v14  }
0x1af4   :  { %v4395_v21 = vpop.xlane.xlu1 %4394 }
0x1af5   :  { %v4399_v43 = vsub.f32 %v4386_v28, %v4395_v21  ;;  %v8088_v28 = vld [vmem:[#allocation24_spill] sm:$0xff] }
0x1af7   :  { %v4401_v59 = vmul.f32 1.442695, %v4399_v43 }
0x1af8   :  { %v4398_v30 = vpop.xlane.xlu0 %4397 }
0x1af9   :  { %5621 = vpow2.f32 %v4401_v59  ;;  %v4400_v49 = vsub.f32 %v4389_v40, %v4398_v30 }
0x1afb   :  { %v4403_v26 = vmul.f32 1.442695, %v4400_v49 }
0x1afd   :  { %5623 = vpow2.f32 %v4403_v26 }
0x1b00   :  { %v4316_v44 = vpop.permute.xlu0 %4315 }
0x1b01   :  { %v4320_v20 = vsub.f32 %v7709_v12, %v4316_v44  ;;  %v4504_v12 = vpop.f32.mrf.mxu1 }
0x1b03   :  { %v4324_v13 = vmul.f32 %v7711_v51, %v4320_v20  ;;  %v5041_v56 = vpop.f32.mrf.mxu1 }
0x1b05   :  { %v4327_v25 = vadd.f32 %v4324_v13, %v8087_v35  ;;  %v4507_v39 = vpop.f32.mrf.mxu1 }
0x1b06   :  { %v5622_v33 = vpop.eup %5621 }
0x1b07   :  { %v4405_v48 = vsel %vm2153_vm4, %v5622_v33, 0.0  ;;  %v4415_v36 = vpack.c.bf16 %v4327_v25, %v4327_v25  ;;  %v5042_v15 = vpop.f32.mrf.mxu1 }
0x1b08   :  { %4406 = vadd.xlane.f32.xlu1 %v4405_v48 }
0x1b0a   :  { %v5624_v52 = vpop.eup %5623 }
0x1b0b   :  { %v4408_v47 = vsel %vm2153_vm4, %v5624_v52, 0.0 }
0x1b0c   :  { %4409 = vadd.xlane.f32.xlu1 %v4408_v47 }
0x1b1d   :  { %2528 = vperm.xlu1 %5105, %v136_v42  }
0x1b21   :  { %2533 = vperm.xlu1 %5105, %v137_v55  }
0x1b91   :  { %v4407_v23 = vpop.xlane.xlu1 %4406 }
0x1b92   :  { %5625 = vrcp.f32 %v4407_v23 }
0x1b95   :  { %v4410_v1 = vpop.xlane.xlu1 %4409 }
0x1b96   :  { %5627 = vrcp.f32 %v4410_v1 }
0x1b99   :  { %v2529_v41 = vpop.permute.xlu1 %2528 }
0x1b9a   :  { %v2536_v19 = vadd.f32 %v2529_v41, %v8083_v61  ;;  %v2537_v46 = vadd.f32 %v2529_v41, %v8084_v8 }
0x1b9c   :  { %2540 = vst [vmem:[%s7789_s7] sm:$0xff] %v2536_v19  ;;  %2541 = vst [vmem:[%s7789_s7 + $0x8] sm:$0xff] %v2537_v46 }
0x1b9d   :  { %v2534_v7 = vpop.permute.xlu1 %2533 }
0x1b9e   :  { %v2538_v4 = vadd.f32 %v2534_v7, %v8086_v9  ;;  %v2539_v45 = vadd.f32 %v2534_v7, %v2525_v57 }
0x1b9f   :  { %v5626_v27 = vpop.eup %5625 }
0x1ba0   :  { %2542 = vst [vmem:[%s7789_s7 + $0x10] sm:$0xff] %v2538_v4  ;;  %2543 = vst [vmem:[%s7789_s7 + $0x18] sm:$0xff] %v2539_v45  ;;  %v4413_v31 = vmul.f32 %v5626_v27, %v5622_v33 }
0x1ba3   :  { %v5628_v38 = vpop.eup %5627 }
0x1ba4   :  { %v4414_v22 = vmul.f32 %v5628_v38, %v5624_v52 }
0x1ba6   :  { %v4416_v58 = vpack.c.bf16 %v4414_v22, %v4413_v31 }
0x1ba8   :  { %v4421_v5 = vsel %vm2153_vm4, %v4416_v58, 0 }
0x1ba9   :  { %5032 = vmatpush3.bf16.xpose.msra.mxu0 %v4421_v5 }
0x1baa   :  { %5043 = vmatprep.subr.bf16.mxu0 %v8061_v34 }
0x1bb0   :  { %5034 = vmatmul.mubr.msk.bf16.vlgmr.msra.gmra.mxu0 %vm2153_vm4, %v4415_v36 }
0x1bb1   :  { %5045 = vmatprep.mubr.msk.bf16.mxu0 %vm5685_vm3, %v8061_v34 }
0x1c70   :  { %v4457_v24 = vpop.f32.mrf.mxu0 }
0x1c71   :  { %v4463_v2 = vmax.f32 %v4457_v24, 0.0 }
0x1c72   :  { %v5035_v37 = vpop.f32.mrf.mxu0 }
0x1c73   :  { %v4464_v51 = vpack.c.bf16 %v4463_v2, %v4463_v2 }
0x1c74   :  { %v4460_v54 = vpop.f32.mrf.mxu0 }
0x1c75   :  { %v4512_v16 = vsel %vm153_vm0, %v4464_v51, 0 }
0x1c76   :  { %v5036_v50 = vpop.f32.mrf.mxu0  ;;  %5044 = vmatpush3.bf16.msra.mxu0 %v4512_v16 }
0x1c79   :  { %5046 = vmatmul.mubr.msk.bf16.vlgmr.msra.gmra.mxu0 %vm146_vm1, %v8088_v28 }
0x1d39   :  { %v4548_v40 = vpop.f32.mrf.mxu0 }
0x1d3a   :  { %v4549_v34 = vadd.f32 %v4548_v40, %v4504_v12 }
0x1d3b   :  { %v5047_v0 = vpop.f32.mrf.mxu0 }
0x1d3d   :  { %v4551_v62 = vpop.f32.mrf.mxu0 }
0x1d3e   :  { %v4552_v60 = vadd.f32 %v4551_v62, %v4507_v39 }
0x1d3f   :  { %v5048_v14 = vpop.f32.mrf.mxu0 }
0x1d40   :  { %v4555_v21 = vpack.c.bf16 %v4552_v60, %v4549_v34 }
0x1d42   :  { %4760 = vmatmul.mubr.msk.bf16.vlgmr.msra.gmra.mxu1 %vm2153_vm4, %v4555_v21 }
0x1e02   :  { %v4593_v43 = vpop.f32.mrf.mxu1 }
0x1e03   :  { %v4602_v59 = vadd.f32 %v4593_v43, %v7697_v32 }
0x1e04   :  { %v4595_v30 = vpop.f32.mrf.mxu1 }
0x1e05   :  { %v4606_v49 = vadd.f32 %v4602_v59, %v2529_v41  ;;  %v4603_v26 = vadd.f32 %v4595_v30, %v7701_v53 }
0x1e06   :  { %v4597_v33 = vpop.f32.mrf.mxu1 }
0x1e07   :  { %4761 = vst [vmem:[%s7789_s7 + $0x20] sm:$0xff] %v4606_v49  ;;  %v4607_v48 = vadd.f32 %v4603_v26, %v2529_v41  ;;  %v4604_v52 = vadd.f32 %v4597_v33, %v7705_v11 }
0x1e08   :  { %v4599_v47 = vpop.f32.mrf.mxu1 }
0x1e09   :  { %4762 = vst [vmem:[%s7789_s7 + $0x28] sm:$0xff] %v4607_v48  ;;  %v4608_v42 = vadd.f32 %v4604_v52, %v2534_v7  ;;  %v4605_v32 = vadd.f32 %v4599_v47, %v7707_v3 }
0x1e0b   :  { %4763 = vst [vmem:[%s7789_s7 + $0x30] sm:$0xff] %v4608_v42  ;;  %v4609_v53 = vadd.f32 %v4605_v32, %v2534_v7 }
0x1e0d   :  { %4764 = vst [vmem:[%s7789_s7 + $0x38] sm:$0xff] %v4609_v53 }

</bundles_post_ra>
